<compile_context>
chip_gen: v5e
topology: v5e:2x2
jax: 0.10.0
libtpu: 0.0.40
codegen_flags: <defaults>
</compile_context>

<pallas_src>
import jax
import jax.numpy as jnp
import numpy as np
from jax import lax
from jax.experimental import pallas as pl
from jax.experimental.pallas import tpu as pltpu

LEAKY_SLOPE = 0.2
BN_EPS = 1e-5
# Safe scoped-VMEM request on v5e (16 MiB default), v6e (32) and v7x (32 of 64 physical).
VMEM_LIMIT = 32 * 1024 * 1024


def _act(y, act):
    if act == "relu":
        return jnp.maximum(y, 0.0)
    if act == "leaky_relu":
        return jnp.where(y >= 0.0, y, y * LEAKY_SLOPE)
    return y


def _pick_tr(ho, wo, cout):
    """Output-row tile: a divisor of ho targeting >= 2-4 grid steps (v7x 2-TC sharding,
    writeback pipelining) with the f32 accumulator capped at ~2 MiB per step."""
    cap = max(1, (2 * 1024 * 1024) // max(1, wo * cout * 4))
    target = max(1, min(cap, ho // 4 if ho >= 4 else max(1, ho // 2)))
    best = 1
    for d in range(1, ho + 1):
        if ho % d == 0 and d <= target:
            best = d
    # TODO(synk): for large prime ho this degrades to 1-row tiles; pad rows instead.
    return best


# ----------------------------- Pallas kernels --------------------------------
def _make_conv5_kernel(TR, Wo, act):
    """5x5 / stride-2 conv + folded-BN bias + act.  The stride is pre-absorbed by a
    parity split, so x_ref is (1, 4, Hq, Wq, Cin) resident in VMEM and every tap
    slice below is unit-stride."""

    def kernel(x_ref, w_ref, b_ref, o_ref):
        r0 = pl.program_id(1) * TR
        acc = None
        for kh in range(5):
            for kw in range(5):
                par = (kh % 2) * 2 + (kw % 2)
                dh, dw = kh // 2, kw // 2
                xs = x_ref[0, par, pl.ds(r0 + dh, TR), dw:dw + Wo, :]
                xs = xs.reshape(TR * Wo, xs.shape[-1])
                d = jnp.dot(xs, w_ref[kh * 5 + kw], preferred_element_type=jnp.float32)
                acc = d if acc is None else acc + d
        out = _act(acc + b_ref[...], act)
        o_ref[0, :, :, :] = out.reshape(TR, Wo, -1).astype(o_ref.dtype)

    return kernel


def _make_conv3_kernel(TR, Wo, act):
    """3x3 / stride-1 conv + bias (+ act).  x_ref: (1, Ho+2, Wo+2, Cin) resident."""

    def kernel(x_ref, w_ref, b_ref, o_ref):
        r0 = pl.program_id(1) * TR
        acc = None
        for kh in range(3):
            for kw in range(3):
                xs = x_ref[0, pl.ds(r0 + kh, TR), kw:kw + Wo, :]
                xs = xs.reshape(TR * Wo, xs.shape[-1])
                d = jnp.dot(xs, w_ref[kh * 3 + kw], preferred_element_type=jnp.float32)
                acc = d if acc is None else acc + d
        out = _act(acc + b_ref[...], act)
        o_ref[0, :, :, :] = out.reshape(TR, Wo, -1).astype(o_ref.dtype)

    return kernel


def _make_resblock_kernel(TR, Wo, C):
    """Fused ResidualBlock: x + lrelu(conv2(lrelu(conv1(x)))), one pallas_call.
    x_ref: (1, Ho+4, Wo+4, C) resident (extra zero ring so halo rows stay in-bounds).
    y_ref scratch holds the intermediate activation (with its zero padding) in VMEM."""

    def kernel(x_ref, w1_ref, b1_ref, w2_ref, b2_ref, o_ref, y_ref):
        r = pl.program_id(1)
        r0 = r * TR

        # conv1 over TR+2 rows (intermediate rows r0-1 .. r0+TR, i.e. incl. halo rows).
        acc = None
        for kh in range(3):
            for kw in range(3):
                xs = x_ref[0, pl.ds(r0 + kh, TR + 2), kw + 1:kw + 1 + Wo, :]
                xs = xs.reshape((TR + 2) * Wo, C)
                d = jnp.dot(xs, w1_ref[kh * 3 + kw], preferred_element_type=jnp.float32)
                acc = d if acc is None else acc + d
        y = _act(acc + b1_ref[...], "leaky_relu")
        y_ref[:, 1:1 + Wo, :] = y.reshape(TR + 2, Wo, C).astype(y_ref.dtype)

        # conv2 sees zero padding of the intermediate activation, not conv1-of-padding.
        zc = jnp.zeros((TR + 2, 1, C), y_ref.dtype)
        y_ref[:, 0:1, :] = zc
        y_ref[:, Wo + 1:Wo + 2, :] = zc
        zr = jnp.zeros((1, Wo + 2, C), y_ref.dtype)

        @pl.when(r == 0)
        def _():
            y_ref[0:1, :, :] = zr

        @pl.when(r == pl.num_programs(1) - 1)
        def _():
            y_ref[TR + 1:TR + 2, :, :] = zr

        # conv2 over TR rows, then residual add.
        acc2 = None
        for kh in range(3):
            for kw in range(3):
                ys = y_ref[kh:kh + TR, kw:kw + Wo, :]
                ys = ys.reshape(TR * Wo, C)
                d = jnp.dot(ys, w2_ref[kh * 3 + kw], preferred_element_type=jnp.float32)
                acc2 = d if acc2 is None else acc2 + d
        out = _act(acc2 + b2_ref[...], "leaky_relu")
        res = x_ref[0, pl.ds(r0 + 2, TR), 2:2 + Wo, :].astype(jnp.float32)
        out = out + res.reshape(TR * Wo, C)
        o_ref[0, :, :, :] = out.reshape(TR, Wo, C).astype(o_ref.dtype)

    return kernel


# ------------------------------ layer wrappers --------------------------------
def _wb_specs(n_taps, cin, cout):
    """Weights (n_taps, cin, cout) + bias (1, cout): resident across all grid steps."""
    return [pl.BlockSpec((n_taps, cin, cout), lambda n, r: (0, 0, 0)),
            pl.BlockSpec((1, cout), lambda n, r: (0, 0))]


def conv5x5_bn_relu(x, w, scale, bias):
    """x: (N,H,W,Cin) bf16; 5x5 / stride 2 / pad 2 conv + folded BN + ReLU -> bf16."""
    N, H, W, Cin = x.shape
    Cout = w.shape[-1]
    pad = 2
    Ho = (H + 2 * pad - 5) // 2 + 1
    Wo = (W + 2 * pad - 5) // 2 + 1

    # Pad the RAW input (cheap, never the inflated im2col tensor) and absorb the
    # stride-2 with a parity split so all in-kernel tap slices are unit-stride.
    Hp = H + 2 * pad
    Wp = W + 2 * pad
    Hp += Hp % 2
    Wp += Wp % 2
    xp = jnp.pad(x, ((0, 0), (pad, Hp - H - pad), (pad, Wp - W - pad), (0, 0)))
    Hq, Wq = Hp // 2, Wp // 2
    xq = xp.reshape(N, Hq, 2, Wq, 2, Cin).transpose(0, 2, 4, 1, 3, 5)
    xq = xq.reshape(N, 4, Hq, Wq, Cin)

    wf = (w * scale.reshape(1, 1, 1, -1)).reshape(25, Cin, Cout).astype(jnp.bfloat16)
    b2 = bias.reshape(1, Cout).astype(jnp.float32)

    TR = _pick_tr(Ho, Wo, Cout)
    cost = pl.CostEstimate(
        flops=2 * N * Ho * Wo * 25 * Cin * Cout, transcendentals=0,
        bytes_accessed=xq.size * 2 + wf.size * 2 + b2.size * 4 + N * Ho * Wo * Cout * 2)
    return pl.pallas_call(
        _make_conv5_kernel(TR, Wo, "relu"),
        out_shape=jax.ShapeDtypeStruct((N, Ho, Wo, Cout), jnp.bfloat16),
        grid=(N, Ho // TR),
        in_specs=[pl.BlockSpec((1, 4, Hq, Wq, Cin), lambda n, r: (n, 0, 0, 0, 0))]
                 + _wb_specs(25, Cin, Cout),
        out_specs=pl.BlockSpec((1, TR, Wo, Cout), lambda n, r: (n, r, 0, 0)),
        compiler_params=pltpu.CompilerParams(
            dimension_semantics=("parallel", "parallel"),
            vmem_limit_bytes=VMEM_LIMIT),
        cost_estimate=cost,
    )(xq, wf, b2)


def conv3x3_bias(x, w, bias, *, act, out_dtype):
    """x: (N,H,W,Cin) bf16; 3x3 / stride 1 / pad 1 conv + bias (+ act)."""
    N, H, W, Cin = x.shape
    Cout = w.shape[-1]
    xp = jnp.pad(x, ((0, 0), (1, 1), (1, 1), (0, 0)))
    wf = w.reshape(9, Cin, Cout).astype(jnp.bfloat16)
    b2 = bias.reshape(1, Cout).astype(jnp.float32)
    TR = _pick_tr(H, W, Cout)
    cost = pl.CostEstimate(
        flops=2 * N * H * W * 9 * Cin * Cout, transcendentals=0,
        bytes_accessed=xp.size * 2 + wf.size * 2 + b2.size * 4
                       + N * H * W * Cout * jnp.dtype(out_dtype).itemsize)
    return pl.pallas_call(
        _make_conv3_kernel(TR, W, act),
        out_shape=jax.ShapeDtypeStruct((N, H, W, Cout), out_dtype),
        grid=(N, H // TR),
        in_specs=[pl.BlockSpec((1, H + 2, W + 2, Cin), lambda n, r: (n, 0, 0, 0))]
                 + _wb_specs(9, Cin, Cout),
        out_specs=pl.BlockSpec((1, TR, W, Cout), lambda n, r: (n, r, 0, 0)),
        compiler_params=pltpu.CompilerParams(
            dimension_semantics=("parallel", "parallel"),
            vmem_limit_bytes=VMEM_LIMIT),
        cost_estimate=cost,
    )(xp, wf, b2)


def residual_block(x, p):
    """Fused ResidualBlock in a single pallas_call; x: (N,H,W,C) bf16 -> bf16."""
    N, H, W, C = x.shape
    xp = jnp.pad(x, ((0, 0), (2, 2), (2, 2), (0, 0)))  # extra zero ring for halo rows
    w1 = (p["w1"] * p["s1"].reshape(1, 1, 1, -1)).reshape(9, C, C).astype(jnp.bfloat16)
    w2 = (p["w2"] * p["s2"].reshape(1, 1, 1, -1)).reshape(9, C, C).astype(jnp.bfloat16)
    b1 = p["b1"].reshape(1, C).astype(jnp.float32)
    b2 = p["b2"].reshape(1, C).astype(jnp.float32)
    TR = _pick_tr(H, W, C)
    cost = pl.CostEstimate(
        flops=2 * 2 * N * H * W * 9 * C * C, transcendentals=0,
        bytes_accessed=xp.size * 2 + (w1.size + w2.size) * 2
                       + (b1.size + b2.size) * 4 + N * H * W * C * 2)
    return pl.pallas_call(
        _make_resblock_kernel(TR, W, C),
        out_shape=jax.ShapeDtypeStruct((N, H, W, C), jnp.bfloat16),
        grid=(N, H // TR),
        in_specs=[pl.BlockSpec((1, H + 4, W + 4, C), lambda n, r: (n, 0, 0, 0)),
                  pl.BlockSpec((9, C, C), lambda n, r: (0, 0, 0)),
                  pl.BlockSpec((1, C), lambda n, r: (0, 0)),
                  pl.BlockSpec((9, C, C), lambda n, r: (0, 0, 0)),
                  pl.BlockSpec((1, C), lambda n, r: (0, 0))],
        out_specs=pl.BlockSpec((1, TR, W, C), lambda n, r: (n, r, 0, 0)),
        scratch_shapes=[pltpu.VMEM((TR + 2, W + 2, C), jnp.bfloat16)],
        compiler_params=pltpu.CompilerParams(
            dimension_semantics=("parallel", "parallel"),
            vmem_limit_bytes=VMEM_LIMIT),
        cost_estimate=cost,
    )(xp, w1, b1, w2, b2)


# ------------------------- parameters (deterministic) -----------------------
def _fold_bn(gamma, beta, mean, var):
    scale = gamma / jnp.sqrt(var + BN_EPS)
    return scale, beta - mean * scale


def init_params(key, in_channel, out_channel):
    def conv_w(k, kh, kw, cin, cout):
        return jax.random.normal(k, (kh, kw, cin, cout), jnp.float32) / np.sqrt(kh * kw * cin)

    def bn(k, c):
        k1, k2, k3, k4 = jax.random.split(k, 4)
        gamma = jax.random.uniform(k1, (c,), jnp.float32, 0.5, 1.5)
        beta = 0.1 * jax.random.normal(k2, (c,), jnp.float32)
        mean = 0.1 * jax.random.normal(k3, (c,), jnp.float32)
        var = jax.random.uniform(k4, (c,), jnp.float32, 0.5, 1.5)
        return _fold_bn(gamma, beta, mean, var)

    keys = iter(jax.random.split(key, 32))
    params = {"down": [], "res": []}
    cin = in_channel
    for _ in range(3):  # conv5x5_{1,2,3}: 5x5, stride 2, pad 2, BN, ReLU
        w = conv_w(next(keys), 5, 5, cin, out_channel)
        s, b = bn(next(keys), out_channel)
        params["down"].append(dict(w=w, scale=s, bias=b))
        cin = out_channel
    for _ in range(6):  # res_1..res_6
        w1 = conv_w(next(keys), 3, 3, out_channel, out_channel)
        s1, b1 = bn(next(keys), out_channel)
        w2 = conv_w(next(keys), 3, 3, out_channel, out_channel)
        s2, b2 = bn(next(keys), out_channel)
        params["res"].append(dict(w1=w1, s1=s1, b1=b1, w2=w2, s2=s2, b2=b2))
    wf = conv_w(next(keys), 3, 3, out_channel, out_channel)  # conv3x3 with bias
    bf = 0.1 * jax.random.normal(next(keys), (out_channel,), jnp.float32)
    params["final"] = dict(w=wf, b=bf)
    return params


# ------------------------------ forward pass --------------------------------
def feature_extraction(x_nchw, params):
    x = jnp.transpose(x_nchw, (0, 2, 3, 1)).astype(jnp.bfloat16)  # NCHW -> NHWC, bf16
    for p in params["down"]:
        x = conv5x5_bn_relu(x, p["w"], p["scale"], p["bias"])
    for p in params["res"]:
        x = residual_block(x, p)
    p = params["final"]
    x = conv3x3_bias(x, p["w"], p["b"], act="none", out_dtype=jnp.float32)
    return jnp.transpose(x, (0, 3, 1, 2))  # NHWC -> NCHW


# --------------------------- pure-JAX references -----------------------------
def _conv_ref(x, w, stride, pad, dt, prec):
    return lax.conv_general_dilated(
        x.astype(dt), w.astype(dt), (stride, stride), [(pad, pad)] * 2,
        dimension_numbers=("NHWC", "HWIO", "NHWC"),
        preferred_element_type=jnp.float32, precision=prec)


def feature_extraction_ref(x_nchw, params, *, bf16):
    """bf16=True mirrors the kernel's quantization points exactly (bf16 operands,
    bf16 stored activations, f32 epilogue); bf16=False is the full-f32 model."""
    dt = jnp.bfloat16 if bf16 else jnp.float32
    prec = None if bf16 else lax.Precision.HIGHEST
    x = jnp.transpose(x_nchw, (0, 2, 3, 1)).astype(dt)

    def cba(z, w, scale, bias, stride, pad, act):
        y = _conv_ref(z, w * scale.reshape(1, 1, 1, -1), stride, pad, dt, prec) + bias
        return _act(y, act)

    for p in params["down"]:
        x = cba(x, p["w"], p["scale"], p["bias"], 2, 2, "relu").astype(dt)
    for p in params["res"]:
        y = cba(x, p["w1"], p["s1"], p["b1"], 1, 1, "leaky_relu").astype(dt)
        z = cba(y, p["w2"], p["s2"], p["b2"], 1, 1, "leaky_relu")
        x = (z + x.astype(jnp.float32)).astype(dt)
    p = params["final"]
    ones = jnp.ones((p["w"].shape[-1],), jnp.float32)
    x = cba(x, p["w"], ones, p["b"], 1, 1, "none")
    return jnp.transpose(x, (0, 3, 1, 2))


# ---------------------------------- main -------------------------------------
if __name__ == "__main__":
    key = jax.random.PRNGKey(0)
    kx, kp = jax.random.split(key)
    N, Cin, H, W = 2, 4, 16, 16
    Cout = 32

    x = jax.random.normal(kx, (N, Cin, H, W), jnp.float32)
    params = init_params(kp, Cin, Cout)

    out = jax.jit(feature_extraction)(x, params)
    out = jax.block_until_ready(out)
    assert out.shape == (N, Cout, H // 8, W // 8), out.shape

    # 1) Tight check vs. a reference with identical bf16 quantization points.
    ref_bf16 = feature_extraction_ref(x, params, bf16=True)
    np.testing.assert_allclose(np.asarray(out), np.asarray(ref_bf16), rtol=2e-2, atol=2e-2)

    # 2) Global relative-L2 sanity check vs. full-f32 model semantics.
    ref_f32 = np.asarray(feature_extraction_ref(x, params, bf16=False))
    rel_err = np.linalg.norm(np.asarray(out) - ref_f32) / np.linalg.norm(ref_f32)
    assert rel_err < 5e-2, rel_err

    print("KERNEL_OK")
</pallas_src>

<mosaic_0001>
module attributes {stable_mosaic.version = 11 : i64} {
  func.func @kernel(%arg0: i32, %arg1: i32, %arg2: memref<1x4x10x10x4xbf16, #tpu.memory_space<vmem>>, %arg3: memref<25x4x32xbf16, #tpu.memory_space<vmem>>, %arg4: memref<1x32xf32, #tpu.memory_space<vmem>>, %arg5: memref<1x2x8x32xbf16, #tpu.memory_space<vmem>>) attributes {dimension_semantics = [#tpu.dimension_semantics<parallel>, #tpu.dimension_semantics<parallel>], iteration_bounds = array<i64: 2, 4>, scalar_prefetch = 0 : i64, scratch_operands = 0 : i64, tpu.core_type = #tpu.core_type<tc>, window_params = [{transform_indices = @transform_0, window_bounds = array<i64: 1, 4, 10, 10, 4>}, {pipeline_mode = #tpu.pipeline_mode<synchronous>, transform_indices = @transform_1, window_bounds = array<i64: 25, 4, 32>}, {pipeline_mode = #tpu.pipeline_mode<synchronous>, transform_indices = @transform_2, window_bounds = array<i64: 1, 32>}, {transform_indices = @transform_3, window_bounds = array<i64: 1, 2, 8, 32>}]} {
    %c2_i32 = arith.constant 2 : i32
    %0 = arith.muli %arg1, %c2_i32 : i32
    %c0_i32 = arith.constant 0 : i32
    %1 = arith.addi %0, %c0_i32 : i32
    %c0 = arith.constant 0 : index
    %c0_0 = arith.constant 0 : index
    %2 = arith.index_cast %1 : i32 to index
    %c0_1 = arith.constant 0 : index
    %c0_2 = arith.constant 0 : index
    %3 = vector.load %arg2[%c0, %c0_0, %2, %c0_1, %c0_2] : memref<1x4x10x10x4xbf16, #tpu.memory_space<vmem>>, vector<1x1x2x8x4xbf16>
    %4 = vector.shape_cast %3 : vector<1x1x2x8x4xbf16> to vector<2x8x4xbf16>
    %5 = vector.shape_cast %4 : vector<2x8x4xbf16> to vector<16x4xbf16>
    %c0_3 = arith.constant 0 : index
    %c0_4 = arith.constant 0 : index
    %c0_5 = arith.constant 0 : index
    %6 = vector.load %arg3[%c0_3, %c0_4, %c0_5] : memref<25x4x32xbf16, #tpu.memory_space<vmem>>, vector<1x4x32xbf16>
    %7 = vector.shape_cast %6 : vector<1x4x32xbf16> to vector<4x32xbf16>
    %cst = arith.constant dense<0.000000e+00> : vector<16x32xf32>
    %8 = tpu.matmul %5, %7, %cst {dimension_numbers = #tpu.dot_dimension_numbers<[1], [0], [0], [1], [0, 0, 1, 1], [], []>} : vector<16x4xbf16>, vector<4x32xbf16>, vector<16x32xf32> -> vector<16x32xf32>
    %c0_i32_6 = arith.constant 0 : i32
    %9 = arith.addi %0, %c0_i32_6 : i32
    %c0_7 = arith.constant 0 : index
    %c1 = arith.constant 1 : index
    %10 = arith.index_cast %9 : i32 to index
    %c0_8 = arith.constant 0 : index
    %c0_9 = arith.constant 0 : index
    %11 = vector.load %arg2[%c0_7, %c1, %10, %c0_8, %c0_9] : memref<1x4x10x10x4xbf16, #tpu.memory_space<vmem>>, vector<1x1x2x8x4xbf16>
    %12 = vector.shape_cast %11 : vector<1x1x2x8x4xbf16> to vector<2x8x4xbf16>
    %13 = vector.shape_cast %12 : vector<2x8x4xbf16> to vector<16x4xbf16>
    %c1_10 = arith.constant 1 : index
    %c0_11 = arith.constant 0 : index
    %c0_12 = arith.constant 0 : index
    %14 = vector.load %arg3[%c1_10, %c0_11, %c0_12] : memref<25x4x32xbf16, #tpu.memory_space<vmem>>, vector<1x4x32xbf16>
    %15 = vector.shape_cast %14 : vector<1x4x32xbf16> to vector<4x32xbf16>
    %cst_13 = arith.constant dense<0.000000e+00> : vector<16x32xf32>
    %16 = tpu.matmul %13, %15, %cst_13 {dimension_numbers = #tpu.dot_dimension_numbers<[1], [0], [0], [1], [0, 0, 1, 1], [], []>} : vector<16x4xbf16>, vector<4x32xbf16>, vector<16x32xf32> -> vector<16x32xf32>
    %17 = arith.addf %8, %16 : vector<16x32xf32>
    %c0_i32_14 = arith.constant 0 : i32
    %18 = arith.addi %0, %c0_i32_14 : i32
    %c0_15 = arith.constant 0 : index
    %c0_16 = arith.constant 0 : index
    %19 = arith.index_cast %18 : i32 to index
    %c1_17 = arith.constant 1 : index
    %c0_18 = arith.constant 0 : index
    %20 = vector.load %arg2[%c0_15, %c0_16, %19, %c1_17, %c0_18] : memref<1x4x10x10x4xbf16, #tpu.memory_space<vmem>>, vector<1x1x2x8x4xbf16>
    %21 = vector.shape_cast %20 : vector<1x1x2x8x4xbf16> to vector<2x8x4xbf16>
    %22 = vector.shape_cast %21 : vector<2x8x4xbf16> to vector<16x4xbf16>
    %c2 = arith.constant 2 : index
    %c0_19 = arith.constant 0 : index
    %c0_20 = arith.constant 0 : index
    %23 = vector.load %arg3[%c2, %c0_19, %c0_20] : memref<25x4x32xbf16, #tpu.memory_space<vmem>>, vector<1x4x32xbf16>
    %24 = vector.shape_cast %23 : vector<1x4x32xbf16> to vector<4x32xbf16>
    %cst_21 = arith.constant dense<0.000000e+00> : vector<16x32xf32>
    %25 = tpu.matmul %22, %24, %cst_21 {dimension_numbers = #tpu.dot_dimension_numbers<[1], [0], [0], [1], [0, 0, 1, 1], [], []>} : vector<16x4xbf16>, vector<4x32xbf16>, vector<16x32xf32> -> vector<16x32xf32>
    %26 = arith.addf %17, %25 : vector<16x32xf32>
    %c0_i32_22 = arith.constant 0 : i32
    %27 = arith.addi %0, %c0_i32_22 : i32
    %c0_23 = arith.constant 0 : index
    %c1_24 = arith.constant 1 : index
    %28 = arith.index_cast %27 : i32 to index
    %c1_25 = arith.constant 1 : index
    %c0_26 = arith.constant 0 : index
    %29 = vector.load %arg2[%c0_23, %c1_24, %28, %c1_25, %c0_26] : memref<1x4x10x10x4xbf16, #tpu.memory_space<vmem>>, vector<1x1x2x8x4xbf16>
    %30 = vector.shape_cast %29 : vector<1x1x2x8x4xbf16> to vector<2x8x4xbf16>
    %31 = vector.shape_cast %30 : vector<2x8x4xbf16> to vector<16x4xbf16>
    %c3 = arith.constant 3 : index
    %c0_27 = arith.constant 0 : index
    %c0_28 = arith.constant 0 : index
    %32 = vector.load %arg3[%c3, %c0_27, %c0_28] : memref<25x4x32xbf16, #tpu.memory_space<vmem>>, vector<1x4x32xbf16>
    %33 = vector.shape_cast %32 : vector<1x4x32xbf16> to vector<4x32xbf16>
    %cst_29 = arith.constant dense<0.000000e+00> : vector<16x32xf32>
    %34 = tpu.matmul %31, %33, %cst_29 {dimension_numbers = #tpu.dot_dimension_numbers<[1], [0], [0], [1], [0, 0, 1, 1], [], []>} : vector<16x4xbf16>, vector<4x32xbf16>, vector<16x32xf32> -> vector<16x32xf32>
    %35 = arith.addf %26, %34 : vector<16x32xf32>
    %c0_i32_30 = arith.constant 0 : i32
    %36 = arith.addi %0, %c0_i32_30 : i32
    %c0_31 = arith.constant 0 : index
    %c0_32 = arith.constant 0 : index
    %37 = arith.index_cast %36 : i32 to index
    %c2_33 = arith.constant 2 : index
    %c0_34 = arith.constant 0 : index
    %38 = vector.load %arg2[%c0_31, %c0_32, %37, %c2_33, %c0_34] : memref<1x4x10x10x4xbf16, #tpu.memory_space<vmem>>, vector<1x1x2x8x4xbf16>
    %39 = vector.shape_cast %38 : vector<1x1x2x8x4xbf16> to vector<2x8x4xbf16>
    %40 = vector.shape_cast %39 : vector<2x8x4xbf16> to vector<16x4xbf16>
    %c4 = arith.constant 4 : index
    %c0_35 = arith.constant 0 : index
    %c0_36 = arith.constant 0 : index
    %41 = vector.load %arg3[%c4, %c0_35, %c0_36] : memref<25x4x32xbf16, #tpu.memory_space<vmem>>, vector<1x4x32xbf16>
    %42 = vector.shape_cast %41 : vector<1x4x32xbf16> to vector<4x32xbf16>
    %cst_37 = arith.constant dense<0.000000e+00> : vector<16x32xf32>
    %43 = tpu.matmul %40, %42, %cst_37 {dimension_numbers = #tpu.dot_dimension_numbers<[1], [0], [0], [1], [0, 0, 1, 1], [], []>} : vector<16x4xbf16>, vector<4x32xbf16>, vector<16x32xf32> -> vector<16x32xf32>
    %44 = arith.addf %35, %43 : vector<16x32xf32>
    %c0_i32_38 = arith.constant 0 : i32
    %45 = arith.addi %0, %c0_i32_38 : i32
    %c0_39 = arith.constant 0 : index
    %c2_40 = arith.constant 2 : index
    %46 = arith.index_cast %45 : i32 to index
    %c0_41 = arith.constant 0 : index
    %c0_42 = arith.constant 0 : index
    %47 = vector.load %arg2[%c0_39, %c2_40, %46, %c0_41, %c0_42] : memref<1x4x10x10x4xbf16, #tpu.memory_space<vmem>>, vector<1x1x2x8x4xbf16>
    %48 = vector.shape_cast %47 : vector<1x1x2x8x4xbf16> to vector<2x8x4xbf16>
    %49 = vector.shape_cast %48 : vector<2x8x4xbf16> to vector<16x4xbf16>
    %c5 = arith.constant 5 : index
    %c0_43 = arith.constant 0 : index
    %c0_44 = arith.constant 0 : index
    %50 = vector.load %arg3[%c5, %c0_43, %c0_44] : memref<25x4x32xbf16, #tpu.memory_space<vmem>>, vector<1x4x32xbf16>
    %51 = vector.shape_cast %50 : vector<1x4x32xbf16> to vector<4x32xbf16>
    %cst_45 = arith.constant dense<0.000000e+00> : vector<16x32xf32>
    %52 = tpu.matmul %49, %51, %cst_45 {dimension_numbers = #tpu.dot_dimension_numbers<[1], [0], [0], [1], [0, 0, 1, 1], [], []>} : vector<16x4xbf16>, vector<4x32xbf16>, vector<16x32xf32> -> vector<16x32xf32>
    %53 = arith.addf %44, %52 : vector<16x32xf32>
    %c0_i32_46 = arith.constant 0 : i32
    %54 = arith.addi %0, %c0_i32_46 : i32
    %c0_47 = arith.constant 0 : index
    %c3_48 = arith.constant 3 : index
    %55 = arith.index_cast %54 : i32 to index
    %c0_49 = arith.constant 0 : index
    %c0_50 = arith.constant 0 : index
    %56 = vector.load %arg2[%c0_47, %c3_48, %55, %c0_49, %c0_50] : memref<1x4x10x10x4xbf16, #tpu.memory_space<vmem>>, vector<1x1x2x8x4xbf16>
    %57 = vector.shape_cast %56 : vector<1x1x2x8x4xbf16> to vector<2x8x4xbf16>
    %58 = vector.shape_cast %57 : vector<2x8x4xbf16> to vector<16x4xbf16>
    %c6 = arith.constant 6 : index
    %c0_51 = arith.constant 0 : index
    %c0_52 = arith.constant 0 : index
    %59 = vector.load %arg3[%c6, %c0_51, %c0_52] : memref<25x4x32xbf16, #tpu.memory_space<vmem>>, vector<1x4x32xbf16>
    %60 = vector.shape_cast %59 : vector<1x4x32xbf16> to vector<4x32xbf16>
    %cst_53 = arith.constant dense<0.000000e+00> : vector<16x32xf32>
    %61 = tpu.matmul %58, %60, %cst_53 {dimension_numbers = #tpu.dot_dimension_numbers<[1], [0], [0], [1], [0, 0, 1, 1], [], []>} : vector<16x4xbf16>, vector<4x32xbf16>, vector<16x32xf32> -> vector<16x32xf32>
    %62 = arith.addf %53, %61 : vector<16x32xf32>
    %c0_i32_54 = arith.constant 0 : i32
    %63 = arith.addi %0, %c0_i32_54 : i32
    %c0_55 = arith.constant 0 : index
    %c2_56 = arith.constant 2 : index
    %64 = arith.index_cast %63 : i32 to index
    %c1_57 = arith.constant 1 : index
    %c0_58 = arith.constant 0 : index
    %65 = vector.load %arg2[%c0_55, %c2_56, %64, %c1_57, %c0_58] : memref<1x4x10x10x4xbf16, #tpu.memory_space<vmem>>, vector<1x1x2x8x4xbf16>
    %66 = vector.shape_cast %65 : vector<1x1x2x8x4xbf16> to vector<2x8x4xbf16>
    %67 = vector.shape_cast %66 : vector<2x8x4xbf16> to vector<16x4xbf16>
    %c7 = arith.constant 7 : index
    %c0_59 = arith.constant 0 : index
    %c0_60 = arith.constant 0 : index
    %68 = vector.load %arg3[%c7, %c0_59, %c0_60] : memref<25x4x32xbf16, #tpu.memory_space<vmem>>, vector<1x4x32xbf16>
    %69 = vector.shape_cast %68 : vector<1x4x32xbf16> to vector<4x32xbf16>
    %cst_61 = arith.constant dense<0.000000e+00> : vector<16x32xf32>
    %70 = tpu.matmul %67, %69, %cst_61 {dimension_numbers = #tpu.dot_dimension_numbers<[1], [0], [0], [1], [0, 0, 1, 1], [], []>} : vector<16x4xbf16>, vector<4x32xbf16>, vector<16x32xf32> -> vector<16x32xf32>
    %71 = arith.addf %62, %70 : vector<16x32xf32>
    %c0_i32_62 = arith.constant 0 : i32
    %72 = arith.addi %0, %c0_i32_62 : i32
    %c0_63 = arith.constant 0 : index
    %c3_64 = arith.constant 3 : index
    %73 = arith.index_cast %72 : i32 to index
    %c1_65 = arith.constant 1 : index
    %c0_66 = arith.constant 0 : index
    %74 = vector.load %arg2[%c0_63, %c3_64, %73, %c1_65, %c0_66] : memref<1x4x10x10x4xbf16, #tpu.memory_space<vmem>>, vector<1x1x2x8x4xbf16>
    %75 = vector.shape_cast %74 : vector<1x1x2x8x4xbf16> to vector<2x8x4xbf16>
    %76 = vector.shape_cast %75 : vector<2x8x4xbf16> to vector<16x4xbf16>
    %c8 = arith.constant 8 : index
    %c0_67 = arith.constant 0 : index
    %c0_68 = arith.constant 0 : index
    %77 = vector.load %arg3[%c8, %c0_67, %c0_68] : memref<25x4x32xbf16, #tpu.memory_space<vmem>>, vector<1x4x32xbf16>
    %78 = vector.shape_cast %77 : vector<1x4x32xbf16> to vector<4x32xbf16>
    %cst_69 = arith.constant dense<0.000000e+00> : vector<16x32xf32>
    %79 = tpu.matmul %76, %78, %cst_69 {dimension_numbers = #tpu.dot_dimension_numbers<[1], [0], [0], [1], [0, 0, 1, 1], [], []>} : vector<16x4xbf16>, vector<4x32xbf16>, vector<16x32xf32> -> vector<16x32xf32>
    %80 = arith.addf %71, %79 : vector<16x32xf32>
    %c0_i32_70 = arith.constant 0 : i32
    %81 = arith.addi %0, %c0_i32_70 : i32
    %c0_71 = arith.constant 0 : index
    %c2_72 = arith.constant 2 : index
    %82 = arith.index_cast %81 : i32 to index
    %c2_73 = arith.constant 2 : index
    %c0_74 = arith.constant 0 : index
    %83 = vector.load %arg2[%c0_71, %c2_72, %82, %c2_73, %c0_74] : memref<1x4x10x10x4xbf16, #tpu.memory_space<vmem>>, vector<1x1x2x8x4xbf16>
    %84 = vector.shape_cast %83 : vector<1x1x2x8x4xbf16> to vector<2x8x4xbf16>
    %85 = vector.shape_cast %84 : vector<2x8x4xbf16> to vector<16x4xbf16>
    %c9 = arith.constant 9 : index
    %c0_75 = arith.constant 0 : index
    %c0_76 = arith.constant 0 : index
    %86 = vector.load %arg3[%c9, %c0_75, %c0_76] : memref<25x4x32xbf16, #tpu.memory_space<vmem>>, vector<1x4x32xbf16>
    %87 = vector.shape_cast %86 : vector<1x4x32xbf16> to vector<4x32xbf16>
    %cst_77 = arith.constant dense<0.000000e+00> : vector<16x32xf32>
    %88 = tpu.matmul %85, %87, %cst_77 {dimension_numbers = #tpu.dot_dimension_numbers<[1], [0], [0], [1], [0, 0, 1, 1], [], []>} : vector<16x4xbf16>, vector<4x32xbf16>, vector<16x32xf32> -> vector<16x32xf32>
    %89 = arith.addf %80, %88 : vector<16x32xf32>
    %c1_i32 = arith.constant 1 : i32
    %90 = arith.addi %0, %c1_i32 : i32
    %c0_78 = arith.constant 0 : index
    %c0_79 = arith.constant 0 : index
    %91 = arith.index_cast %90 : i32 to index
    %c0_80 = arith.constant 0 : index
    %c0_81 = arith.constant 0 : index
    %92 = vector.load %arg2[%c0_78, %c0_79, %91, %c0_80, %c0_81] : memref<1x4x10x10x4xbf16, #tpu.memory_space<vmem>>, vector<1x1x2x8x4xbf16>
    %93 = vector.shape_cast %92 : vector<1x1x2x8x4xbf16> to vector<2x8x4xbf16>
    %94 = vector.shape_cast %93 : vector<2x8x4xbf16> to vector<16x4xbf16>
    %c10 = arith.constant 10 : index
    %c0_82 = arith.constant 0 : index
    %c0_83 = arith.constant 0 : index
    %95 = vector.load %arg3[%c10, %c0_82, %c0_83] : memref<25x4x32xbf16, #tpu.memory_space<vmem>>, vector<1x4x32xbf16>
    %96 = vector.shape_cast %95 : vector<1x4x32xbf16> to vector<4x32xbf16>
    %cst_84 = arith.constant dense<0.000000e+00> : vector<16x32xf32>
    %97 = tpu.matmul %94, %96, %cst_84 {dimension_numbers = #tpu.dot_dimension_numbers<[1], [0], [0], [1], [0, 0, 1, 1], [], []>} : vector<16x4xbf16>, vector<4x32xbf16>, vector<16x32xf32> -> vector<16x32xf32>
    %98 = arith.addf %89, %97 : vector<16x32xf32>
    %c1_i32_85 = arith.constant 1 : i32
    %99 = arith.addi %0, %c1_i32_85 : i32
    %c0_86 = arith.constant 0 : index
    %c1_87 = arith.constant 1 : index
    %100 = arith.index_cast %99 : i32 to index
    %c0_88 = arith.constant 0 : index
    %c0_89 = arith.constant 0 : index
    %101 = vector.load %arg2[%c0_86, %c1_87, %100, %c0_88, %c0_89] : memref<1x4x10x10x4xbf16, #tpu.memory_space<vmem>>, vector<1x1x2x8x4xbf16>
    %102 = vector.shape_cast %101 : vector<1x1x2x8x4xbf16> to vector<2x8x4xbf16>
    %103 = vector.shape_cast %102 : vector<2x8x4xbf16> to vector<16x4xbf16>
    %c11 = arith.constant 11 : index
    %c0_90 = arith.constant 0 : index
    %c0_91 = arith.constant 0 : index
    %104 = vector.load %arg3[%c11, %c0_90, %c0_91] : memref<25x4x32xbf16, #tpu.memory_space<vmem>>, vector<1x4x32xbf16>
    %105 = vector.shape_cast %104 : vector<1x4x32xbf16> to vector<4x32xbf16>
    %cst_92 = arith.constant dense<0.000000e+00> : vector<16x32xf32>
    %106 = tpu.matmul %103, %105, %cst_92 {dimension_numbers = #tpu.dot_dimension_numbers<[1], [0], [0], [1], [0, 0, 1, 1], [], []>} : vector<16x4xbf16>, vector<4x32xbf16>, vector<16x32xf32> -> vector<16x32xf32>
    %107 = arith.addf %98, %106 : vector<16x32xf32>
    %c1_i32_93 = arith.constant 1 : i32
    %108 = arith.addi %0, %c1_i32_93 : i32
    %c0_94 = arith.constant 0 : index
    %c0_95 = arith.constant 0 : index
    %109 = arith.index_cast %108 : i32 to index
    %c1_96 = arith.constant 1 : index
    %c0_97 = arith.constant 0 : index
    %110 = vector.load %arg2[%c0_94, %c0_95, %109, %c1_96, %c0_97] : memref<1x4x10x10x4xbf16, #tpu.memory_space<vmem>>, vector<1x1x2x8x4xbf16>
    %111 = vector.shape_cast %110 : vector<1x1x2x8x4xbf16> to vector<2x8x4xbf16>
    %112 = vector.shape_cast %111 : vector<2x8x4xbf16> to vector<16x4xbf16>
    %c12 = arith.constant 12 : index
    %c0_98 = arith.constant 0 : index
    %c0_99 = arith.constant 0 : index
    %113 = vector.load %arg3[%c12, %c0_98, %c0_99] : memref<25x4x32xbf16, #tpu.memory_space<vmem>>, vector<1x4x32xbf16>
    %114 = vector.shape_cast %113 : vector<1x4x32xbf16> to vector<4x32xbf16>
    %cst_100 = arith.constant dense<0.000000e+00> : vector<16x32xf32>
    %115 = tpu.matmul %112, %114, %cst_100 {dimension_numbers = #tpu.dot_dimension_numbers<[1], [0], [0], [1], [0, 0, 1, 1], [], []>} : vector<16x4xbf16>, vector<4x32xbf16>, vector<16x32xf32> -> vector<16x32xf32>
    %116 = arith.addf %107, %115 : vector<16x32xf32>
    %c1_i32_101 = arith.constant 1 : i32
    %117 = arith.addi %0, %c1_i32_101 : i32
    %c0_102 = arith.constant 0 : index
    %c1_103 = arith.constant 1 : index
    %118 = arith.index_cast %117 : i32 to index
    %c1_104 = arith.constant 1 : index
    %c0_105 = arith.constant 0 : index
    %119 = vector.load %arg2[%c0_102, %c1_103, %118, %c1_104, %c0_105] : memref<1x4x10x10x4xbf16, #tpu.memory_space<vmem>>, vector<1x1x2x8x4xbf16>
    %120 = vector.shape_cast %119 : vector<1x1x2x8x4xbf16> to vector<2x8x4xbf16>
    %121 = vector.shape_cast %120 : vector<2x8x4xbf16> to vector<16x4xbf16>
    %c13 = arith.constant 13 : index
    %c0_106 = arith.constant 0 : index
    %c0_107 = arith.constant 0 : index
    %122 = vector.load %arg3[%c13, %c0_106, %c0_107] : memref<25x4x32xbf16, #tpu.memory_space<vmem>>, vector<1x4x32xbf16>
    %123 = vector.shape_cast %122 : vector<1x4x32xbf16> to vector<4x32xbf16>
    %cst_108 = arith.constant dense<0.000000e+00> : vector<16x32xf32>
    %124 = tpu.matmul %121, %123, %cst_108 {dimension_numbers = #tpu.dot_dimension_numbers<[1], [0], [0], [1], [0, 0, 1, 1], [], []>} : vector<16x4xbf16>, vector<4x32xbf16>, vector<16x32xf32> -> vector<16x32xf32>
    %125 = arith.addf %116, %124 : vector<16x32xf32>
    %c1_i32_109 = arith.constant 1 : i32
    %126 = arith.addi %0, %c1_i32_109 : i32
    %c0_110 = arith.constant 0 : index
    %c0_111 = arith.constant 0 : index
    %127 = arith.index_cast %126 : i32 to index
    %c2_112 = arith.constant 2 : index
    %c0_113 = arith.constant 0 : index
    %128 = vector.load %arg2[%c0_110, %c0_111, %127, %c2_112, %c0_113] : memref<1x4x10x10x4xbf16, #tpu.memory_space<vmem>>, vector<1x1x2x8x4xbf16>
    %129 = vector.shape_cast %128 : vector<1x1x2x8x4xbf16> to vector<2x8x4xbf16>
    %130 = vector.shape_cast %129 : vector<2x8x4xbf16> to vector<16x4xbf16>
    %c14 = arith.constant 14 : index
    %c0_114 = arith.constant 0 : index
    %c0_115 = arith.constant 0 : index
    %131 = vector.load %arg3[%c14, %c0_114, %c0_115] : memref<25x4x32xbf16, #tpu.memory_space<vmem>>, vector<1x4x32xbf16>
    %132 = vector.shape_cast %131 : vector<1x4x32xbf16> to vector<4x32xbf16>
    %cst_116 = arith.constant dense<0.000000e+00> : vector<16x32xf32>
    %133 = tpu.matmul %130, %132, %cst_116 {dimension_numbers = #tpu.dot_dimension_numbers<[1], [0], [0], [1], [0, 0, 1, 1], [], []>} : vector<16x4xbf16>, vector<4x32xbf16>, vector<16x32xf32> -> vector<16x32xf32>
    %134 = arith.addf %125, %133 : vector<16x32xf32>
    %c1_i32_117 = arith.constant 1 : i32
    %135 = arith.addi %0, %c1_i32_117 : i32
    %c0_118 = arith.constant 0 : index
    %c2_119 = arith.constant 2 : index
    %136 = arith.index_cast %135 : i32 to index
    %c0_120 = arith.constant 0 : index
    %c0_121 = arith.constant 0 : index
    %137 = vector.load %arg2[%c0_118, %c2_119, %136, %c0_120, %c0_121] : memref<1x4x10x10x4xbf16, #tpu.memory_space<vmem>>, vector<1x1x2x8x4xbf16>
    %138 = vector.shape_cast %137 : vector<1x1x2x8x4xbf16> to vector<2x8x4xbf16>
    %139 = vector.shape_cast %138 : vector<2x8x4xbf16> to vector<16x4xbf16>
    %c15 = arith.constant 15 : index
    %c0_122 = arith.constant 0 : index
    %c0_123 = arith.constant 0 : index
    %140 = vector.load %arg3[%c15, %c0_122, %c0_123] : memref<25x4x32xbf16, #tpu.memory_space<vmem>>, vector<1x4x32xbf16>
    %141 = vector.shape_cast %140 : vector<1x4x32xbf16> to vector<4x32xbf16>
    %cst_124 = arith.constant dense<0.000000e+00> : vector<16x32xf32>
    %142 = tpu.matmul %139, %141, %cst_124 {dimension_numbers = #tpu.dot_dimension_numbers<[1], [0], [0], [1], [0, 0, 1, 1], [], []>} : vector<16x4xbf16>, vector<4x32xbf16>, vector<16x32xf32> -> vector<16x32xf32>
    %143 = arith.addf %134, %142 : vector<16x32xf32>
    %c1_i32_125 = arith.constant 1 : i32
    %144 = arith.addi %0, %c1_i32_125 : i32
    %c0_126 = arith.constant 0 : index
    %c3_127 = arith.constant 3 : index
    %145 = arith.index_cast %144 : i32 to index
    %c0_128 = arith.constant 0 : index
    %c0_129 = arith.constant 0 : index
    %146 = vector.load %arg2[%c0_126, %c3_127, %145, %c0_128, %c0_129] : memref<1x4x10x10x4xbf16, #tpu.memory_space<vmem>>, vector<1x1x2x8x4xbf16>
    %147 = vector.shape_cast %146 : vector<1x1x2x8x4xbf16> to vector<2x8x4xbf16>
    %148 = vector.shape_cast %147 : vector<2x8x4xbf16> to vector<16x4xbf16>
    %c16 = arith.constant 16 : index
    %c0_130 = arith.constant 0 : index
    %c0_131 = arith.constant 0 : index
    %149 = vector.load %arg3[%c16, %c0_130, %c0_131] : memref<25x4x32xbf16, #tpu.memory_space<vmem>>, vector<1x4x32xbf16>
    %150 = vector.shape_cast %149 : vector<1x4x32xbf16> to vector<4x32xbf16>
    %cst_132 = arith.constant dense<0.000000e+00> : vector<16x32xf32>
    %151 = tpu.matmul %148, %150, %cst_132 {dimension_numbers = #tpu.dot_dimension_numbers<[1], [0], [0], [1], [0, 0, 1, 1], [], []>} : vector<16x4xbf16>, vector<4x32xbf16>, vector<16x32xf32> -> vector<16x32xf32>
    %152 = arith.addf %143, %151 : vector<16x32xf32>
    %c1_i32_133 = arith.constant 1 : i32
    %153 = arith.addi %0, %c1_i32_133 : i32
    %c0_134 = arith.constant 0 : index
    %c2_135 = arith.constant 2 : index
    %154 = arith.index_cast %153 : i32 to index
    %c1_136 = arith.constant 1 : index
    %c0_137 = arith.constant 0 : index
    %155 = vector.load %arg2[%c0_134, %c2_135, %154, %c1_136, %c0_137] : memref<1x4x10x10x4xbf16, #tpu.memory_space<vmem>>, vector<1x1x2x8x4xbf16>
    %156 = vector.shape_cast %155 : vector<1x1x2x8x4xbf16> to vector<2x8x4xbf16>
    %157 = vector.shape_cast %156 : vector<2x8x4xbf16> to vector<16x4xbf16>
    %c17 = arith.constant 17 : index
    %c0_138 = arith.constant 0 : index
    %c0_139 = arith.constant 0 : index
    %158 = vector.load %arg3[%c17, %c0_138, %c0_139] : memref<25x4x32xbf16, #tpu.memory_space<vmem>>, vector<1x4x32xbf16>
    %159 = vector.shape_cast %158 : vector<1x4x32xbf16> to vector<4x32xbf16>
    %cst_140 = arith.constant dense<0.000000e+00> : vector<16x32xf32>
    %160 = tpu.matmul %157, %159, %cst_140 {dimension_numbers = #tpu.dot_dimension_numbers<[1], [0], [0], [1], [0, 0, 1, 1], [], []>} : vector<16x4xbf16>, vector<4x32xbf16>, vector<16x32xf32> -> vector<16x32xf32>
    %161 = arith.addf %152, %160 : vector<16x32xf32>
    %c1_i32_141 = arith.constant 1 : i32
    %162 = arith.addi %0, %c1_i32_141 : i32
    %c0_142 = arith.constant 0 : index
    %c3_143 = arith.constant 3 : index
    %163 = arith.index_cast %162 : i32 to index
    %c1_144 = arith.constant 1 : index
    %c0_145 = arith.constant 0 : index
    %164 = vector.load %arg2[%c0_142, %c3_143, %163, %c1_144, %c0_145] : memref<1x4x10x10x4xbf16, #tpu.memory_space<vmem>>, vector<1x1x2x8x4xbf16>
    %165 = vector.shape_cast %164 : vector<1x1x2x8x4xbf16> to vector<2x8x4xbf16>
    %166 = vector.shape_cast %165 : vector<2x8x4xbf16> to vector<16x4xbf16>
    %c18 = arith.constant 18 : index
    %c0_146 = arith.constant 0 : index
    %c0_147 = arith.constant 0 : index
    %167 = vector.load %arg3[%c18, %c0_146, %c0_147] : memref<25x4x32xbf16, #tpu.memory_space<vmem>>, vector<1x4x32xbf16>
    %168 = vector.shape_cast %167 : vector<1x4x32xbf16> to vector<4x32xbf16>
    %cst_148 = arith.constant dense<0.000000e+00> : vector<16x32xf32>
    %169 = tpu.matmul %166, %168, %cst_148 {dimension_numbers = #tpu.dot_dimension_numbers<[1], [0], [0], [1], [0, 0, 1, 1], [], []>} : vector<16x4xbf16>, vector<4x32xbf16>, vector<16x32xf32> -> vector<16x32xf32>
    %170 = arith.addf %161, %169 : vector<16x32xf32>
    %c1_i32_149 = arith.constant 1 : i32
    %171 = arith.addi %0, %c1_i32_149 : i32
    %c0_150 = arith.constant 0 : index
    %c2_151 = arith.constant 2 : index
    %172 = arith.index_cast %171 : i32 to index
    %c2_152 = arith.constant 2 : index
    %c0_153 = arith.constant 0 : index
    %173 = vector.load %arg2[%c0_150, %c2_151, %172, %c2_152, %c0_153] : memref<1x4x10x10x4xbf16, #tpu.memory_space<vmem>>, vector<1x1x2x8x4xbf16>
    %174 = vector.shape_cast %173 : vector<1x1x2x8x4xbf16> to vector<2x8x4xbf16>
    %175 = vector.shape_cast %174 : vector<2x8x4xbf16> to vector<16x4xbf16>
    %c19 = arith.constant 19 : index
    %c0_154 = arith.constant 0 : index
    %c0_155 = arith.constant 0 : index
    %176 = vector.load %arg3[%c19, %c0_154, %c0_155] : memref<25x4x32xbf16, #tpu.memory_space<vmem>>, vector<1x4x32xbf16>
    %177 = vector.shape_cast %176 : vector<1x4x32xbf16> to vector<4x32xbf16>
    %cst_156 = arith.constant dense<0.000000e+00> : vector<16x32xf32>
    %178 = tpu.matmul %175, %177, %cst_156 {dimension_numbers = #tpu.dot_dimension_numbers<[1], [0], [0], [1], [0, 0, 1, 1], [], []>} : vector<16x4xbf16>, vector<4x32xbf16>, vector<16x32xf32> -> vector<16x32xf32>
    %179 = arith.addf %170, %178 : vector<16x32xf32>
    %c2_i32_157 = arith.constant 2 : i32
    %180 = arith.addi %0, %c2_i32_157 : i32
    %c0_158 = arith.constant 0 : index
    %c0_159 = arith.constant 0 : index
    %181 = arith.index_cast %180 : i32 to index
    %c0_160 = arith.constant 0 : index
    %c0_161 = arith.constant 0 : index
    %182 = vector.load %arg2[%c0_158, %c0_159, %181, %c0_160, %c0_161] : memref<1x4x10x10x4xbf16, #tpu.memory_space<vmem>>, vector<1x1x2x8x4xbf16>
    %183 = vector.shape_cast %182 : vector<1x1x2x8x4xbf16> to vector<2x8x4xbf16>
    %184 = vector.shape_cast %183 : vector<2x8x4xbf16> to vector<16x4xbf16>
    %c20 = arith.constant 20 : index
    %c0_162 = arith.constant 0 : index
    %c0_163 = arith.constant 0 : index
    %185 = vector.load %arg3[%c20, %c0_162, %c0_163] : memref<25x4x32xbf16, #tpu.memory_space<vmem>>, vector<1x4x32xbf16>
    %186 = vector.shape_cast %185 : vector<1x4x32xbf16> to vector<4x32xbf16>
    %cst_164 = arith.constant dense<0.000000e+00> : vector<16x32xf32>
    %187 = tpu.matmul %184, %186, %cst_164 {dimension_numbers = #tpu.dot_dimension_numbers<[1], [0], [0], [1], [0, 0, 1, 1], [], []>} : vector<16x4xbf16>, vector<4x32xbf16>, vector<16x32xf32> -> vector<16x32xf32>
    %188 = arith.addf %179, %187 : vector<16x32xf32>
    %c2_i32_165 = arith.constant 2 : i32
    %189 = arith.addi %0, %c2_i32_165 : i32
    %c0_166 = arith.constant 0 : index
    %c1_167 = arith.constant 1 : index
    %190 = arith.index_cast %189 : i32 to index
    %c0_168 = arith.constant 0 : index
    %c0_169 = arith.constant 0 : index
    %191 = vector.load %arg2[%c0_166, %c1_167, %190, %c0_168, %c0_169] : memref<1x4x10x10x4xbf16, #tpu.memory_space<vmem>>, vector<1x1x2x8x4xbf16>
    %192 = vector.shape_cast %191 : vector<1x1x2x8x4xbf16> to vector<2x8x4xbf16>
    %193 = vector.shape_cast %192 : vector<2x8x4xbf16> to vector<16x4xbf16>
    %c21 = arith.constant 21 : index
    %c0_170 = arith.constant 0 : index
    %c0_171 = arith.constant 0 : index
    %194 = vector.load %arg3[%c21, %c0_170, %c0_171] : memref<25x4x32xbf16, #tpu.memory_space<vmem>>, vector<1x4x32xbf16>
    %195 = vector.shape_cast %194 : vector<1x4x32xbf16> to vector<4x32xbf16>
    %cst_172 = arith.constant dense<0.000000e+00> : vector<16x32xf32>
    %196 = tpu.matmul %193, %195, %cst_172 {dimension_numbers = #tpu.dot_dimension_numbers<[1], [0], [0], [1], [0, 0, 1, 1], [], []>} : vector<16x4xbf16>, vector<4x32xbf16>, vector<16x32xf32> -> vector<16x32xf32>
    %197 = arith.addf %188, %196 : vector<16x32xf32>
    %c2_i32_173 = arith.constant 2 : i32
    %198 = arith.addi %0, %c2_i32_173 : i32
    %c0_174 = arith.constant 0 : index
    %c0_175 = arith.constant 0 : index
    %199 = arith.index_cast %198 : i32 to index
    %c1_176 = arith.constant 1 : index
    %c0_177 = arith.constant 0 : index
    %200 = vector.load %arg2[%c0_174, %c0_175, %199, %c1_176, %c0_177] : memref<1x4x10x10x4xbf16, #tpu.memory_space<vmem>>, vector<1x1x2x8x4xbf16>
    %201 = vector.shape_cast %200 : vector<1x1x2x8x4xbf16> to vector<2x8x4xbf16>
    %202 = vector.shape_cast %201 : vector<2x8x4xbf16> to vector<16x4xbf16>
    %c22 = arith.constant 22 : index
    %c0_178 = arith.constant 0 : index
    %c0_179 = arith.constant 0 : index
    %203 = vector.load %arg3[%c22, %c0_178, %c0_179] : memref<25x4x32xbf16, #tpu.memory_space<vmem>>, vector<1x4x32xbf16>
    %204 = vector.shape_cast %203 : vector<1x4x32xbf16> to vector<4x32xbf16>
    %cst_180 = arith.constant dense<0.000000e+00> : vector<16x32xf32>
    %205 = tpu.matmul %202, %204, %cst_180 {dimension_numbers = #tpu.dot_dimension_numbers<[1], [0], [0], [1], [0, 0, 1, 1], [], []>} : vector<16x4xbf16>, vector<4x32xbf16>, vector<16x32xf32> -> vector<16x32xf32>
    %206 = arith.addf %197, %205 : vector<16x32xf32>
    %c2_i32_181 = arith.constant 2 : i32
    %207 = arith.addi %0, %c2_i32_181 : i32
    %c0_182 = arith.constant 0 : index
    %c1_183 = arith.constant 1 : index
    %208 = arith.index_cast %207 : i32 to index
    %c1_184 = arith.constant 1 : index
    %c0_185 = arith.constant 0 : index
    %209 = vector.load %arg2[%c0_182, %c1_183, %208, %c1_184, %c0_185] : memref<1x4x10x10x4xbf16, #tpu.memory_space<vmem>>, vector<1x1x2x8x4xbf16>
    %210 = vector.shape_cast %209 : vector<1x1x2x8x4xbf16> to vector<2x8x4xbf16>
    %211 = vector.shape_cast %210 : vector<2x8x4xbf16> to vector<16x4xbf16>
    %c23 = arith.constant 23 : index
    %c0_186 = arith.constant 0 : index
    %c0_187 = arith.constant 0 : index
    %212 = vector.load %arg3[%c23, %c0_186, %c0_187] : memref<25x4x32xbf16, #tpu.memory_space<vmem>>, vector<1x4x32xbf16>
    %213 = vector.shape_cast %212 : vector<1x4x32xbf16> to vector<4x32xbf16>
    %cst_188 = arith.constant dense<0.000000e+00> : vector<16x32xf32>
    %214 = tpu.matmul %211, %213, %cst_188 {dimension_numbers = #tpu.dot_dimension_numbers<[1], [0], [0], [1], [0, 0, 1, 1], [], []>} : vector<16x4xbf16>, vector<4x32xbf16>, vector<16x32xf32> -> vector<16x32xf32>
    %215 = arith.addf %206, %214 : vector<16x32xf32>
    %c2_i32_189 = arith.constant 2 : i32
    %216 = arith.addi %0, %c2_i32_189 : i32
    %c0_190 = arith.constant 0 : index
    %c0_191 = arith.constant 0 : index
    %217 = arith.index_cast %216 : i32 to index
    %c2_192 = arith.constant 2 : index
    %c0_193 = arith.constant 0 : index
    %218 = vector.load %arg2[%c0_190, %c0_191, %217, %c2_192, %c0_193] : memref<1x4x10x10x4xbf16, #tpu.memory_space<vmem>>, vector<1x1x2x8x4xbf16>
    %219 = vector.shape_cast %218 : vector<1x1x2x8x4xbf16> to vector<2x8x4xbf16>
    %220 = vector.shape_cast %219 : vector<2x8x4xbf16> to vector<16x4xbf16>
    %c24 = arith.constant 24 : index
    %c0_194 = arith.constant 0 : index
    %c0_195 = arith.constant 0 : index
    %221 = vector.load %arg3[%c24, %c0_194, %c0_195] : memref<25x4x32xbf16, #tpu.memory_space<vmem>>, vector<1x4x32xbf16>
    %222 = vector.shape_cast %221 : vector<1x4x32xbf16> to vector<4x32xbf16>
    %cst_196 = arith.constant dense<0.000000e+00> : vector<16x32xf32>
    %223 = tpu.matmul %220, %222, %cst_196 {dimension_numbers = #tpu.dot_dimension_numbers<[1], [0], [0], [1], [0, 0, 1, 1], [], []>} : vector<16x4xbf16>, vector<4x32xbf16>, vector<16x32xf32> -> vector<16x32xf32>
    %224 = arith.addf %215, %223 : vector<16x32xf32>
    %c0_197 = arith.constant 0 : index
    %c0_198 = arith.constant 0 : index
    %225 = vector.load %arg4[%c0_197, %c0_198] : memref<1x32xf32, #tpu.memory_space<vmem>>, vector<1x32xf32>
    %226 = vector.broadcast %225 : vector<1x32xf32> to vector<16x32xf32>
    %227 = arith.addf %224, %226 : vector<16x32xf32>
    %cst_199 = arith.constant 0.000000e+00 : f32
    %228 = vector.broadcast %cst_199 : f32 to vector<16x32xf32>
    %229 = arith.maximumf %227, %228 : vector<16x32xf32>
    %230 = vector.shape_cast %229 : vector<16x32xf32> to vector<2x8x32xf32>
    %231 = arith.truncf %230 : vector<2x8x32xf32> to vector<2x8x32xbf16>
    %c0_200 = arith.constant 0 : index
    %c0_201 = arith.constant 0 : index
    %c0_202 = arith.constant 0 : index
    %c0_203 = arith.constant 0 : index
    %232 = vector.load %arg5[%c0_200, %c0_201, %c0_202, %c0_203] : memref<1x2x8x32xbf16, #tpu.memory_space<vmem>>, vector<1x2x8x32xbf16>
    %233 = vector.shape_cast %232 : vector<1x2x8x32xbf16> to vector<2x8x32xbf16>
    %234 = vector.shape_cast %231 : vector<2x8x32xbf16> to vector<1x2x8x32xbf16>
    tpu.vector_store %arg5[%c0_200, %c0_201, %c0_202, %c0_203], %234 {strides = array<i32>} : memref<1x2x8x32xbf16, #tpu.memory_space<vmem>>, vector<1x2x8x32xbf16>,
    return
  }
  func.func @transform_0(%arg0: i32, %arg1: i32) -> (i32, i32, i32, i32, i32) {
    %c0_i32 = arith.constant 0 : i32
    %c0_i32_0 = arith.constant 0 : i32
    %c0_i32_1 = arith.constant 0 : i32
    %c0_i32_2 = arith.constant 0 : i32
    %c0_i32_3 = arith.constant 0 : i32
    return %arg0, %c0_i32, %c0_i32_0, %c0_i32_1, %c0_i32_2 : i32, i32, i32, i32, i32
  }
  func.func @transform_1(%arg0: i32, %arg1: i32) -> (i32, i32, i32) {
    %c0_i32 = arith.constant 0 : i32
    %c0_i32_0 = arith.constant 0 : i32
    %c0_i32_1 = arith.constant 0 : i32
    %c0_i32_2 = arith.constant 0 : i32
    return %c0_i32, %c0_i32_0, %c0_i32_1 : i32, i32, i32
  }
  func.func @transform_2(%arg0: i32, %arg1: i32) -> (i32, i32) {
    %c0_i32 = arith.constant 0 : i32
    %c0_i32_0 = arith.constant 0 : i32
    %c0_i32_1 = arith.constant 0 : i32
    return %c0_i32, %c0_i32_0 : i32, i32
  }
  func.func @transform_3(%arg0: i32, %arg1: i32) -> (i32, i32, i32, i32) {
    %c0_i32 = arith.constant 0 : i32
    %c0_i32_0 = arith.constant 0 : i32
    %c0_i32_1 = arith.constant 0 : i32
    return %arg0, %arg1, %c0_i32, %c0_i32_0 : i32, i32, i32, i32
  }
}

module attributes {stable_mosaic.version = 11 : i64} {
  func.func @kernel(%arg0: i32, %arg1: i32, %arg2: memref<1x4x6x6x32xbf16, #tpu.memory_space<vmem>>, %arg3: memref<25x32x32xbf16, #tpu.memory_space<vmem>>, %arg4: memref<1x32xf32, #tpu.memory_space<vmem>>, %arg5: memref<1x1x4x32xbf16, #tpu.memory_space<vmem>>) attributes {dimension_semantics = [#tpu.dimension_semantics<parallel>, #tpu.dimension_semantics<parallel>], iteration_bounds = array<i64: 2, 4>, scalar_prefetch = 0 : i64, scratch_operands = 0 : i64, tpu.core_type = #tpu.core_type<tc>, window_params = [{transform_indices = @transform_0, window_bounds = array<i64: 1, 4, 6, 6, 32>}, {pipeline_mode = #tpu.pipeline_mode<synchronous>, transform_indices = @transform_1, window_bounds = array<i64: 25, 32, 32>}, {pipeline_mode = #tpu.pipeline_mode<synchronous>, transform_indices = @transform_2, window_bounds = array<i64: 1, 32>}, {transform_indices = @transform_3, window_bounds = array<i64: 1, 1, 4, 32>}]} {
    %c1_i32 = arith.constant 1 : i32
    %0 = arith.muli %arg1, %c1_i32 : i32
    %c0_i32 = arith.constant 0 : i32
    %1 = arith.addi %0, %c0_i32 : i32
    %c0 = arith.constant 0 : index
    %c0_0 = arith.constant 0 : index
    %2 = arith.index_cast %1 : i32 to index
    %c0_1 = arith.constant 0 : index
    %c0_2 = arith.constant 0 : index
    %3 = vector.load %arg2[%c0, %c0_0, %2, %c0_1, %c0_2] : memref<1x4x6x6x32xbf16, #tpu.memory_space<vmem>>, vector<1x1x1x4x32xbf16>
    %4 = vector.shape_cast %3 : vector<1x1x1x4x32xbf16> to vector<1x4x32xbf16>
    %5 = vector.shape_cast %4 : vector<1x4x32xbf16> to vector<4x32xbf16>
    %c0_3 = arith.constant 0 : index
    %c0_4 = arith.constant 0 : index
    %c0_5 = arith.constant 0 : index
    %6 = vector.load %arg3[%c0_3, %c0_4, %c0_5] : memref<25x32x32xbf16, #tpu.memory_space<vmem>>, vector<1x32x32xbf16>
    %7 = vector.shape_cast %6 : vector<1x32x32xbf16> to vector<32x32xbf16>
    %cst = arith.constant dense<0.000000e+00> : vector<4x32xf32>
    %8 = tpu.matmul %5, %7, %cst {dimension_numbers = #tpu.dot_dimension_numbers<[1], [0], [0], [1], [0, 0, 1, 1], [], []>} : vector<4x32xbf16>, vector<32x32xbf16>, vector<4x32xf32> -> vector<4x32xf32>
    %c0_i32_6 = arith.constant 0 : i32
    %9 = arith.addi %0, %c0_i32_6 : i32
    %c0_7 = arith.constant 0 : index
    %c1 = arith.constant 1 : index
    %10 = arith.index_cast %9 : i32 to index
    %c0_8 = arith.constant 0 : index
    %c0_9 = arith.constant 0 : index
    %11 = vector.load %arg2[%c0_7, %c1, %10, %c0_8, %c0_9] : memref<1x4x6x6x32xbf16, #tpu.memory_space<vmem>>, vector<1x1x1x4x32xbf16>
    %12 = vector.shape_cast %11 : vector<1x1x1x4x32xbf16> to vector<1x4x32xbf16>
    %13 = vector.shape_cast %12 : vector<1x4x32xbf16> to vector<4x32xbf16>
    %c1_10 = arith.constant 1 : index
    %c0_11 = arith.constant 0 : index
    %c0_12 = arith.constant 0 : index
    %14 = vector.load %arg3[%c1_10, %c0_11, %c0_12] : memref<25x32x32xbf16, #tpu.memory_space<vmem>>, vector<1x32x32xbf16>
    %15 = vector.shape_cast %14 : vector<1x32x32xbf16> to vector<32x32xbf16>
    %cst_13 = arith.constant dense<0.000000e+00> : vector<4x32xf32>
    %16 = tpu.matmul %13, %15, %cst_13 {dimension_numbers = #tpu.dot_dimension_numbers<[1], [0], [0], [1], [0, 0, 1, 1], [], []>} : vector<4x32xbf16>, vector<32x32xbf16>, vector<4x32xf32> -> vector<4x32xf32>
    %17 = arith.addf %8, %16 : vector<4x32xf32>
    %c0_i32_14 = arith.constant 0 : i32
    %18 = arith.addi %0, %c0_i32_14 : i32
    %c0_15 = arith.constant 0 : index
    %c0_16 = arith.constant 0 : index
    %19 = arith.index_cast %18 : i32 to index
    %c1_17 = arith.constant 1 : index
    %c0_18 = arith.constant 0 : index
    %20 = vector.load %arg2[%c0_15, %c0_16, %19, %c1_17, %c0_18] : memref<1x4x6x6x32xbf16, #tpu.memory_space<vmem>>, vector<1x1x1x4x32xbf16>
    %21 = vector.shape_cast %20 : vector<1x1x1x4x32xbf16> to vector<1x4x32xbf16>
    %22 = vector.shape_cast %21 : vector<1x4x32xbf16> to vector<4x32xbf16>
    %c2 = arith.constant 2 : index
    %c0_19 = arith.constant 0 : index
    %c0_20 = arith.constant 0 : index
    %23 = vector.load %arg3[%c2, %c0_19, %c0_20] : memref<25x32x32xbf16, #tpu.memory_space<vmem>>, vector<1x32x32xbf16>
    %24 = vector.shape_cast %23 : vector<1x32x32xbf16> to vector<32x32xbf16>
    %cst_21 = arith.constant dense<0.000000e+00> : vector<4x32xf32>
    %25 = tpu.matmul %22, %24, %cst_21 {dimension_numbers = #tpu.dot_dimension_numbers<[1], [0], [0], [1], [0, 0, 1, 1], [], []>} : vector<4x32xbf16>, vector<32x32xbf16>, vector<4x32xf32> -> vector<4x32xf32>
    %26 = arith.addf %17, %25 : vector<4x32xf32>
    %c0_i32_22 = arith.constant 0 : i32
    %27 = arith.addi %0, %c0_i32_22 : i32
    %c0_23 = arith.constant 0 : index
    %c1_24 = arith.constant 1 : index
    %28 = arith.index_cast %27 : i32 to index
    %c1_25 = arith.constant 1 : index
    %c0_26 = arith.constant 0 : index
    %29 = vector.load %arg2[%c0_23, %c1_24, %28, %c1_25, %c0_26] : memref<1x4x6x6x32xbf16, #tpu.memory_space<vmem>>, vector<1x1x1x4x32xbf16>
    %30 = vector.shape_cast %29 : vector<1x1x1x4x32xbf16> to vector<1x4x32xbf16>
    %31 = vector.shape_cast %30 : vector<1x4x32xbf16> to vector<4x32xbf16>
    %c3 = arith.constant 3 : index
    %c0_27 = arith.constant 0 : index
    %c0_28 = arith.constant 0 : index
    %32 = vector.load %arg3[%c3, %c0_27, %c0_28] : memref<25x32x32xbf16, #tpu.memory_space<vmem>>, vector<1x32x32xbf16>
    %33 = vector.shape_cast %32 : vector<1x32x32xbf16> to vector<32x32xbf16>
    %cst_29 = arith.constant dense<0.000000e+00> : vector<4x32xf32>
    %34 = tpu.matmul %31, %33, %cst_29 {dimension_numbers = #tpu.dot_dimension_numbers<[1], [0], [0], [1], [0, 0, 1, 1], [], []>} : vector<4x32xbf16>, vector<32x32xbf16>, vector<4x32xf32> -> vector<4x32xf32>
    %35 = arith.addf %26, %34 : vector<4x32xf32>
    %c0_i32_30 = arith.constant 0 : i32
    %36 = arith.addi %0, %c0_i32_30 : i32
    %c0_31 = arith.constant 0 : index
    %c0_32 = arith.constant 0 : index
    %37 = arith.index_cast %36 : i32 to index
    %c2_33 = arith.constant 2 : index
    %c0_34 = arith.constant 0 : index
    %38 = vector.load %arg2[%c0_31, %c0_32, %37, %c2_33, %c0_34] : memref<1x4x6x6x32xbf16, #tpu.memory_space<vmem>>, vector<1x1x1x4x32xbf16>
    %39 = vector.shape_cast %38 : vector<1x1x1x4x32xbf16> to vector<1x4x32xbf16>
    %40 = vector.shape_cast %39 : vector<1x4x32xbf16> to vector<4x32xbf16>
    %c4 = arith.constant 4 : index
    %c0_35 = arith.constant 0 : index
    %c0_36 = arith.constant 0 : index
    %41 = vector.load %arg3[%c4, %c0_35, %c0_36] : memref<25x32x32xbf16, #tpu.memory_space<vmem>>, vector<1x32x32xbf16>
    %42 = vector.shape_cast %41 : vector<1x32x32xbf16> to vector<32x32xbf16>
    %cst_37 = arith.constant dense<0.000000e+00> : vector<4x32xf32>
    %43 = tpu.matmul %40, %42, %cst_37 {dimension_numbers = #tpu.dot_dimension_numbers<[1], [0], [0], [1], [0, 0, 1, 1], [], []>} : vector<4x32xbf16>, vector<32x32xbf16>, vector<4x32xf32> -> vector<4x32xf32>
    %44 = arith.addf %35, %43 : vector<4x32xf32>
    %c0_i32_38 = arith.constant 0 : i32
    %45 = arith.addi %0, %c0_i32_38 : i32
    %c0_39 = arith.constant 0 : index
    %c2_40 = arith.constant 2 : index
    %46 = arith.index_cast %45 : i32 to index
    %c0_41 = arith.constant 0 : index
    %c0_42 = arith.constant 0 : index
    %47 = vector.load %arg2[%c0_39, %c2_40, %46, %c0_41, %c0_42] : memref<1x4x6x6x32xbf16, #tpu.memory_space<vmem>>, vector<1x1x1x4x32xbf16>
    %48 = vector.shape_cast %47 : vector<1x1x1x4x32xbf16> to vector<1x4x32xbf16>
    %49 = vector.shape_cast %48 : vector<1x4x32xbf16> to vector<4x32xbf16>
    %c5 = arith.constant 5 : index
    %c0_43 = arith.constant 0 : index
    %c0_44 = arith.constant 0 : index
    %50 = vector.load %arg3[%c5, %c0_43, %c0_44] : memref<25x32x32xbf16, #tpu.memory_space<vmem>>, vector<1x32x32xbf16>
    %51 = vector.shape_cast %50 : vector<1x32x32xbf16> to vector<32x32xbf16>
    %cst_45 = arith.constant dense<0.000000e+00> : vector<4x32xf32>
    %52 = tpu.matmul %49, %51, %cst_45 {dimension_numbers = #tpu.dot_dimension_numbers<[1], [0], [0], [1], [0, 0, 1, 1], [], []>} : vector<4x32xbf16>, vector<32x32xbf16>, vector<4x32xf32> -> vector<4x32xf32>
    %53 = arith.addf %44, %52 : vector<4x32xf32>
    %c0_i32_46 = arith.constant 0 : i32
    %54 = arith.addi %0, %c0_i32_46 : i32
    %c0_47 = arith.constant 0 : index
    %c3_48 = arith.constant 3 : index
    %55 = arith.index_cast %54 : i32 to index
    %c0_49 = arith.constant 0 : index
    %c0_50 = arith.constant 0 : index
    %56 = vector.load %arg2[%c0_47, %c3_48, %55, %c0_49, %c0_50] : memref<1x4x6x6x32xbf16, #tpu.memory_space<vmem>>, vector<1x1x1x4x32xbf16>
    %57 = vector.shape_cast %56 : vector<1x1x1x4x32xbf16> to vector<1x4x32xbf16>
    %58 = vector.shape_cast %57 : vector<1x4x32xbf16> to vector<4x32xbf16>
    %c6 = arith.constant 6 : index
    %c0_51 = arith.constant 0 : index
    %c0_52 = arith.constant 0 : index
    %59 = vector.load %arg3[%c6, %c0_51, %c0_52] : memref<25x32x32xbf16, #tpu.memory_space<vmem>>, vector<1x32x32xbf16>
    %60 = vector.shape_cast %59 : vector<1x32x32xbf16> to vector<32x32xbf16>
    %cst_53 = arith.constant dense<0.000000e+00> : vector<4x32xf32>
    %61 = tpu.matmul %58, %60, %cst_53 {dimension_numbers = #tpu.dot_dimension_numbers<[1], [0], [0], [1], [0, 0, 1, 1], [], []>} : vector<4x32xbf16>, vector<32x32xbf16>, vector<4x32xf32> -> vector<4x32xf32>
    %62 = arith.addf %53, %61 : vector<4x32xf32>
    %c0_i32_54 = arith.constant 0 : i32
    %63 = arith.addi %0, %c0_i32_54 : i32
    %c0_55 = arith.constant 0 : index
    %c2_56 = arith.constant 2 : index
    %64 = arith.index_cast %63 : i32 to index
    %c1_57 = arith.constant 1 : index
    %c0_58 = arith.constant 0 : index
    %65 = vector.load %arg2[%c0_55, %c2_56, %64, %c1_57, %c0_58] : memref<1x4x6x6x32xbf16, #tpu.memory_space<vmem>>, vector<1x1x1x4x32xbf16>
    %66 = vector.shape_cast %65 : vector<1x1x1x4x32xbf16> to vector<1x4x32xbf16>
    %67 = vector.shape_cast %66 : vector<1x4x32xbf16> to vector<4x32xbf16>
    %c7 = arith.constant 7 : index
    %c0_59 = arith.constant 0 : index
    %c0_60 = arith.constant 0 : index
    %68 = vector.load %arg3[%c7, %c0_59, %c0_60] : memref<25x32x32xbf16, #tpu.memory_space<vmem>>, vector<1x32x32xbf16>
    %69 = vector.shape_cast %68 : vector<1x32x32xbf16> to vector<32x32xbf16>
    %cst_61 = arith.constant dense<0.000000e+00> : vector<4x32xf32>
    %70 = tpu.matmul %67, %69, %cst_61 {dimension_numbers = #tpu.dot_dimension_numbers<[1], [0], [0], [1], [0, 0, 1, 1], [], []>} : vector<4x32xbf16>, vector<32x32xbf16>, vector<4x32xf32> -> vector<4x32xf32>
    %71 = arith.addf %62, %70 : vector<4x32xf32>
    %c0_i32_62 = arith.constant 0 : i32
    %72 = arith.addi %0, %c0_i32_62 : i32
    %c0_63 = arith.constant 0 : index
    %c3_64 = arith.constant 3 : index
    %73 = arith.index_cast %72 : i32 to index
    %c1_65 = arith.constant 1 : index
    %c0_66 = arith.constant 0 : index
    %74 = vector.load %arg2[%c0_63, %c3_64, %73, %c1_65, %c0_66] : memref<1x4x6x6x32xbf16, #tpu.memory_space<vmem>>, vector<1x1x1x4x32xbf16>
    %75 = vector.shape_cast %74 : vector<1x1x1x4x32xbf16> to vector<1x4x32xbf16>
    %76 = vector.shape_cast %75 : vector<1x4x32xbf16> to vector<4x32xbf16>
    %c8 = arith.constant 8 : index
    %c0_67 = arith.constant 0 : index
    %c0_68 = arith.constant 0 : index
    %77 = vector.load %arg3[%c8, %c0_67, %c0_68] : memref<25x32x32xbf16, #tpu.memory_space<vmem>>, vector<1x32x32xbf16>
    %78 = vector.shape_cast %77 : vector<1x32x32xbf16> to vector<32x32xbf16>
    %cst_69 = arith.constant dense<0.000000e+00> : vector<4x32xf32>
    %79 = tpu.matmul %76, %78, %cst_69 {dimension_numbers = #tpu.dot_dimension_numbers<[1], [0], [0], [1], [0, 0, 1, 1], [], []>} : vector<4x32xbf16>, vector<32x32xbf16>, vector<4x32xf32> -> vector<4x32xf32>
    %80 = arith.addf %71, %79 : vector<4x32xf32>
    %c0_i32_70 = arith.constant 0 : i32
    %81 = arith.addi %0, %c0_i32_70 : i32
    %c0_71 = arith.constant 0 : index
    %c2_72 = arith.constant 2 : index
    %82 = arith.index_cast %81 : i32 to index
    %c2_73 = arith.constant 2 : index
    %c0_74 = arith.constant 0 : index
    %83 = vector.load %arg2[%c0_71, %c2_72, %82, %c2_73, %c0_74] : memref<1x4x6x6x32xbf16, #tpu.memory_space<vmem>>, vector<1x1x1x4x32xbf16>
    %84 = vector.shape_cast %83 : vector<1x1x1x4x32xbf16> to vector<1x4x32xbf16>
    %85 = vector.shape_cast %84 : vector<1x4x32xbf16> to vector<4x32xbf16>
    %c9 = arith.constant 9 : index
    %c0_75 = arith.constant 0 : index
    %c0_76 = arith.constant 0 : index
    %86 = vector.load %arg3[%c9, %c0_75, %c0_76] : memref<25x32x32xbf16, #tpu.memory_space<vmem>>, vector<1x32x32xbf16>
    %87 = vector.shape_cast %86 : vector<1x32x32xbf16> to vector<32x32xbf16>
    %cst_77 = arith.constant dense<0.000000e+00> : vector<4x32xf32>
    %88 = tpu.matmul %85, %87, %cst_77 {dimension_numbers = #tpu.dot_dimension_numbers<[1], [0], [0], [1], [0, 0, 1, 1], [], []>} : vector<4x32xbf16>, vector<32x32xbf16>, vector<4x32xf32> -> vector<4x32xf32>
    %89 = arith.addf %80, %88 : vector<4x32xf32>
    %c1_i32_78 = arith.constant 1 : i32
    %90 = arith.addi %0, %c1_i32_78 : i32
    %c0_79 = arith.constant 0 : index
    %c0_80 = arith.constant 0 : index
    %91 = arith.index_cast %90 : i32 to index
    %c0_81 = arith.constant 0 : index
    %c0_82 = arith.constant 0 : index
    %92 = vector.load %arg2[%c0_79, %c0_80, %91, %c0_81, %c0_82] : memref<1x4x6x6x32xbf16, #tpu.memory_space<vmem>>, vector<1x1x1x4x32xbf16>
    %93 = vector.shape_cast %92 : vector<1x1x1x4x32xbf16> to vector<1x4x32xbf16>
    %94 = vector.shape_cast %93 : vector<1x4x32xbf16> to vector<4x32xbf16>
    %c10 = arith.constant 10 : index
    %c0_83 = arith.constant 0 : index
    %c0_84 = arith.constant 0 : index
    %95 = vector.load %arg3[%c10, %c0_83, %c0_84] : memref<25x32x32xbf16, #tpu.memory_space<vmem>>, vector<1x32x32xbf16>
    %96 = vector.shape_cast %95 : vector<1x32x32xbf16> to vector<32x32xbf16>
    %cst_85 = arith.constant dense<0.000000e+00> : vector<4x32xf32>
    %97 = tpu.matmul %94, %96, %cst_85 {dimension_numbers = #tpu.dot_dimension_numbers<[1], [0], [0], [1], [0, 0, 1, 1], [], []>} : vector<4x32xbf16>, vector<32x32xbf16>, vector<4x32xf32> -> vector<4x32xf32>
    %98 = arith.addf %89, %97 : vector<4x32xf32>
    %c1_i32_86 = arith.constant 1 : i32
    %99 = arith.addi %0, %c1_i32_86 : i32
    %c0_87 = arith.constant 0 : index
    %c1_88 = arith.constant 1 : index
    %100 = arith.index_cast %99 : i32 to index
    %c0_89 = arith.constant 0 : index
    %c0_90 = arith.constant 0 : index
    %101 = vector.load %arg2[%c0_87, %c1_88, %100, %c0_89, %c0_90] : memref<1x4x6x6x32xbf16, #tpu.memory_space<vmem>>, vector<1x1x1x4x32xbf16>
    %102 = vector.shape_cast %101 : vector<1x1x1x4x32xbf16> to vector<1x4x32xbf16>
    %103 = vector.shape_cast %102 : vector<1x4x32xbf16> to vector<4x32xbf16>
    %c11 = arith.constant 11 : index
    %c0_91 = arith.constant 0 : index
    %c0_92 = arith.constant 0 : index
    %104 = vector.load %arg3[%c11, %c0_91, %c0_92] : memref<25x32x32xbf16, #tpu.memory_space<vmem>>, vector<1x32x32xbf16>
    %105 = vector.shape_cast %104 : vector<1x32x32xbf16> to vector<32x32xbf16>
    %cst_93 = arith.constant dense<0.000000e+00> : vector<4x32xf32>
    %106 = tpu.matmul %103, %105, %cst_93 {dimension_numbers = #tpu.dot_dimension_numbers<[1], [0], [0], [1], [0, 0, 1, 1], [], []>} : vector<4x32xbf16>, vector<32x32xbf16>, vector<4x32xf32> -> vector<4x32xf32>
    %107 = arith.addf %98, %106 : vector<4x32xf32>
    %c1_i32_94 = arith.constant 1 : i32
    %108 = arith.addi %0, %c1_i32_94 : i32
    %c0_95 = arith.constant 0 : index
    %c0_96 = arith.constant 0 : index
    %109 = arith.index_cast %108 : i32 to index
    %c1_97 = arith.constant 1 : index
    %c0_98 = arith.constant 0 : index
    %110 = vector.load %arg2[%c0_95, %c0_96, %109, %c1_97, %c0_98] : memref<1x4x6x6x32xbf16, #tpu.memory_space<vmem>>, vector<1x1x1x4x32xbf16>
    %111 = vector.shape_cast %110 : vector<1x1x1x4x32xbf16> to vector<1x4x32xbf16>
    %112 = vector.shape_cast %111 : vector<1x4x32xbf16> to vector<4x32xbf16>
    %c12 = arith.constant 12 : index
    %c0_99 = arith.constant 0 : index
    %c0_100 = arith.constant 0 : index
    %113 = vector.load %arg3[%c12, %c0_99, %c0_100] : memref<25x32x32xbf16, #tpu.memory_space<vmem>>, vector<1x32x32xbf16>
    %114 = vector.shape_cast %113 : vector<1x32x32xbf16> to vector<32x32xbf16>
    %cst_101 = arith.constant dense<0.000000e+00> : vector<4x32xf32>
    %115 = tpu.matmul %112, %114, %cst_101 {dimension_numbers = #tpu.dot_dimension_numbers<[1], [0], [0], [1], [0, 0, 1, 1], [], []>} : vector<4x32xbf16>, vector<32x32xbf16>, vector<4x32xf32> -> vector<4x32xf32>
    %116 = arith.addf %107, %115 : vector<4x32xf32>
    %c1_i32_102 = arith.constant 1 : i32
    %117 = arith.addi %0, %c1_i32_102 : i32
    %c0_103 = arith.constant 0 : index
    %c1_104 = arith.constant 1 : index
    %118 = arith.index_cast %117 : i32 to index
    %c1_105 = arith.constant 1 : index
    %c0_106 = arith.constant 0 : index
    %119 = vector.load %arg2[%c0_103, %c1_104, %118, %c1_105, %c0_106] : memref<1x4x6x6x32xbf16, #tpu.memory_space<vmem>>, vector<1x1x1x4x32xbf16>
    %120 = vector.shape_cast %119 : vector<1x1x1x4x32xbf16> to vector<1x4x32xbf16>
    %121 = vector.shape_cast %120 : vector<1x4x32xbf16> to vector<4x32xbf16>
    %c13 = arith.constant 13 : index
    %c0_107 = arith.constant 0 : index
    %c0_108 = arith.constant 0 : index
    %122 = vector.load %arg3[%c13, %c0_107, %c0_108] : memref<25x32x32xbf16, #tpu.memory_space<vmem>>, vector<1x32x32xbf16>
    %123 = vector.shape_cast %122 : vector<1x32x32xbf16> to vector<32x32xbf16>
    %cst_109 = arith.constant dense<0.000000e+00> : vector<4x32xf32>
    %124 = tpu.matmul %121, %123, %cst_109 {dimension_numbers = #tpu.dot_dimension_numbers<[1], [0], [0], [1], [0, 0, 1, 1], [], []>} : vector<4x32xbf16>, vector<32x32xbf16>, vector<4x32xf32> -> vector<4x32xf32>
    %125 = arith.addf %116, %124 : vector<4x32xf32>
    %c1_i32_110 = arith.constant 1 : i32
    %126 = arith.addi %0, %c1_i32_110 : i32
    %c0_111 = arith.constant 0 : index
    %c0_112 = arith.constant 0 : index
    %127 = arith.index_cast %126 : i32 to index
    %c2_113 = arith.constant 2 : index
    %c0_114 = arith.constant 0 : index
    %128 = vector.load %arg2[%c0_111, %c0_112, %127, %c2_113, %c0_114] : memref<1x4x6x6x32xbf16, #tpu.memory_space<vmem>>, vector<1x1x1x4x32xbf16>
    %129 = vector.shape_cast %128 : vector<1x1x1x4x32xbf16> to vector<1x4x32xbf16>
    %130 = vector.shape_cast %129 : vector<1x4x32xbf16> to vector<4x32xbf16>
    %c14 = arith.constant 14 : index
    %c0_115 = arith.constant 0 : index
    %c0_116 = arith.constant 0 : index
    %131 = vector.load %arg3[%c14, %c0_115, %c0_116] : memref<25x32x32xbf16, #tpu.memory_space<vmem>>, vector<1x32x32xbf16>
    %132 = vector.shape_cast %131 : vector<1x32x32xbf16> to vector<32x32xbf16>
    %cst_117 = arith.constant dense<0.000000e+00> : vector<4x32xf32>
    %133 = tpu.matmul %130, %132, %cst_117 {dimension_numbers = #tpu.dot_dimension_numbers<[1], [0], [0], [1], [0, 0, 1, 1], [], []>} : vector<4x32xbf16>, vector<32x32xbf16>, vector<4x32xf32> -> vector<4x32xf32>
    %134 = arith.addf %125, %133 : vector<4x32xf32>
    %c1_i32_118 = arith.constant 1 : i32
    %135 = arith.addi %0, %c1_i32_118 : i32
    %c0_119 = arith.constant 0 : index
    %c2_120 = arith.constant 2 : index
    %136 = arith.index_cast %135 : i32 to index
    %c0_121 = arith.constant 0 : index
    %c0_122 = arith.constant 0 : index
    %137 = vector.load %arg2[%c0_119, %c2_120, %136, %c0_121, %c0_122] : memref<1x4x6x6x32xbf16, #tpu.memory_space<vmem>>, vector<1x1x1x4x32xbf16>
    %138 = vector.shape_cast %137 : vector<1x1x1x4x32xbf16> to vector<1x4x32xbf16>
    %139 = vector.shape_cast %138 : vector<1x4x32xbf16> to vector<4x32xbf16>
    %c15 = arith.constant 15 : index
    %c0_123 = arith.constant 0 : index
    %c0_124 = arith.constant 0 : index
    %140 = vector.load %arg3[%c15, %c0_123, %c0_124] : memref<25x32x32xbf16, #tpu.memory_space<vmem>>, vector<1x32x32xbf16>
    %141 = vector.shape_cast %140 : vector<1x32x32xbf16> to vector<32x32xbf16>
    %cst_125 = arith.constant dense<0.000000e+00> : vector<4x32xf32>
    %142 = tpu.matmul %139, %141, %cst_125 {dimension_numbers = #tpu.dot_dimension_numbers<[1], [0], [0], [1], [0, 0, 1, 1], [], []>} : vector<4x32xbf16>, vector<32x32xbf16>, vector<4x32xf32> -> vector<4x32xf32>
    %143 = arith.addf %134, %142 : vector<4x32xf32>
    %c1_i32_126 = arith.constant 1 : i32
    %144 = arith.addi %0, %c1_i32_126 : i32
    %c0_127 = arith.constant 0 : index
    %c3_128 = arith.constant 3 : index
    %145 = arith.index_cast %144 : i32 to index
    %c0_129 = arith.constant 0 : index
    %c0_130 = arith.constant 0 : index
    %146 = vector.load %arg2[%c0_127, %c3_128, %145, %c0_129, %c0_130] : memref<1x4x6x6x32xbf16, #tpu.memory_space<vmem>>, vector<1x1x1x4x32xbf16>
    %147 = vector.shape_cast %146 : vector<1x1x1x4x32xbf16> to vector<1x4x32xbf16>
    %148 = vector.shape_cast %147 : vector<1x4x32xbf16> to vector<4x32xbf16>
    %c16 = arith.constant 16 : index
    %c0_131 = arith.constant 0 : index
    %c0_132 = arith.constant 0 : index
    %149 = vector.load %arg3[%c16, %c0_131, %c0_132] : memref<25x32x32xbf16, #tpu.memory_space<vmem>>, vector<1x32x32xbf16>
    %150 = vector.shape_cast %149 : vector<1x32x32xbf16> to vector<32x32xbf16>
    %cst_133 = arith.constant dense<0.000000e+00> : vector<4x32xf32>
    %151 = tpu.matmul %148, %150, %cst_133 {dimension_numbers = #tpu.dot_dimension_numbers<[1], [0], [0], [1], [0, 0, 1, 1], [], []>} : vector<4x32xbf16>, vector<32x32xbf16>, vector<4x32xf32> -> vector<4x32xf32>
    %152 = arith.addf %143, %151 : vector<4x32xf32>
    %c1_i32_134 = arith.constant 1 : i32
    %153 = arith.addi %0, %c1_i32_134 : i32
    %c0_135 = arith.constant 0 : index
    %c2_136 = arith.constant 2 : index
    %154 = arith.index_cast %153 : i32 to index
    %c1_137 = arith.constant 1 : index
    %c0_138 = arith.constant 0 : index
    %155 = vector.load %arg2[%c0_135, %c2_136, %154, %c1_137, %c0_138] : memref<1x4x6x6x32xbf16, #tpu.memory_space<vmem>>, vector<1x1x1x4x32xbf16>
    %156 = vector.shape_cast %155 : vector<1x1x1x4x32xbf16> to vector<1x4x32xbf16>
    %157 = vector.shape_cast %156 : vector<1x4x32xbf16> to vector<4x32xbf16>
    %c17 = arith.constant 17 : index
    %c0_139 = arith.constant 0 : index
    %c0_140 = arith.constant 0 : index
    %158 = vector.load %arg3[%c17, %c0_139, %c0_140] : memref<25x32x32xbf16, #tpu.memory_space<vmem>>, vector<1x32x32xbf16>
    %159 = vector.shape_cast %158 : vector<1x32x32xbf16> to vector<32x32xbf16>
    %cst_141 = arith.constant dense<0.000000e+00> : vector<4x32xf32>
    %160 = tpu.matmul %157, %159, %cst_141 {dimension_numbers = #tpu.dot_dimension_numbers<[1], [0], [0], [1], [0, 0, 1, 1], [], []>} : vector<4x32xbf16>, vector<32x32xbf16>, vector<4x32xf32> -> vector<4x32xf32>
    %161 = arith.addf %152, %160 : vector<4x32xf32>
    %c1_i32_142 = arith.constant 1 : i32
    %162 = arith.addi %0, %c1_i32_142 : i32
    %c0_143 = arith.constant 0 : index
    %c3_144 = arith.constant 3 : index
    %163 = arith.index_cast %162 : i32 to index
    %c1_145 = arith.constant 1 : index
    %c0_146 = arith.constant 0 : index
    %164 = vector.load %arg2[%c0_143, %c3_144, %163, %c1_145, %c0_146] : memref<1x4x6x6x32xbf16, #tpu.memory_space<vmem>>, vector<1x1x1x4x32xbf16>
    %165 = vector.shape_cast %164 : vector<1x1x1x4x32xbf16> to vector<1x4x32xbf16>
    %166 = vector.shape_cast %165 : vector<1x4x32xbf16> to vector<4x32xbf16>
    %c18 = arith.constant 18 : index
    %c0_147 = arith.constant 0 : index
    %c0_148 = arith.constant 0 : index
    %167 = vector.load %arg3[%c18, %c0_147, %c0_148] : memref<25x32x32xbf16, #tpu.memory_space<vmem>>, vector<1x32x32xbf16>
    %168 = vector.shape_cast %167 : vector<1x32x32xbf16> to vector<32x32xbf16>
    %cst_149 = arith.constant dense<0.000000e+00> : vector<4x32xf32>
    %169 = tpu.matmul %166, %168, %cst_149 {dimension_numbers = #tpu.dot_dimension_numbers<[1], [0], [0], [1], [0, 0, 1, 1], [], []>} : vector<4x32xbf16>, vector<32x32xbf16>, vector<4x32xf32> -> vector<4x32xf32>
    %170 = arith.addf %161, %169 : vector<4x32xf32>
    %c1_i32_150 = arith.constant 1 : i32
    %171 = arith.addi %0, %c1_i32_150 : i32
    %c0_151 = arith.constant 0 : index
    %c2_152 = arith.constant 2 : index
    %172 = arith.index_cast %171 : i32 to index
    %c2_153 = arith.constant 2 : index
    %c0_154 = arith.constant 0 : index
    %173 = vector.load %arg2[%c0_151, %c2_152, %172, %c2_153, %c0_154] : memref<1x4x6x6x32xbf16, #tpu.memory_space<vmem>>, vector<1x1x1x4x32xbf16>
    %174 = vector.shape_cast %173 : vector<1x1x1x4x32xbf16> to vector<1x4x32xbf16>
    %175 = vector.shape_cast %174 : vector<1x4x32xbf16> to vector<4x32xbf16>
    %c19 = arith.constant 19 : index
    %c0_155 = arith.constant 0 : index
    %c0_156 = arith.constant 0 : index
    %176 = vector.load %arg3[%c19, %c0_155, %c0_156] : memref<25x32x32xbf16, #tpu.memory_space<vmem>>, vector<1x32x32xbf16>
    %177 = vector.shape_cast %176 : vector<1x32x32xbf16> to vector<32x32xbf16>
    %cst_157 = arith.constant dense<0.000000e+00> : vector<4x32xf32>
    %178 = tpu.matmul %175, %177, %cst_157 {dimension_numbers = #tpu.dot_dimension_numbers<[1], [0], [0], [1], [0, 0, 1, 1], [], []>} : vector<4x32xbf16>, vector<32x32xbf16>, vector<4x32xf32> -> vector<4x32xf32>
    %179 = arith.addf %170, %178 : vector<4x32xf32>
    %c2_i32 = arith.constant 2 : i32
    %180 = arith.addi %0, %c2_i32 : i32
    %c0_158 = arith.constant 0 : index
    %c0_159 = arith.constant 0 : index
    %181 = arith.index_cast %180 : i32 to index
    %c0_160 = arith.constant 0 : index
    %c0_161 = arith.constant 0 : index
    %182 = vector.load %arg2[%c0_158, %c0_159, %181, %c0_160, %c0_161] : memref<1x4x6x6x32xbf16, #tpu.memory_space<vmem>>, vector<1x1x1x4x32xbf16>
    %183 = vector.shape_cast %182 : vector<1x1x1x4x32xbf16> to vector<1x4x32xbf16>
    %184 = vector.shape_cast %183 : vector<1x4x32xbf16> to vector<4x32xbf16>
    %c20 = arith.constant 20 : index
    %c0_162 = arith.constant 0 : index
    %c0_163 = arith.constant 0 : index
    %185 = vector.load %arg3[%c20, %c0_162, %c0_163] : memref<25x32x32xbf16, #tpu.memory_space<vmem>>, vector<1x32x32xbf16>
    %186 = vector.shape_cast %185 : vector<1x32x32xbf16> to vector<32x32xbf16>
    %cst_164 = arith.constant dense<0.000000e+00> : vector<4x32xf32>
    %187 = tpu.matmul %184, %186, %cst_164 {dimension_numbers = #tpu.dot_dimension_numbers<[1], [0], [0], [1], [0, 0, 1, 1], [], []>} : vector<4x32xbf16>, vector<32x32xbf16>, vector<4x32xf32> -> vector<4x32xf32>
    %188 = arith.addf %179, %187 : vector<4x32xf32>
    %c2_i32_165 = arith.constant 2 : i32
    %189 = arith.addi %0, %c2_i32_165 : i32
    %c0_166 = arith.constant 0 : index
    %c1_167 = arith.constant 1 : index
    %190 = arith.index_cast %189 : i32 to index
    %c0_168 = arith.constant 0 : index
    %c0_169 = arith.constant 0 : index
    %191 = vector.load %arg2[%c0_166, %c1_167, %190, %c0_168, %c0_169] : memref<1x4x6x6x32xbf16, #tpu.memory_space<vmem>>, vector<1x1x1x4x32xbf16>
    %192 = vector.shape_cast %191 : vector<1x1x1x4x32xbf16> to vector<1x4x32xbf16>
    %193 = vector.shape_cast %192 : vector<1x4x32xbf16> to vector<4x32xbf16>
    %c21 = arith.constant 21 : index
    %c0_170 = arith.constant 0 : index
    %c0_171 = arith.constant 0 : index
    %194 = vector.load %arg3[%c21, %c0_170, %c0_171] : memref<25x32x32xbf16, #tpu.memory_space<vmem>>, vector<1x32x32xbf16>
    %195 = vector.shape_cast %194 : vector<1x32x32xbf16> to vector<32x32xbf16>
    %cst_172 = arith.constant dense<0.000000e+00> : vector<4x32xf32>
    %196 = tpu.matmul %193, %195, %cst_172 {dimension_numbers = #tpu.dot_dimension_numbers<[1], [0], [0], [1], [0, 0, 1, 1], [], []>} : vector<4x32xbf16>, vector<32x32xbf16>, vector<4x32xf32> -> vector<4x32xf32>
    %197 = arith.addf %188, %196 : vector<4x32xf32>
    %c2_i32_173 = arith.constant 2 : i32
    %198 = arith.addi %0, %c2_i32_173 : i32
    %c0_174 = arith.constant 0 : index
    %c0_175 = arith.constant 0 : index
    %199 = arith.index_cast %198 : i32 to index
    %c1_176 = arith.constant 1 : index
    %c0_177 = arith.constant 0 : index
    %200 = vector.load %arg2[%c0_174, %c0_175, %199, %c1_176, %c0_177] : memref<1x4x6x6x32xbf16, #tpu.memory_space<vmem>>, vector<1x1x1x4x32xbf16>
    %201 = vector.shape_cast %200 : vector<1x1x1x4x32xbf16> to vector<1x4x32xbf16>
    %202 = vector.shape_cast %201 : vector<1x4x32xbf16> to vector<4x32xbf16>
    %c22 = arith.constant 22 : index
    %c0_178 = arith.constant 0 : index
    %c0_179 = arith.constant 0 : index
    %203 = vector.load %arg3[%c22, %c0_178, %c0_179] : memref<25x32x32xbf16, #tpu.memory_space<vmem>>, vector<1x32x32xbf16>
    %204 = vector.shape_cast %203 : vector<1x32x32xbf16> to vector<32x32xbf16>
    %cst_180 = arith.constant dense<0.000000e+00> : vector<4x32xf32>
    %205 = tpu.matmul %202, %204, %cst_180 {dimension_numbers = #tpu.dot_dimension_numbers<[1], [0], [0], [1], [0, 0, 1, 1], [], []>} : vector<4x32xbf16>, vector<32x32xbf16>, vector<4x32xf32> -> vector<4x32xf32>
    %206 = arith.addf %197, %205 : vector<4x32xf32>
    %c2_i32_181 = arith.constant 2 : i32
    %207 = arith.addi %0, %c2_i32_181 : i32
    %c0_182 = arith.constant 0 : index
    %c1_183 = arith.constant 1 : index
    %208 = arith.index_cast %207 : i32 to index
    %c1_184 = arith.constant 1 : index
    %c0_185 = arith.constant 0 : index
    %209 = vector.load %arg2[%c0_182, %c1_183, %208, %c1_184, %c0_185] : memref<1x4x6x6x32xbf16, #tpu.memory_space<vmem>>, vector<1x1x1x4x32xbf16>
    %210 = vector.shape_cast %209 : vector<1x1x1x4x32xbf16> to vector<1x4x32xbf16>
    %211 = vector.shape_cast %210 : vector<1x4x32xbf16> to vector<4x32xbf16>
    %c23 = arith.constant 23 : index
    %c0_186 = arith.constant 0 : index
    %c0_187 = arith.constant 0 : index
    %212 = vector.load %arg3[%c23, %c0_186, %c0_187] : memref<25x32x32xbf16, #tpu.memory_space<vmem>>, vector<1x32x32xbf16>
    %213 = vector.shape_cast %212 : vector<1x32x32xbf16> to vector<32x32xbf16>
    %cst_188 = arith.constant dense<0.000000e+00> : vector<4x32xf32>
    %214 = tpu.matmul %211, %213, %cst_188 {dimension_numbers = #tpu.dot_dimension_numbers<[1], [0], [0], [1], [0, 0, 1, 1], [], []>} : vector<4x32xbf16>, vector<32x32xbf16>, vector<4x32xf32> -> vector<4x32xf32>
    %215 = arith.addf %206, %214 : vector<4x32xf32>
    %c2_i32_189 = arith.constant 2 : i32
    %216 = arith.addi %0, %c2_i32_189 : i32
    %c0_190 = arith.constant 0 : index
    %c0_191 = arith.constant 0 : index
    %217 = arith.index_cast %216 : i32 to index
    %c2_192 = arith.constant 2 : index
    %c0_193 = arith.constant 0 : index
    %218 = vector.load %arg2[%c0_190, %c0_191, %217, %c2_192, %c0_193] : memref<1x4x6x6x32xbf16, #tpu.memory_space<vmem>>, vector<1x1x1x4x32xbf16>
    %219 = vector.shape_cast %218 : vector<1x1x1x4x32xbf16> to vector<1x4x32xbf16>
    %220 = vector.shape_cast %219 : vector<1x4x32xbf16> to vector<4x32xbf16>
    %c24 = arith.constant 24 : index
    %c0_194 = arith.constant 0 : index
    %c0_195 = arith.constant 0 : index
    %221 = vector.load %arg3[%c24, %c0_194, %c0_195] : memref<25x32x32xbf16, #tpu.memory_space<vmem>>, vector<1x32x32xbf16>
    %222 = vector.shape_cast %221 : vector<1x32x32xbf16> to vector<32x32xbf16>
    %cst_196 = arith.constant dense<0.000000e+00> : vector<4x32xf32>
    %223 = tpu.matmul %220, %222, %cst_196 {dimension_numbers = #tpu.dot_dimension_numbers<[1], [0], [0], [1], [0, 0, 1, 1], [], []>} : vector<4x32xbf16>, vector<32x32xbf16>, vector<4x32xf32> -> vector<4x32xf32>
    %224 = arith.addf %215, %223 : vector<4x32xf32>
    %c0_197 = arith.constant 0 : index
    %c0_198 = arith.constant 0 : index
    %225 = vector.load %arg4[%c0_197, %c0_198] : memref<1x32xf32, #tpu.memory_space<vmem>>, vector<1x32xf32>
    %226 = vector.broadcast %225 : vector<1x32xf32> to vector<4x32xf32>
    %227 = arith.addf %224, %226 : vector<4x32xf32>
    %cst_199 = arith.constant 0.000000e+00 : f32
    %228 = vector.broadcast %cst_199 : f32 to vector<4x32xf32>
    %229 = arith.maximumf %227, %228 : vector<4x32xf32>
    %230 = vector.shape_cast %229 : vector<4x32xf32> to vector<1x4x32xf32>
    %231 = arith.truncf %230 : vector<1x4x32xf32> to vector<1x4x32xbf16>
    %c0_200 = arith.constant 0 : index
    %c0_201 = arith.constant 0 : index
    %c0_202 = arith.constant 0 : index
    %c0_203 = arith.constant 0 : index
    %232 = vector.load %arg5[%c0_200, %c0_201, %c0_202, %c0_203] : memref<1x1x4x32xbf16, #tpu.memory_space<vmem>>, vector<1x1x4x32xbf16>
    %233 = vector.shape_cast %232 : vector<1x1x4x32xbf16> to vector<1x4x32xbf16>
    %234 = vector.shape_cast %231 : vector<1x4x32xbf16> to vector<1x1x4x32xbf16>
    tpu.vector_store %arg5[%c0_200, %c0_201, %c0_202, %c0_203], %234 {strides = array<i32>} : memref<1x1x4x32xbf16, #tpu.memory_space<vmem>>, vector<1x1x4x32xbf16>,
    return
  }
  func.func @transform_0(%arg0: i32, %arg1: i32) -> (i32, i32, i32, i32, i32) {
    %c0_i32 = arith.constant 0 : i32
    %c0_i32_0 = arith.constant 0 : i32
    %c0_i32_1 = arith.constant 0 : i32
    %c0_i32_2 = arith.constant 0 : i32
    %c0_i32_3 = arith.constant 0 : i32
    return %arg0, %c0_i32, %c0_i32_0, %c0_i32_1, %c0_i32_2 : i32, i32, i32, i32, i32
  }
  func.func @transform_1(%arg0: i32, %arg1: i32) -> (i32, i32, i32) {
    %c0_i32 = arith.constant 0 : i32
    %c0_i32_0 = arith.constant 0 : i32
    %c0_i32_1 = arith.constant 0 : i32
    %c0_i32_2 = arith.constant 0 : i32
    return %c0_i32, %c0_i32_0, %c0_i32_1 : i32, i32, i32
  }
  func.func @transform_2(%arg0: i32, %arg1: i32) -> (i32, i32) {
    %c0_i32 = arith.constant 0 : i32
    %c0_i32_0 = arith.constant 0 : i32
    %c0_i32_1 = arith.constant 0 : i32
    return %c0_i32, %c0_i32_0 : i32, i32
  }
  func.func @transform_3(%arg0: i32, %arg1: i32) -> (i32, i32, i32, i32) {
    %c0_i32 = arith.constant 0 : i32
    %c0_i32_0 = arith.constant 0 : i32
    %c0_i32_1 = arith.constant 0 : i32
    return %arg0, %arg1, %c0_i32, %c0_i32_0 : i32, i32, i32, i32
  }
}

module attributes {stable_mosaic.version = 11 : i64} {
  func.func @kernel(%arg0: i32, %arg1: i32, %arg2: memref<1x4x4x4x32xbf16, #tpu.memory_space<vmem>>, %arg3: memref<25x32x32xbf16, #tpu.memory_space<vmem>>, %arg4: memref<1x32xf32, #tpu.memory_space<vmem>>, %arg5: memref<1x1x2x32xbf16, #tpu.memory_space<vmem>>) attributes {dimension_semantics = [#tpu.dimension_semantics<parallel>, #tpu.dimension_semantics<parallel>], iteration_bounds = array<i64: 2, 2>, scalar_prefetch = 0 : i64, scratch_operands = 0 : i64, tpu.core_type = #tpu.core_type<tc>, window_params = [{transform_indices = @transform_0, window_bounds = array<i64: 1, 4, 4, 4, 32>}, {pipeline_mode = #tpu.pipeline_mode<synchronous>, transform_indices = @transform_1, window_bounds = array<i64: 25, 32, 32>}, {pipeline_mode = #tpu.pipeline_mode<synchronous>, transform_indices = @transform_2, window_bounds = array<i64: 1, 32>}, {transform_indices = @transform_3, window_bounds = array<i64: 1, 1, 2, 32>}]} {
    %c1_i32 = arith.constant 1 : i32
    %0 = arith.muli %arg1, %c1_i32 : i32
    %c0_i32 = arith.constant 0 : i32
    %1 = arith.addi %0, %c0_i32 : i32
    %c0 = arith.constant 0 : index
    %c0_0 = arith.constant 0 : index
    %2 = arith.index_cast %1 : i32 to index
    %c0_1 = arith.constant 0 : index
    %c0_2 = arith.constant 0 : index
    %3 = vector.load %arg2[%c0, %c0_0, %2, %c0_1, %c0_2] : memref<1x4x4x4x32xbf16, #tpu.memory_space<vmem>>, vector<1x1x1x2x32xbf16>
    %4 = vector.shape_cast %3 : vector<1x1x1x2x32xbf16> to vector<1x2x32xbf16>
    %5 = vector.shape_cast %4 : vector<1x2x32xbf16> to vector<2x32xbf16>
    %c0_3 = arith.constant 0 : index
    %c0_4 = arith.constant 0 : index
    %c0_5 = arith.constant 0 : index
    %6 = vector.load %arg3[%c0_3, %c0_4, %c0_5] : memref<25x32x32xbf16, #tpu.memory_space<vmem>>, vector<1x32x32xbf16>
    %7 = vector.shape_cast %6 : vector<1x32x32xbf16> to vector<32x32xbf16>
    %cst = arith.constant dense<0.000000e+00> : vector<2x32xf32>
    %8 = tpu.matmul %5, %7, %cst {dimension_numbers = #tpu.dot_dimension_numbers<[1], [0], [0], [1], [0, 0, 1, 1], [], []>} : vector<2x32xbf16>, vector<32x32xbf16>, vector<2x32xf32> -> vector<2x32xf32>
    %c0_i32_6 = arith.constant 0 : i32
    %9 = arith.addi %0, %c0_i32_6 : i32
    %c0_7 = arith.constant 0 : index
    %c1 = arith.constant 1 : index
    %10 = arith.index_cast %9 : i32 to index
    %c0_8 = arith.constant 0 : index
    %c0_9 = arith.constant 0 : index
    %11 = vector.load %arg2[%c0_7, %c1, %10, %c0_8, %c0_9] : memref<1x4x4x4x32xbf16, #tpu.memory_space<vmem>>, vector<1x1x1x2x32xbf16>
    %12 = vector.shape_cast %11 : vector<1x1x1x2x32xbf16> to vector<1x2x32xbf16>
    %13 = vector.shape_cast %12 : vector<1x2x32xbf16> to vector<2x32xbf16>
    %c1_10 = arith.constant 1 : index
    %c0_11 = arith.constant 0 : index
    %c0_12 = arith.constant 0 : index
    %14 = vector.load %arg3[%c1_10, %c0_11, %c0_12] : memref<25x32x32xbf16, #tpu.memory_space<vmem>>, vector<1x32x32xbf16>
    %15 = vector.shape_cast %14 : vector<1x32x32xbf16> to vector<32x32xbf16>
    %cst_13 = arith.constant dense<0.000000e+00> : vector<2x32xf32>
    %16 = tpu.matmul %13, %15, %cst_13 {dimension_numbers = #tpu.dot_dimension_numbers<[1], [0], [0], [1], [0, 0, 1, 1], [], []>} : vector<2x32xbf16>, vector<32x32xbf16>, vector<2x32xf32> -> vector<2x32xf32>
    %17 = arith.addf %8, %16 : vector<2x32xf32>
    %c0_i32_14 = arith.constant 0 : i32
    %18 = arith.addi %0, %c0_i32_14 : i32
    %c0_15 = arith.constant 0 : index
    %c0_16 = arith.constant 0 : index
    %19 = arith.index_cast %18 : i32 to index
    %c1_17 = arith.constant 1 : index
    %c0_18 = arith.constant 0 : index
    %20 = vector.load %arg2[%c0_15, %c0_16, %19, %c1_17, %c0_18] : memref<1x4x4x4x32xbf16, #tpu.memory_space<vmem>>, vector<1x1x1x2x32xbf16>
    %21 = vector.shape_cast %20 : vector<1x1x1x2x32xbf16> to vector<1x2x32xbf16>
    %22 = vector.shape_cast %21 : vector<1x2x32xbf16> to vector<2x32xbf16>
    %c2 = arith.constant 2 : index
    %c0_19 = arith.constant 0 : index
    %c0_20 = arith.constant 0 : index
    %23 = vector.load %arg3[%c2, %c0_19, %c0_20] : memref<25x32x32xbf16, #tpu.memory_space<vmem>>, vector<1x32x32xbf16>
    %24 = vector.shape_cast %23 : vector<1x32x32xbf16> to vector<32x32xbf16>
    %cst_21 = arith.constant dense<0.000000e+00> : vector<2x32xf32>
    %25 = tpu.matmul %22, %24, %cst_21 {dimension_numbers = #tpu.dot_dimension_numbers<[1], [0], [0], [1], [0, 0, 1, 1], [], []>} : vector<2x32xbf16>, vector<32x32xbf16>, vector<2x32xf32> -> vector<2x32xf32>
    %26 = arith.addf %17, %25 : vector<2x32xf32>
    %c0_i32_22 = arith.constant 0 : i32
    %27 = arith.addi %0, %c0_i32_22 : i32
    %c0_23 = arith.constant 0 : index
    %c1_24 = arith.constant 1 : index
    %28 = arith.index_cast %27 : i32 to index
    %c1_25 = arith.constant 1 : index
    %c0_26 = arith.constant 0 : index
    %29 = vector.load %arg2[%c0_23, %c1_24, %28, %c1_25, %c0_26] : memref<1x4x4x4x32xbf16, #tpu.memory_space<vmem>>, vector<1x1x1x2x32xbf16>
    %30 = vector.shape_cast %29 : vector<1x1x1x2x32xbf16> to vector<1x2x32xbf16>
    %31 = vector.shape_cast %30 : vector<1x2x32xbf16> to vector<2x32xbf16>
    %c3 = arith.constant 3 : index
    %c0_27 = arith.constant 0 : index
    %c0_28 = arith.constant 0 : index
    %32 = vector.load %arg3[%c3, %c0_27, %c0_28] : memref<25x32x32xbf16, #tpu.memory_space<vmem>>, vector<1x32x32xbf16>
    %33 = vector.shape_cast %32 : vector<1x32x32xbf16> to vector<32x32xbf16>
    %cst_29 = arith.constant dense<0.000000e+00> : vector<2x32xf32>
    %34 = tpu.matmul %31, %33, %cst_29 {dimension_numbers = #tpu.dot_dimension_numbers<[1], [0], [0], [1], [0, 0, 1, 1], [], []>} : vector<2x32xbf16>, vector<32x32xbf16>, vector<2x32xf32> -> vector<2x32xf32>
    %35 = arith.addf %26, %34 : vector<2x32xf32>
    %c0_i32_30 = arith.constant 0 : i32
    %36 = arith.addi %0, %c0_i32_30 : i32
    %c0_31 = arith.constant 0 : index
    %c0_32 = arith.constant 0 : index
    %37 = arith.index_cast %36 : i32 to index
    %c2_33 = arith.constant 2 : index
    %c0_34 = arith.constant 0 : index
    %38 = vector.load %arg2[%c0_31, %c0_32, %37, %c2_33, %c0_34] : memref<1x4x4x4x32xbf16, #tpu.memory_space<vmem>>, vector<1x1x1x2x32xbf16>
    %39 = vector.shape_cast %38 : vector<1x1x1x2x32xbf16> to vector<1x2x32xbf16>
    %40 = vector.shape_cast %39 : vector<1x2x32xbf16> to vector<2x32xbf16>
    %c4 = arith.constant 4 : index
    %c0_35 = arith.constant 0 : index
    %c0_36 = arith.constant 0 : index
    %41 = vector.load %arg3[%c4, %c0_35, %c0_36] : memref<25x32x32xbf16, #tpu.memory_space<vmem>>, vector<1x32x32xbf16>
    %42 = vector.shape_cast %41 : vector<1x32x32xbf16> to vector<32x32xbf16>
    %cst_37 = arith.constant dense<0.000000e+00> : vector<2x32xf32>
    %43 = tpu.matmul %40, %42, %cst_37 {dimension_numbers = #tpu.dot_dimension_numbers<[1], [0], [0], [1], [0, 0, 1, 1], [], []>} : vector<2x32xbf16>, vector<32x32xbf16>, vector<2x32xf32> -> vector<2x32xf32>
    %44 = arith.addf %35, %43 : vector<2x32xf32>
    %c0_i32_38 = arith.constant 0 : i32
    %45 = arith.addi %0, %c0_i32_38 : i32
    %c0_39 = arith.constant 0 : index
    %c2_40 = arith.constant 2 : index
    %46 = arith.index_cast %45 : i32 to index
    %c0_41 = arith.constant 0 : index
    %c0_42 = arith.constant 0 : index
    %47 = vector.load %arg2[%c0_39, %c2_40, %46, %c0_41, %c0_42] : memref<1x4x4x4x32xbf16, #tpu.memory_space<vmem>>, vector<1x1x1x2x32xbf16>
    %48 = vector.shape_cast %47 : vector<1x1x1x2x32xbf16> to vector<1x2x32xbf16>
    %49 = vector.shape_cast %48 : vector<1x2x32xbf16> to vector<2x32xbf16>
    %c5 = arith.constant 5 : index
    %c0_43 = arith.constant 0 : index
    %c0_44 = arith.constant 0 : index
    %50 = vector.load %arg3[%c5, %c0_43, %c0_44] : memref<25x32x32xbf16, #tpu.memory_space<vmem>>, vector<1x32x32xbf16>
    %51 = vector.shape_cast %50 : vector<1x32x32xbf16> to vector<32x32xbf16>
    %cst_45 = arith.constant dense<0.000000e+00> : vector<2x32xf32>
    %52 = tpu.matmul %49, %51, %cst_45 {dimension_numbers = #tpu.dot_dimension_numbers<[1], [0], [0], [1], [0, 0, 1, 1], [], []>} : vector<2x32xbf16>, vector<32x32xbf16>, vector<2x32xf32> -> vector<2x32xf32>
    %53 = arith.addf %44, %52 : vector<2x32xf32>
    %c0_i32_46 = arith.constant 0 : i32
    %54 = arith.addi %0, %c0_i32_46 : i32
    %c0_47 = arith.constant 0 : index
    %c3_48 = arith.constant 3 : index
    %55 = arith.index_cast %54 : i32 to index
    %c0_49 = arith.constant 0 : index
    %c0_50 = arith.constant 0 : index
    %56 = vector.load %arg2[%c0_47, %c3_48, %55, %c0_49, %c0_50] : memref<1x4x4x4x32xbf16, #tpu.memory_space<vmem>>, vector<1x1x1x2x32xbf16>
    %57 = vector.shape_cast %56 : vector<1x1x1x2x32xbf16> to vector<1x2x32xbf16>
    %58 = vector.shape_cast %57 : vector<1x2x32xbf16> to vector<2x32xbf16>
    %c6 = arith.constant 6 : index
    %c0_51 = arith.constant 0 : index
    %c0_52 = arith.constant 0 : index
    %59 = vector.load %arg3[%c6, %c0_51, %c0_52] : memref<25x32x32xbf16, #tpu.memory_space<vmem>>, vector<1x32x32xbf16>
    %60 = vector.shape_cast %59 : vector<1x32x32xbf16> to vector<32x32xbf16>
    %cst_53 = arith.constant dense<0.000000e+00> : vector<2x32xf32>
    %61 = tpu.matmul %58, %60, %cst_53 {dimension_numbers = #tpu.dot_dimension_numbers<[1], [0], [0], [1], [0, 0, 1, 1], [], []>} : vector<2x32xbf16>, vector<32x32xbf16>, vector<2x32xf32> -> vector<2x32xf32>
    %62 = arith.addf %53, %61 : vector<2x32xf32>
    %c0_i32_54 = arith.constant 0 : i32
    %63 = arith.addi %0, %c0_i32_54 : i32
    %c0_55 = arith.constant 0 : index
    %c2_56 = arith.constant 2 : index
    %64 = arith.index_cast %63 : i32 to index
    %c1_57 = arith.constant 1 : index
    %c0_58 = arith.constant 0 : index
    %65 = vector.load %arg2[%c0_55, %c2_56, %64, %c1_57, %c0_58] : memref<1x4x4x4x32xbf16, #tpu.memory_space<vmem>>, vector<1x1x1x2x32xbf16>
    %66 = vector.shape_cast %65 : vector<1x1x1x2x32xbf16> to vector<1x2x32xbf16>
    %67 = vector.shape_cast %66 : vector<1x2x32xbf16> to vector<2x32xbf16>
    %c7 = arith.constant 7 : index
    %c0_59 = arith.constant 0 : index
    %c0_60 = arith.constant 0 : index
    %68 = vector.load %arg3[%c7, %c0_59, %c0_60] : memref<25x32x32xbf16, #tpu.memory_space<vmem>>, vector<1x32x32xbf16>
    %69 = vector.shape_cast %68 : vector<1x32x32xbf16> to vector<32x32xbf16>
    %cst_61 = arith.constant dense<0.000000e+00> : vector<2x32xf32>
    %70 = tpu.matmul %67, %69, %cst_61 {dimension_numbers = #tpu.dot_dimension_numbers<[1], [0], [0], [1], [0, 0, 1, 1], [], []>} : vector<2x32xbf16>, vector<32x32xbf16>, vector<2x32xf32> -> vector<2x32xf32>
    %71 = arith.addf %62, %70 : vector<2x32xf32>
    %c0_i32_62 = arith.constant 0 : i32
    %72 = arith.addi %0, %c0_i32_62 : i32
    %c0_63 = arith.constant 0 : index
    %c3_64 = arith.constant 3 : index
    %73 = arith.index_cast %72 : i32 to index
    %c1_65 = arith.constant 1 : index
    %c0_66 = arith.constant 0 : index
    %74 = vector.load %arg2[%c0_63, %c3_64, %73, %c1_65, %c0_66] : memref<1x4x4x4x32xbf16, #tpu.memory_space<vmem>>, vector<1x1x1x2x32xbf16>
    %75 = vector.shape_cast %74 : vector<1x1x1x2x32xbf16> to vector<1x2x32xbf16>
    %76 = vector.shape_cast %75 : vector<1x2x32xbf16> to vector<2x32xbf16>
    %c8 = arith.constant 8 : index
    %c0_67 = arith.constant 0 : index
    %c0_68 = arith.constant 0 : index
    %77 = vector.load %arg3[%c8, %c0_67, %c0_68] : memref<25x32x32xbf16, #tpu.memory_space<vmem>>, vector<1x32x32xbf16>
    %78 = vector.shape_cast %77 : vector<1x32x32xbf16> to vector<32x32xbf16>
    %cst_69 = arith.constant dense<0.000000e+00> : vector<2x32xf32>
    %79 = tpu.matmul %76, %78, %cst_69 {dimension_numbers = #tpu.dot_dimension_numbers<[1], [0], [0], [1], [0, 0, 1, 1], [], []>} : vector<2x32xbf16>, vector<32x32xbf16>, vector<2x32xf32> -> vector<2x32xf32>
    %80 = arith.addf %71, %79 : vector<2x32xf32>
    %c0_i32_70 = arith.constant 0 : i32
    %81 = arith.addi %0, %c0_i32_70 : i32
    %c0_71 = arith.constant 0 : index
    %c2_72 = arith.constant 2 : index
    %82 = arith.index_cast %81 : i32 to index
    %c2_73 = arith.constant 2 : index
    %c0_74 = arith.constant 0 : index
    %83 = vector.load %arg2[%c0_71, %c2_72, %82, %c2_73, %c0_74] : memref<1x4x4x4x32xbf16, #tpu.memory_space<vmem>>, vector<1x1x1x2x32xbf16>
    %84 = vector.shape_cast %83 : vector<1x1x1x2x32xbf16> to vector<1x2x32xbf16>
    %85 = vector.shape_cast %84 : vector<1x2x32xbf16> to vector<2x32xbf16>
    %c9 = arith.constant 9 : index
    %c0_75 = arith.constant 0 : index
    %c0_76 = arith.constant 0 : index
    %86 = vector.load %arg3[%c9, %c0_75, %c0_76] : memref<25x32x32xbf16, #tpu.memory_space<vmem>>, vector<1x32x32xbf16>
    %87 = vector.shape_cast %86 : vector<1x32x32xbf16> to vector<32x32xbf16>
    %cst_77 = arith.constant dense<0.000000e+00> : vector<2x32xf32>
    %88 = tpu.matmul %85, %87, %cst_77 {dimension_numbers = #tpu.dot_dimension_numbers<[1], [0], [0], [1], [0, 0, 1, 1], [], []>} : vector<2x32xbf16>, vector<32x32xbf16>, vector<2x32xf32> -> vector<2x32xf32>
    %89 = arith.addf %80, %88 : vector<2x32xf32>
    %c1_i32_78 = arith.constant 1 : i32
    %90 = arith.addi %0, %c1_i32_78 : i32
    %c0_79 = arith.constant 0 : index
    %c0_80 = arith.constant 0 : index
    %91 = arith.index_cast %90 : i32 to index
    %c0_81 = arith.constant 0 : index
    %c0_82 = arith.constant 0 : index
    %92 = vector.load %arg2[%c0_79, %c0_80, %91, %c0_81, %c0_82] : memref<1x4x4x4x32xbf16, #tpu.memory_space<vmem>>, vector<1x1x1x2x32xbf16>
    %93 = vector.shape_cast %92 : vector<1x1x1x2x32xbf16> to vector<1x2x32xbf16>
    %94 = vector.shape_cast %93 : vector<1x2x32xbf16> to vector<2x32xbf16>
    %c10 = arith.constant 10 : index
    %c0_83 = arith.constant 0 : index
    %c0_84 = arith.constant 0 : index
    %95 = vector.load %arg3[%c10, %c0_83, %c0_84] : memref<25x32x32xbf16, #tpu.memory_space<vmem>>, vector<1x32x32xbf16>
    %96 = vector.shape_cast %95 : vector<1x32x32xbf16> to vector<32x32xbf16>
    %cst_85 = arith.constant dense<0.000000e+00> : vector<2x32xf32>
    %97 = tpu.matmul %94, %96, %cst_85 {dimension_numbers = #tpu.dot_dimension_numbers<[1], [0], [0], [1], [0, 0, 1, 1], [], []>} : vector<2x32xbf16>, vector<32x32xbf16>, vector<2x32xf32> -> vector<2x32xf32>
    %98 = arith.addf %89, %97 : vector<2x32xf32>
    %c1_i32_86 = arith.constant 1 : i32
    %99 = arith.addi %0, %c1_i32_86 : i32
    %c0_87 = arith.constant 0 : index
    %c1_88 = arith.constant 1 : index
    %100 = arith.index_cast %99 : i32 to index
    %c0_89 = arith.constant 0 : index
    %c0_90 = arith.constant 0 : index
    %101 = vector.load %arg2[%c0_87, %c1_88, %100, %c0_89, %c0_90] : memref<1x4x4x4x32xbf16, #tpu.memory_space<vmem>>, vector<1x1x1x2x32xbf16>
    %102 = vector.shape_cast %101 : vector<1x1x1x2x32xbf16> to vector<1x2x32xbf16>
    %103 = vector.shape_cast %102 : vector<1x2x32xbf16> to vector<2x32xbf16>
    %c11 = arith.constant 11 : index
    %c0_91 = arith.constant 0 : index
    %c0_92 = arith.constant 0 : index
    %104 = vector.load %arg3[%c11, %c0_91, %c0_92] : memref<25x32x32xbf16, #tpu.memory_space<vmem>>, vector<1x32x32xbf16>
    %105 = vector.shape_cast %104 : vector<1x32x32xbf16> to vector<32x32xbf16>
    %cst_93 = arith.constant dense<0.000000e+00> : vector<2x32xf32>
    %106 = tpu.matmul %103, %105, %cst_93 {dimension_numbers = #tpu.dot_dimension_numbers<[1], [0], [0], [1], [0, 0, 1, 1], [], []>} : vector<2x32xbf16>, vector<32x32xbf16>, vector<2x32xf32> -> vector<2x32xf32>
    %107 = arith.addf %98, %106 : vector<2x32xf32>
    %c1_i32_94 = arith.constant 1 : i32
    %108 = arith.addi %0, %c1_i32_94 : i32
    %c0_95 = arith.constant 0 : index
    %c0_96 = arith.constant 0 : index
    %109 = arith.index_cast %108 : i32 to index
    %c1_97 = arith.constant 1 : index
    %c0_98 = arith.constant 0 : index
    %110 = vector.load %arg2[%c0_95, %c0_96, %109, %c1_97, %c0_98] : memref<1x4x4x4x32xbf16, #tpu.memory_space<vmem>>, vector<1x1x1x2x32xbf16>
    %111 = vector.shape_cast %110 : vector<1x1x1x2x32xbf16> to vector<1x2x32xbf16>
    %112 = vector.shape_cast %111 : vector<1x2x32xbf16> to vector<2x32xbf16>
    %c12 = arith.constant 12 : index
    %c0_99 = arith.constant 0 : index
    %c0_100 = arith.constant 0 : index
    %113 = vector.load %arg3[%c12, %c0_99, %c0_100] : memref<25x32x32xbf16, #tpu.memory_space<vmem>>, vector<1x32x32xbf16>
    %114 = vector.shape_cast %113 : vector<1x32x32xbf16> to vector<32x32xbf16>
    %cst_101 = arith.constant dense<0.000000e+00> : vector<2x32xf32>
    %115 = tpu.matmul %112, %114, %cst_101 {dimension_numbers = #tpu.dot_dimension_numbers<[1], [0], [0], [1], [0, 0, 1, 1], [], []>} : vector<2x32xbf16>, vector<32x32xbf16>, vector<2x32xf32> -> vector<2x32xf32>
    %116 = arith.addf %107, %115 : vector<2x32xf32>
    %c1_i32_102 = arith.constant 1 : i32
    %117 = arith.addi %0, %c1_i32_102 : i32
    %c0_103 = arith.constant 0 : index
    %c1_104 = arith.constant 1 : index
    %118 = arith.index_cast %117 : i32 to index
    %c1_105 = arith.constant 1 : index
    %c0_106 = arith.constant 0 : index
    %119 = vector.load %arg2[%c0_103, %c1_104, %118, %c1_105, %c0_106] : memref<1x4x4x4x32xbf16, #tpu.memory_space<vmem>>, vector<1x1x1x2x32xbf16>
    %120 = vector.shape_cast %119 : vector<1x1x1x2x32xbf16> to vector<1x2x32xbf16>
    %121 = vector.shape_cast %120 : vector<1x2x32xbf16> to vector<2x32xbf16>
    %c13 = arith.constant 13 : index
    %c0_107 = arith.constant 0 : index
    %c0_108 = arith.constant 0 : index
    %122 = vector.load %arg3[%c13, %c0_107, %c0_108] : memref<25x32x32xbf16, #tpu.memory_space<vmem>>, vector<1x32x32xbf16>
    %123 = vector.shape_cast %122 : vector<1x32x32xbf16> to vector<32x32xbf16>
    %cst_109 = arith.constant dense<0.000000e+00> : vector<2x32xf32>
    %124 = tpu.matmul %121, %123, %cst_109 {dimension_numbers = #tpu.dot_dimension_numbers<[1], [0], [0], [1], [0, 0, 1, 1], [], []>} : vector<2x32xbf16>, vector<32x32xbf16>, vector<2x32xf32> -> vector<2x32xf32>
    %125 = arith.addf %116, %124 : vector<2x32xf32>
    %c1_i32_110 = arith.constant 1 : i32
    %126 = arith.addi %0, %c1_i32_110 : i32
    %c0_111 = arith.constant 0 : index
    %c0_112 = arith.constant 0 : index
    %127 = arith.index_cast %126 : i32 to index
    %c2_113 = arith.constant 2 : index
    %c0_114 = arith.constant 0 : index
    %128 = vector.load %arg2[%c0_111, %c0_112, %127, %c2_113, %c0_114] : memref<1x4x4x4x32xbf16, #tpu.memory_space<vmem>>, vector<1x1x1x2x32xbf16>
    %129 = vector.shape_cast %128 : vector<1x1x1x2x32xbf16> to vector<1x2x32xbf16>
    %130 = vector.shape_cast %129 : vector<1x2x32xbf16> to vector<2x32xbf16>
    %c14 = arith.constant 14 : index
    %c0_115 = arith.constant 0 : index
    %c0_116 = arith.constant 0 : index
    %131 = vector.load %arg3[%c14, %c0_115, %c0_116] : memref<25x32x32xbf16, #tpu.memory_space<vmem>>, vector<1x32x32xbf16>
    %132 = vector.shape_cast %131 : vector<1x32x32xbf16> to vector<32x32xbf16>
    %cst_117 = arith.constant dense<0.000000e+00> : vector<2x32xf32>
    %133 = tpu.matmul %130, %132, %cst_117 {dimension_numbers = #tpu.dot_dimension_numbers<[1], [0], [0], [1], [0, 0, 1, 1], [], []>} : vector<2x32xbf16>, vector<32x32xbf16>, vector<2x32xf32> -> vector<2x32xf32>
    %134 = arith.addf %125, %133 : vector<2x32xf32>
    %c1_i32_118 = arith.constant 1 : i32
    %135 = arith.addi %0, %c1_i32_118 : i32
    %c0_119 = arith.constant 0 : index
    %c2_120 = arith.constant 2 : index
    %136 = arith.index_cast %135 : i32 to index
    %c0_121 = arith.constant 0 : index
    %c0_122 = arith.constant 0 : index
    %137 = vector.load %arg2[%c0_119, %c2_120, %136, %c0_121, %c0_122] : memref<1x4x4x4x32xbf16, #tpu.memory_space<vmem>>, vector<1x1x1x2x32xbf16>
    %138 = vector.shape_cast %137 : vector<1x1x1x2x32xbf16> to vector<1x2x32xbf16>
    %139 = vector.shape_cast %138 : vector<1x2x32xbf16> to vector<2x32xbf16>
    %c15 = arith.constant 15 : index
    %c0_123 = arith.constant 0 : index
    %c0_124 = arith.constant 0 : index
    %140 = vector.load %arg3[%c15, %c0_123, %c0_124] : memref<25x32x32xbf16, #tpu.memory_space<vmem>>, vector<1x32x32xbf16>
    %141 = vector.shape_cast %140 : vector<1x32x32xbf16> to vector<32x32xbf16>
    %cst_125 = arith.constant dense<0.000000e+00> : vector<2x32xf32>
    %142 = tpu.matmul %139, %141, %cst_125 {dimension_numbers = #tpu.dot_dimension_numbers<[1], [0], [0], [1], [0, 0, 1, 1], [], []>} : vector<2x32xbf16>, vector<32x32xbf16>, vector<2x32xf32> -> vector<2x32xf32>
    %143 = arith.addf %134, %142 : vector<2x32xf32>
    %c1_i32_126 = arith.constant 1 : i32
    %144 = arith.addi %0, %c1_i32_126 : i32
    %c0_127 = arith.constant 0 : index
    %c3_128 = arith.constant 3 : index
    %145 = arith.index_cast %144 : i32 to index
    %c0_129 = arith.constant 0 : index
    %c0_130 = arith.constant 0 : index
    %146 = vector.load %arg2[%c0_127, %c3_128, %145, %c0_129, %c0_130] : memref<1x4x4x4x32xbf16, #tpu.memory_space<vmem>>, vector<1x1x1x2x32xbf16>
    %147 = vector.shape_cast %146 : vector<1x1x1x2x32xbf16> to vector<1x2x32xbf16>
    %148 = vector.shape_cast %147 : vector<1x2x32xbf16> to vector<2x32xbf16>
    %c16 = arith.constant 16 : index
    %c0_131 = arith.constant 0 : index
    %c0_132 = arith.constant 0 : index
    %149 = vector.load %arg3[%c16, %c0_131, %c0_132] : memref<25x32x32xbf16, #tpu.memory_space<vmem>>, vector<1x32x32xbf16>
    %150 = vector.shape_cast %149 : vector<1x32x32xbf16> to vector<32x32xbf16>
    %cst_133 = arith.constant dense<0.000000e+00> : vector<2x32xf32>
    %151 = tpu.matmul %148, %150, %cst_133 {dimension_numbers = #tpu.dot_dimension_numbers<[1], [0], [0], [1], [0, 0, 1, 1], [], []>} : vector<2x32xbf16>, vector<32x32xbf16>, vector<2x32xf32> -> vector<2x32xf32>
    %152 = arith.addf %143, %151 : vector<2x32xf32>
    %c1_i32_134 = arith.constant 1 : i32
    %153 = arith.addi %0, %c1_i32_134 : i32
    %c0_135 = arith.constant 0 : index
    %c2_136 = arith.constant 2 : index
    %154 = arith.index_cast %153 : i32 to index
    %c1_137 = arith.constant 1 : index
    %c0_138 = arith.constant 0 : index
    %155 = vector.load %arg2[%c0_135, %c2_136, %154, %c1_137, %c0_138] : memref<1x4x4x4x32xbf16, #tpu.memory_space<vmem>>, vector<1x1x1x2x32xbf16>
    %156 = vector.shape_cast %155 : vector<1x1x1x2x32xbf16> to vector<1x2x32xbf16>
    %157 = vector.shape_cast %156 : vector<1x2x32xbf16> to vector<2x32xbf16>
    %c17 = arith.constant 17 : index
    %c0_139 = arith.constant 0 : index
    %c0_140 = arith.constant 0 : index
    %158 = vector.load %arg3[%c17, %c0_139, %c0_140] : memref<25x32x32xbf16, #tpu.memory_space<vmem>>, vector<1x32x32xbf16>
    %159 = vector.shape_cast %158 : vector<1x32x32xbf16> to vector<32x32xbf16>
    %cst_141 = arith.constant dense<0.000000e+00> : vector<2x32xf32>
    %160 = tpu.matmul %157, %159, %cst_141 {dimension_numbers = #tpu.dot_dimension_numbers<[1], [0], [0], [1], [0, 0, 1, 1], [], []>} : vector<2x32xbf16>, vector<32x32xbf16>, vector<2x32xf32> -> vector<2x32xf32>
    %161 = arith.addf %152, %160 : vector<2x32xf32>
    %c1_i32_142 = arith.constant 1 : i32
    %162 = arith.addi %0, %c1_i32_142 : i32
    %c0_143 = arith.constant 0 : index
    %c3_144 = arith.constant 3 : index
    %163 = arith.index_cast %162 : i32 to index
    %c1_145 = arith.constant 1 : index
    %c0_146 = arith.constant 0 : index
    %164 = vector.load %arg2[%c0_143, %c3_144, %163, %c1_145, %c0_146] : memref<1x4x4x4x32xbf16, #tpu.memory_space<vmem>>, vector<1x1x1x2x32xbf16>
    %165 = vector.shape_cast %164 : vector<1x1x1x2x32xbf16> to vector<1x2x32xbf16>
    %166 = vector.shape_cast %165 : vector<1x2x32xbf16> to vector<2x32xbf16>
    %c18 = arith.constant 18 : index
    %c0_147 = arith.constant 0 : index
    %c0_148 = arith.constant 0 : index
    %167 = vector.load %arg3[%c18, %c0_147, %c0_148] : memref<25x32x32xbf16, #tpu.memory_space<vmem>>, vector<1x32x32xbf16>
    %168 = vector.shape_cast %167 : vector<1x32x32xbf16> to vector<32x32xbf16>
    %cst_149 = arith.constant dense<0.000000e+00> : vector<2x32xf32>
    %169 = tpu.matmul %166, %168, %cst_149 {dimension_numbers = #tpu.dot_dimension_numbers<[1], [0], [0], [1], [0, 0, 1, 1], [], []>} : vector<2x32xbf16>, vector<32x32xbf16>, vector<2x32xf32> -> vector<2x32xf32>
    %170 = arith.addf %161, %169 : vector<2x32xf32>
    %c1_i32_150 = arith.constant 1 : i32
    %171 = arith.addi %0, %c1_i32_150 : i32
    %c0_151 = arith.constant 0 : index
    %c2_152 = arith.constant 2 : index
    %172 = arith.index_cast %171 : i32 to index
    %c2_153 = arith.constant 2 : index
    %c0_154 = arith.constant 0 : index
    %173 = vector.load %arg2[%c0_151, %c2_152, %172, %c2_153, %c0_154] : memref<1x4x4x4x32xbf16, #tpu.memory_space<vmem>>, vector<1x1x1x2x32xbf16>
    %174 = vector.shape_cast %173 : vector<1x1x1x2x32xbf16> to vector<1x2x32xbf16>
    %175 = vector.shape_cast %174 : vector<1x2x32xbf16> to vector<2x32xbf16>
    %c19 = arith.constant 19 : index
    %c0_155 = arith.constant 0 : index
    %c0_156 = arith.constant 0 : index
    %176 = vector.load %arg3[%c19, %c0_155, %c0_156] : memref<25x32x32xbf16, #tpu.memory_space<vmem>>, vector<1x32x32xbf16>
    %177 = vector.shape_cast %176 : vector<1x32x32xbf16> to vector<32x32xbf16>
    %cst_157 = arith.constant dense<0.000000e+00> : vector<2x32xf32>
    %178 = tpu.matmul %175, %177, %cst_157 {dimension_numbers = #tpu.dot_dimension_numbers<[1], [0], [0], [1], [0, 0, 1, 1], [], []>} : vector<2x32xbf16>, vector<32x32xbf16>, vector<2x32xf32> -> vector<2x32xf32>
    %179 = arith.addf %170, %178 : vector<2x32xf32>
    %c2_i32 = arith.constant 2 : i32
    %180 = arith.addi %0, %c2_i32 : i32
    %c0_158 = arith.constant 0 : index
    %c0_159 = arith.constant 0 : index
    %181 = arith.index_cast %180 : i32 to index
    %c0_160 = arith.constant 0 : index
    %c0_161 = arith.constant 0 : index
    %182 = vector.load %arg2[%c0_158, %c0_159, %181, %c0_160, %c0_161] : memref<1x4x4x4x32xbf16, #tpu.memory_space<vmem>>, vector<1x1x1x2x32xbf16>
    %183 = vector.shape_cast %182 : vector<1x1x1x2x32xbf16> to vector<1x2x32xbf16>
    %184 = vector.shape_cast %183 : vector<1x2x32xbf16> to vector<2x32xbf16>
    %c20 = arith.constant 20 : index
    %c0_162 = arith.constant 0 : index
    %c0_163 = arith.constant 0 : index
    %185 = vector.load %arg3[%c20, %c0_162, %c0_163] : memref<25x32x32xbf16, #tpu.memory_space<vmem>>, vector<1x32x32xbf16>
    %186 = vector.shape_cast %185 : vector<1x32x32xbf16> to vector<32x32xbf16>
    %cst_164 = arith.constant dense<0.000000e+00> : vector<2x32xf32>
    %187 = tpu.matmul %184, %186, %cst_164 {dimension_numbers = #tpu.dot_dimension_numbers<[1], [0], [0], [1], [0, 0, 1, 1], [], []>} : vector<2x32xbf16>, vector<32x32xbf16>, vector<2x32xf32> -> vector<2x32xf32>
    %188 = arith.addf %179, %187 : vector<2x32xf32>
    %c2_i32_165 = arith.constant 2 : i32
    %189 = arith.addi %0, %c2_i32_165 : i32
    %c0_166 = arith.constant 0 : index
    %c1_167 = arith.constant 1 : index
    %190 = arith.index_cast %189 : i32 to index
    %c0_168 = arith.constant 0 : index
    %c0_169 = arith.constant 0 : index
    %191 = vector.load %arg2[%c0_166, %c1_167, %190, %c0_168, %c0_169] : memref<1x4x4x4x32xbf16, #tpu.memory_space<vmem>>, vector<1x1x1x2x32xbf16>
    %192 = vector.shape_cast %191 : vector<1x1x1x2x32xbf16> to vector<1x2x32xbf16>
    %193 = vector.shape_cast %192 : vector<1x2x32xbf16> to vector<2x32xbf16>
    %c21 = arith.constant 21 : index
    %c0_170 = arith.constant 0 : index
    %c0_171 = arith.constant 0 : index
    %194 = vector.load %arg3[%c21, %c0_170, %c0_171] : memref<25x32x32xbf16, #tpu.memory_space<vmem>>, vector<1x32x32xbf16>
    %195 = vector.shape_cast %194 : vector<1x32x32xbf16> to vector<32x32xbf16>
    %cst_172 = arith.constant dense<0.000000e+00> : vector<2x32xf32>
    %196 = tpu.matmul %193, %195, %cst_172 {dimension_numbers = #tpu.dot_dimension_numbers<[1], [0], [0], [1], [0, 0, 1, 1], [], []>} : vector<2x32xbf16>, vector<32x32xbf16>, vector<2x32xf32> -> vector<2x32xf32>
    %197 = arith.addf %188, %196 : vector<2x32xf32>
    %c2_i32_173 = arith.constant 2 : i32
    %198 = arith.addi %0, %c2_i32_173 : i32
    %c0_174 = arith.constant 0 : index
    %c0_175 = arith.constant 0 : index
    %199 = arith.index_cast %198 : i32 to index
    %c1_176 = arith.constant 1 : index
    %c0_177 = arith.constant 0 : index
    %200 = vector.load %arg2[%c0_174, %c0_175, %199, %c1_176, %c0_177] : memref<1x4x4x4x32xbf16, #tpu.memory_space<vmem>>, vector<1x1x1x2x32xbf16>
    %201 = vector.shape_cast %200 : vector<1x1x1x2x32xbf16> to vector<1x2x32xbf16>
    %202 = vector.shape_cast %201 : vector<1x2x32xbf16> to vector<2x32xbf16>
    %c22 = arith.constant 22 : index
    %c0_178 = arith.constant 0 : index
    %c0_179 = arith.constant 0 : index
    %203 = vector.load %arg3[%c22, %c0_178, %c0_179] : memref<25x32x32xbf16, #tpu.memory_space<vmem>>, vector<1x32x32xbf16>
    %204 = vector.shape_cast %203 : vector<1x32x32xbf16> to vector<32x32xbf16>
    %cst_180 = arith.constant dense<0.000000e+00> : vector<2x32xf32>
    %205 = tpu.matmul %202, %204, %cst_180 {dimension_numbers = #tpu.dot_dimension_numbers<[1], [0], [0], [1], [0, 0, 1, 1], [], []>} : vector<2x32xbf16>, vector<32x32xbf16>, vector<2x32xf32> -> vector<2x32xf32>
    %206 = arith.addf %197, %205 : vector<2x32xf32>
    %c2_i32_181 = arith.constant 2 : i32
    %207 = arith.addi %0, %c2_i32_181 : i32
    %c0_182 = arith.constant 0 : index
    %c1_183 = arith.constant 1 : index
    %208 = arith.index_cast %207 : i32 to index
    %c1_184 = arith.constant 1 : index
    %c0_185 = arith.constant 0 : index
    %209 = vector.load %arg2[%c0_182, %c1_183, %208, %c1_184, %c0_185] : memref<1x4x4x4x32xbf16, #tpu.memory_space<vmem>>, vector<1x1x1x2x32xbf16>
    %210 = vector.shape_cast %209 : vector<1x1x1x2x32xbf16> to vector<1x2x32xbf16>
    %211 = vector.shape_cast %210 : vector<1x2x32xbf16> to vector<2x32xbf16>
    %c23 = arith.constant 23 : index
    %c0_186 = arith.constant 0 : index
    %c0_187 = arith.constant 0 : index
    %212 = vector.load %arg3[%c23, %c0_186, %c0_187] : memref<25x32x32xbf16, #tpu.memory_space<vmem>>, vector<1x32x32xbf16>
    %213 = vector.shape_cast %212 : vector<1x32x32xbf16> to vector<32x32xbf16>
    %cst_188 = arith.constant dense<0.000000e+00> : vector<2x32xf32>
    %214 = tpu.matmul %211, %213, %cst_188 {dimension_numbers = #tpu.dot_dimension_numbers<[1], [0], [0], [1], [0, 0, 1, 1], [], []>} : vector<2x32xbf16>, vector<32x32xbf16>, vector<2x32xf32> -> vector<2x32xf32>
    %215 = arith.addf %206, %214 : vector<2x32xf32>
    %c2_i32_189 = arith.constant 2 : i32
    %216 = arith.addi %0, %c2_i32_189 : i32
    %c0_190 = arith.constant 0 : index
    %c0_191 = arith.constant 0 : index
    %217 = arith.index_cast %216 : i32 to index
    %c2_192 = arith.constant 2 : index
    %c0_193 = arith.constant 0 : index
    %218 = vector.load %arg2[%c0_190, %c0_191, %217, %c2_192, %c0_193] : memref<1x4x4x4x32xbf16, #tpu.memory_space<vmem>>, vector<1x1x1x2x32xbf16>
    %219 = vector.shape_cast %218 : vector<1x1x1x2x32xbf16> to vector<1x2x32xbf16>
    %220 = vector.shape_cast %219 : vector<1x2x32xbf16> to vector<2x32xbf16>
    %c24 = arith.constant 24 : index
    %c0_194 = arith.constant 0 : index
    %c0_195 = arith.constant 0 : index
    %221 = vector.load %arg3[%c24, %c0_194, %c0_195] : memref<25x32x32xbf16, #tpu.memory_space<vmem>>, vector<1x32x32xbf16>
    %222 = vector.shape_cast %221 : vector<1x32x32xbf16> to vector<32x32xbf16>
    %cst_196 = arith.constant dense<0.000000e+00> : vector<2x32xf32>
    %223 = tpu.matmul %220, %222, %cst_196 {dimension_numbers = #tpu.dot_dimension_numbers<[1], [0], [0], [1], [0, 0, 1, 1], [], []>} : vector<2x32xbf16>, vector<32x32xbf16>, vector<2x32xf32> -> vector<2x32xf32>
    %224 = arith.addf %215, %223 : vector<2x32xf32>
    %c0_197 = arith.constant 0 : index
    %c0_198 = arith.constant 0 : index
    %225 = vector.load %arg4[%c0_197, %c0_198] : memref<1x32xf32, #tpu.memory_space<vmem>>, vector<1x32xf32>
    %226 = vector.broadcast %225 : vector<1x32xf32> to vector<2x32xf32>
    %227 = arith.addf %224, %226 : vector<2x32xf32>
    %cst_199 = arith.constant 0.000000e+00 : f32
    %228 = vector.broadcast %cst_199 : f32 to vector<2x32xf32>
    %229 = arith.maximumf %227, %228 : vector<2x32xf32>
    %230 = vector.shape_cast %229 : vector<2x32xf32> to vector<1x2x32xf32>
    %231 = arith.truncf %230 : vector<1x2x32xf32> to vector<1x2x32xbf16>
    %c0_200 = arith.constant 0 : index
    %c0_201 = arith.constant 0 : index
    %c0_202 = arith.constant 0 : index
    %c0_203 = arith.constant 0 : index
    %232 = vector.load %arg5[%c0_200, %c0_201, %c0_202, %c0_203] : memref<1x1x2x32xbf16, #tpu.memory_space<vmem>>, vector<1x1x2x32xbf16>
    %233 = vector.shape_cast %232 : vector<1x1x2x32xbf16> to vector<1x2x32xbf16>
    %234 = vector.shape_cast %231 : vector<1x2x32xbf16> to vector<1x1x2x32xbf16>
    tpu.vector_store %arg5[%c0_200, %c0_201, %c0_202, %c0_203], %234 {strides = array<i32>} : memref<1x1x2x32xbf16, #tpu.memory_space<vmem>>, vector<1x1x2x32xbf16>,
    return
  }
  func.func @transform_0(%arg0: i32, %arg1: i32) -> (i32, i32, i32, i32, i32) {
    %c0_i32 = arith.constant 0 : i32
    %c0_i32_0 = arith.constant 0 : i32
    %c0_i32_1 = arith.constant 0 : i32
    %c0_i32_2 = arith.constant 0 : i32
    %c0_i32_3 = arith.constant 0 : i32
    return %arg0, %c0_i32, %c0_i32_0, %c0_i32_1, %c0_i32_2 : i32, i32, i32, i32, i32
  }
  func.func @transform_1(%arg0: i32, %arg1: i32) -> (i32, i32, i32) {
    %c0_i32 = arith.constant 0 : i32
    %c0_i32_0 = arith.constant 0 : i32
    %c0_i32_1 = arith.constant 0 : i32
    %c0_i32_2 = arith.constant 0 : i32
    return %c0_i32, %c0_i32_0, %c0_i32_1 : i32, i32, i32
  }
  func.func @transform_2(%arg0: i32, %arg1: i32) -> (i32, i32) {
    %c0_i32 = arith.constant 0 : i32
    %c0_i32_0 = arith.constant 0 : i32
    %c0_i32_1 = arith.constant 0 : i32
    return %c0_i32, %c0_i32_0 : i32, i32
  }
  func.func @transform_3(%arg0: i32, %arg1: i32) -> (i32, i32, i32, i32) {
    %c0_i32 = arith.constant 0 : i32
    %c0_i32_0 = arith.constant 0 : i32
    %c0_i32_1 = arith.constant 0 : i32
    return %arg0, %arg1, %c0_i32, %c0_i32_0 : i32, i32, i32, i32
  }
}

module attributes {stable_mosaic.version = 11 : i64} {
  func.func @kernel(%arg0: i32, %arg1: i32, %arg2: memref<1x6x6x32xbf16, #tpu.memory_space<vmem>>, %arg3: memref<9x32x32xbf16, #tpu.memory_space<vmem>>, %arg4: memref<1x32xf32, #tpu.memory_space<vmem>>, %arg5: memref<9x32x32xbf16, #tpu.memory_space<vmem>>, %arg6: memref<1x32xf32, #tpu.memory_space<vmem>>, %arg7: memref<1x1x2x32xbf16, #tpu.memory_space<vmem>>, %arg8: memref<3x4x32xbf16, #tpu.memory_space<vmem>>) attributes {dimension_semantics = [#tpu.dimension_semantics<parallel>, #tpu.dimension_semantics<parallel>], iteration_bounds = array<i64: 2, 2>, scalar_prefetch = 0 : i64, scratch_operands = 1 : i64, tpu.core_type = #tpu.core_type<tc>, window_params = [{transform_indices = @transform_0, window_bounds = array<i64: 1, 6, 6, 32>}, {pipeline_mode = #tpu.pipeline_mode<synchronous>, transform_indices = @transform_1, window_bounds = array<i64: 9, 32, 32>}, {pipeline_mode = #tpu.pipeline_mode<synchronous>, transform_indices = @transform_2, window_bounds = array<i64: 1, 32>}, {pipeline_mode = #tpu.pipeline_mode<synchronous>, transform_indices = @transform_3, window_bounds = array<i64: 9, 32, 32>}, {pipeline_mode = #tpu.pipeline_mode<synchronous>, transform_indices = @transform_4, window_bounds = array<i64: 1, 32>}, {transform_indices = @transform_5, window_bounds = array<i64: 1, 1, 2, 32>}]} {
    %c1_i32 = arith.constant 1 : i32
    %0 = arith.muli %arg1, %c1_i32 : i32
    %c0_i32 = arith.constant 0 : i32
    %1 = arith.addi %0, %c0_i32 : i32
    %c0 = arith.constant 0 : index
    %2 = arith.index_cast %1 : i32 to index
    %c1 = arith.constant 1 : index
    %c0_0 = arith.constant 0 : index
    %3 = vector.load %arg2[%c0, %2, %c1, %c0_0] : memref<1x6x6x32xbf16, #tpu.memory_space<vmem>>, vector<1x3x2x32xbf16>
    %4 = vector.shape_cast %3 : vector<1x3x2x32xbf16> to vector<3x2x32xbf16>
    %5 = vector.shape_cast %4 : vector<3x2x32xbf16> to vector<6x32xbf16>
    %c0_1 = arith.constant 0 : index
    %c0_2 = arith.constant 0 : index
    %c0_3 = arith.constant 0 : index
    %6 = vector.load %arg3[%c0_1, %c0_2, %c0_3] : memref<9x32x32xbf16, #tpu.memory_space<vmem>>, vector<1x32x32xbf16>
    %7 = vector.shape_cast %6 : vector<1x32x32xbf16> to vector<32x32xbf16>
    %cst = arith.constant dense<0.000000e+00> : vector<6x32xf32>
    %8 = tpu.matmul %5, %7, %cst {dimension_numbers = #tpu.dot_dimension_numbers<[1], [0], [0], [1], [0, 0, 1, 1], [], []>} : vector<6x32xbf16>, vector<32x32xbf16>, vector<6x32xf32> -> vector<6x32xf32>
    %c0_i32_4 = arith.constant 0 : i32
    %9 = arith.addi %0, %c0_i32_4 : i32
    %c0_5 = arith.constant 0 : index
    %10 = arith.index_cast %9 : i32 to index
    %c2 = arith.constant 2 : index
    %c0_6 = arith.constant 0 : index
    %11 = vector.load %arg2[%c0_5, %10, %c2, %c0_6] : memref<1x6x6x32xbf16, #tpu.memory_space<vmem>>, vector<1x3x2x32xbf16>
    %12 = vector.shape_cast %11 : vector<1x3x2x32xbf16> to vector<3x2x32xbf16>
    %13 = vector.shape_cast %12 : vector<3x2x32xbf16> to vector<6x32xbf16>
    %c1_7 = arith.constant 1 : index
    %c0_8 = arith.constant 0 : index
    %c0_9 = arith.constant 0 : index
    %14 = vector.load %arg3[%c1_7, %c0_8, %c0_9] : memref<9x32x32xbf16, #tpu.memory_space<vmem>>, vector<1x32x32xbf16>
    %15 = vector.shape_cast %14 : vector<1x32x32xbf16> to vector<32x32xbf16>
    %cst_10 = arith.constant dense<0.000000e+00> : vector<6x32xf32>
    %16 = tpu.matmul %13, %15, %cst_10 {dimension_numbers = #tpu.dot_dimension_numbers<[1], [0], [0], [1], [0, 0, 1, 1], [], []>} : vector<6x32xbf16>, vector<32x32xbf16>, vector<6x32xf32> -> vector<6x32xf32>
    %17 = arith.addf %8, %16 : vector<6x32xf32>
    %c0_i32_11 = arith.constant 0 : i32
    %18 = arith.addi %0, %c0_i32_11 : i32
    %c0_12 = arith.constant 0 : index
    %19 = arith.index_cast %18 : i32 to index
    %c3 = arith.constant 3 : index
    %c0_13 = arith.constant 0 : index
    %20 = vector.load %arg2[%c0_12, %19, %c3, %c0_13] : memref<1x6x6x32xbf16, #tpu.memory_space<vmem>>, vector<1x3x2x32xbf16>
    %21 = vector.shape_cast %20 : vector<1x3x2x32xbf16> to vector<3x2x32xbf16>
    %22 = vector.shape_cast %21 : vector<3x2x32xbf16> to vector<6x32xbf16>
    %c2_14 = arith.constant 2 : index
    %c0_15 = arith.constant 0 : index
    %c0_16 = arith.constant 0 : index
    %23 = vector.load %arg3[%c2_14, %c0_15, %c0_16] : memref<9x32x32xbf16, #tpu.memory_space<vmem>>, vector<1x32x32xbf16>
    %24 = vector.shape_cast %23 : vector<1x32x32xbf16> to vector<32x32xbf16>
    %cst_17 = arith.constant dense<0.000000e+00> : vector<6x32xf32>
    %25 = tpu.matmul %22, %24, %cst_17 {dimension_numbers = #tpu.dot_dimension_numbers<[1], [0], [0], [1], [0, 0, 1, 1], [], []>} : vector<6x32xbf16>, vector<32x32xbf16>, vector<6x32xf32> -> vector<6x32xf32>
    %26 = arith.addf %17, %25 : vector<6x32xf32>
    %c1_i32_18 = arith.constant 1 : i32
    %27 = arith.addi %0, %c1_i32_18 : i32
    %c0_19 = arith.constant 0 : index
    %28 = arith.index_cast %27 : i32 to index
    %c1_20 = arith.constant 1 : index
    %c0_21 = arith.constant 0 : index
    %29 = vector.load %arg2[%c0_19, %28, %c1_20, %c0_21] : memref<1x6x6x32xbf16, #tpu.memory_space<vmem>>, vector<1x3x2x32xbf16>
    %30 = vector.shape_cast %29 : vector<1x3x2x32xbf16> to vector<3x2x32xbf16>
    %31 = vector.shape_cast %30 : vector<3x2x32xbf16> to vector<6x32xbf16>
    %c3_22 = arith.constant 3 : index
    %c0_23 = arith.constant 0 : index
    %c0_24 = arith.constant 0 : index
    %32 = vector.load %arg3[%c3_22, %c0_23, %c0_24] : memref<9x32x32xbf16, #tpu.memory_space<vmem>>, vector<1x32x32xbf16>
    %33 = vector.shape_cast %32 : vector<1x32x32xbf16> to vector<32x32xbf16>
    %cst_25 = arith.constant dense<0.000000e+00> : vector<6x32xf32>
    %34 = tpu.matmul %31, %33, %cst_25 {dimension_numbers = #tpu.dot_dimension_numbers<[1], [0], [0], [1], [0, 0, 1, 1], [], []>} : vector<6x32xbf16>, vector<32x32xbf16>, vector<6x32xf32> -> vector<6x32xf32>
    %35 = arith.addf %26, %34 : vector<6x32xf32>
    %c1_i32_26 = arith.constant 1 : i32
    %36 = arith.addi %0, %c1_i32_26 : i32
    %c0_27 = arith.constant 0 : index
    %37 = arith.index_cast %36 : i32 to index
    %c2_28 = arith.constant 2 : index
    %c0_29 = arith.constant 0 : index
    %38 = vector.load %arg2[%c0_27, %37, %c2_28, %c0_29] : memref<1x6x6x32xbf16, #tpu.memory_space<vmem>>, vector<1x3x2x32xbf16>
    %39 = vector.shape_cast %38 : vector<1x3x2x32xbf16> to vector<3x2x32xbf16>
    %40 = vector.shape_cast %39 : vector<3x2x32xbf16> to vector<6x32xbf16>
    %c4 = arith.constant 4 : index
    %c0_30 = arith.constant 0 : index
    %c0_31 = arith.constant 0 : index
    %41 = vector.load %arg3[%c4, %c0_30, %c0_31] : memref<9x32x32xbf16, #tpu.memory_space<vmem>>, vector<1x32x32xbf16>
    %42 = vector.shape_cast %41 : vector<1x32x32xbf16> to vector<32x32xbf16>
    %cst_32 = arith.constant dense<0.000000e+00> : vector<6x32xf32>
    %43 = tpu.matmul %40, %42, %cst_32 {dimension_numbers = #tpu.dot_dimension_numbers<[1], [0], [0], [1], [0, 0, 1, 1], [], []>} : vector<6x32xbf16>, vector<32x32xbf16>, vector<6x32xf32> -> vector<6x32xf32>
    %44 = arith.addf %35, %43 : vector<6x32xf32>
    %c1_i32_33 = arith.constant 1 : i32
    %45 = arith.addi %0, %c1_i32_33 : i32
    %c0_34 = arith.constant 0 : index
    %46 = arith.index_cast %45 : i32 to index
    %c3_35 = arith.constant 3 : index
    %c0_36 = arith.constant 0 : index
    %47 = vector.load %arg2[%c0_34, %46, %c3_35, %c0_36] : memref<1x6x6x32xbf16, #tpu.memory_space<vmem>>, vector<1x3x2x32xbf16>
    %48 = vector.shape_cast %47 : vector<1x3x2x32xbf16> to vector<3x2x32xbf16>
    %49 = vector.shape_cast %48 : vector<3x2x32xbf16> to vector<6x32xbf16>
    %c5 = arith.constant 5 : index
    %c0_37 = arith.constant 0 : index
    %c0_38 = arith.constant 0 : index
    %50 = vector.load %arg3[%c5, %c0_37, %c0_38] : memref<9x32x32xbf16, #tpu.memory_space<vmem>>, vector<1x32x32xbf16>
    %51 = vector.shape_cast %50 : vector<1x32x32xbf16> to vector<32x32xbf16>
    %cst_39 = arith.constant dense<0.000000e+00> : vector<6x32xf32>
    %52 = tpu.matmul %49, %51, %cst_39 {dimension_numbers = #tpu.dot_dimension_numbers<[1], [0], [0], [1], [0, 0, 1, 1], [], []>} : vector<6x32xbf16>, vector<32x32xbf16>, vector<6x32xf32> -> vector<6x32xf32>
    %53 = arith.addf %44, %52 : vector<6x32xf32>
    %c2_i32 = arith.constant 2 : i32
    %54 = arith.addi %0, %c2_i32 : i32
    %c0_40 = arith.constant 0 : index
    %55 = arith.index_cast %54 : i32 to index
    %c1_41 = arith.constant 1 : index
    %c0_42 = arith.constant 0 : index
    %56 = vector.load %arg2[%c0_40, %55, %c1_41, %c0_42] : memref<1x6x6x32xbf16, #tpu.memory_space<vmem>>, vector<1x3x2x32xbf16>
    %57 = vector.shape_cast %56 : vector<1x3x2x32xbf16> to vector<3x2x32xbf16>
    %58 = vector.shape_cast %57 : vector<3x2x32xbf16> to vector<6x32xbf16>
    %c6 = arith.constant 6 : index
    %c0_43 = arith.constant 0 : index
    %c0_44 = arith.constant 0 : index
    %59 = vector.load %arg3[%c6, %c0_43, %c0_44] : memref<9x32x32xbf16, #tpu.memory_space<vmem>>, vector<1x32x32xbf16>
    %60 = vector.shape_cast %59 : vector<1x32x32xbf16> to vector<32x32xbf16>
    %cst_45 = arith.constant dense<0.000000e+00> : vector<6x32xf32>
    %61 = tpu.matmul %58, %60, %cst_45 {dimension_numbers = #tpu.dot_dimension_numbers<[1], [0], [0], [1], [0, 0, 1, 1], [], []>} : vector<6x32xbf16>, vector<32x32xbf16>, vector<6x32xf32> -> vector<6x32xf32>
    %62 = arith.addf %53, %61 : vector<6x32xf32>
    %c2_i32_46 = arith.constant 2 : i32
    %63 = arith.addi %0, %c2_i32_46 : i32
    %c0_47 = arith.constant 0 : index
    %64 = arith.index_cast %63 : i32 to index
    %c2_48 = arith.constant 2 : index
    %c0_49 = arith.constant 0 : index
    %65 = vector.load %arg2[%c0_47, %64, %c2_48, %c0_49] : memref<1x6x6x32xbf16, #tpu.memory_space<vmem>>, vector<1x3x2x32xbf16>
    %66 = vector.shape_cast %65 : vector<1x3x2x32xbf16> to vector<3x2x32xbf16>
    %67 = vector.shape_cast %66 : vector<3x2x32xbf16> to vector<6x32xbf16>
    %c7 = arith.constant 7 : index
    %c0_50 = arith.constant 0 : index
    %c0_51 = arith.constant 0 : index
    %68 = vector.load %arg3[%c7, %c0_50, %c0_51] : memref<9x32x32xbf16, #tpu.memory_space<vmem>>, vector<1x32x32xbf16>
    %69 = vector.shape_cast %68 : vector<1x32x32xbf16> to vector<32x32xbf16>
    %cst_52 = arith.constant dense<0.000000e+00> : vector<6x32xf32>
    %70 = tpu.matmul %67, %69, %cst_52 {dimension_numbers = #tpu.dot_dimension_numbers<[1], [0], [0], [1], [0, 0, 1, 1], [], []>} : vector<6x32xbf16>, vector<32x32xbf16>, vector<6x32xf32> -> vector<6x32xf32>
    %71 = arith.addf %62, %70 : vector<6x32xf32>
    %c2_i32_53 = arith.constant 2 : i32
    %72 = arith.addi %0, %c2_i32_53 : i32
    %c0_54 = arith.constant 0 : index
    %73 = arith.index_cast %72 : i32 to index
    %c3_55 = arith.constant 3 : index
    %c0_56 = arith.constant 0 : index
    %74 = vector.load %arg2[%c0_54, %73, %c3_55, %c0_56] : memref<1x6x6x32xbf16, #tpu.memory_space<vmem>>, vector<1x3x2x32xbf16>
    %75 = vector.shape_cast %74 : vector<1x3x2x32xbf16> to vector<3x2x32xbf16>
    %76 = vector.shape_cast %75 : vector<3x2x32xbf16> to vector<6x32xbf16>
    %c8 = arith.constant 8 : index
    %c0_57 = arith.constant 0 : index
    %c0_58 = arith.constant 0 : index
    %77 = vector.load %arg3[%c8, %c0_57, %c0_58] : memref<9x32x32xbf16, #tpu.memory_space<vmem>>, vector<1x32x32xbf16>
    %78 = vector.shape_cast %77 : vector<1x32x32xbf16> to vector<32x32xbf16>
    %cst_59 = arith.constant dense<0.000000e+00> : vector<6x32xf32>
    %79 = tpu.matmul %76, %78, %cst_59 {dimension_numbers = #tpu.dot_dimension_numbers<[1], [0], [0], [1], [0, 0, 1, 1], [], []>} : vector<6x32xbf16>, vector<32x32xbf16>, vector<6x32xf32> -> vector<6x32xf32>
    %80 = arith.addf %71, %79 : vector<6x32xf32>
    %c0_60 = arith.constant 0 : index
    %c0_61 = arith.constant 0 : index
    %81 = vector.load %arg4[%c0_60, %c0_61] : memref<1x32xf32, #tpu.memory_space<vmem>>, vector<1x32xf32>
    %82 = vector.broadcast %81 : vector<1x32xf32> to vector<6x32xf32>
    %83 = arith.addf %80, %82 : vector<6x32xf32>
    %cst_62 = arith.constant 0.000000e+00 : f32
    %84 = vector.broadcast %cst_62 : f32 to vector<6x32xf32>
    %85 = arith.cmpf oge, %83, %84 : vector<6x32xf32>
    %cst_63 = arith.constant 2.000000e-01 : f32
    %86 = vector.broadcast %cst_63 : f32 to vector<6x32xf32>
    %87 = arith.mulf %83, %86 : vector<6x32xf32>
    %88 = arith.select %85, %83, %87 : vector<6x32xi1>, vector<6x32xf32>
    %89 = vector.shape_cast %88 : vector<6x32xf32> to vector<3x2x32xf32>
    %90 = arith.truncf %89 : vector<3x2x32xf32> to vector<3x2x32xbf16>
    %c0_64 = arith.constant 0 : index
    %c1_65 = arith.constant 1 : index
    %c0_66 = arith.constant 0 : index
    %91 = vector.load %arg8[%c0_64, %c1_65, %c0_66] : memref<3x4x32xbf16, #tpu.memory_space<vmem>>, vector<3x2x32xbf16>
    tpu.vector_store %arg8[%c0_64, %c1_65, %c0_66], %90 {strides = array<i32>} : memref<3x4x32xbf16, #tpu.memory_space<vmem>>, vector<3x2x32xbf16>,
    %cst_67 = arith.constant 0.000000e+00 : bf16
    %92 = vector.broadcast %cst_67 : bf16 to vector<3x1x32xbf16>
    %c0_68 = arith.constant 0 : index
    %c0_69 = arith.constant 0 : index
    %c0_70 = arith.constant 0 : index
    %93 = vector.load %arg8[%c0_68, %c0_69, %c0_70] : memref<3x4x32xbf16, #tpu.memory_space<vmem>>, vector<3x1x32xbf16>
    tpu.vector_store %arg8[%c0_68, %c0_69, %c0_70], %92 {strides = array<i32>} : memref<3x4x32xbf16, #tpu.memory_space<vmem>>, vector<3x1x32xbf16>,
    %c0_71 = arith.constant 0 : index
    %c3_72 = arith.constant 3 : index
    %c0_73 = arith.constant 0 : index
    %94 = vector.load %arg8[%c0_71, %c3_72, %c0_73] : memref<3x4x32xbf16, #tpu.memory_space<vmem>>, vector<3x1x32xbf16>
    tpu.vector_store %arg8[%c0_71, %c3_72, %c0_73], %92 {strides = array<i32>} : memref<3x4x32xbf16, #tpu.memory_space<vmem>>, vector<3x1x32xbf16>,
    %cst_74 = arith.constant 0.000000e+00 : bf16
    %95 = vector.broadcast %cst_74 : bf16 to vector<1x4x32xbf16>
    %c0_i32_75 = arith.constant 0 : i32
    %96 = arith.cmpi eq, %arg1, %c0_i32_75 : i32
    %97 = arith.extui %96 : i1 to i32
    %c0_i32_76 = arith.constant 0 : i32
    %98 = arith.cmpi ne, %97, %c0_i32_76 : i32
    scf.if %98 {
      %c0_154 = arith.constant 0 : index
      %c0_155 = arith.constant 0 : index
      %c0_156 = arith.constant 0 : index
      %175 = vector.load %arg8[%c0_154, %c0_155, %c0_156] : memref<3x4x32xbf16, #tpu.memory_space<vmem>>, vector<1x4x32xbf16>
      tpu.vector_store %arg8[%c0_154, %c0_155, %c0_156], %95 {strides = array<i32>} : memref<3x4x32xbf16, #tpu.memory_space<vmem>>, vector<1x4x32xbf16>,
    } else {
    }
    %c1_i32_77 = arith.constant 1 : i32
    %99 = arith.cmpi eq, %arg1, %c1_i32_77 : i32
    %100 = arith.extui %99 : i1 to i32
    %c0_i32_78 = arith.constant 0 : i32
    %101 = arith.cmpi ne, %100, %c0_i32_78 : i32
    scf.if %101 {
      %c2_154 = arith.constant 2 : index
      %c0_155 = arith.constant 0 : index
      %c0_156 = arith.constant 0 : index
      %175 = vector.load %arg8[%c2_154, %c0_155, %c0_156] : memref<3x4x32xbf16, #tpu.memory_space<vmem>>, vector<1x4x32xbf16>
      tpu.vector_store %arg8[%c2_154, %c0_155, %c0_156], %95 {strides = array<i32>} : memref<3x4x32xbf16, #tpu.memory_space<vmem>>, vector<1x4x32xbf16>,
    } else {
    }
    %c0_79 = arith.constant 0 : index
    %c0_80 = arith.constant 0 : index
    %c0_81 = arith.constant 0 : index
    %102 = vector.load %arg8[%c0_79, %c0_80, %c0_81] : memref<3x4x32xbf16, #tpu.memory_space<vmem>>, vector<1x2x32xbf16>
    %103 = vector.shape_cast %102 : vector<1x2x32xbf16> to vector<2x32xbf16>
    %c0_82 = arith.constant 0 : index
    %c0_83 = arith.constant 0 : index
    %c0_84 = arith.constant 0 : index
    %104 = vector.load %arg5[%c0_82, %c0_83, %c0_84] : memref<9x32x32xbf16, #tpu.memory_space<vmem>>, vector<1x32x32xbf16>
    %105 = vector.shape_cast %104 : vector<1x32x32xbf16> to vector<32x32xbf16>
    %cst_85 = arith.constant dense<0.000000e+00> : vector<2x32xf32>
    %106 = tpu.matmul %103, %105, %cst_85 {dimension_numbers = #tpu.dot_dimension_numbers<[1], [0], [0], [1], [0, 0, 1, 1], [], []>} : vector<2x32xbf16>, vector<32x32xbf16>, vector<2x32xf32> -> vector<2x32xf32>
    %c0_86 = arith.constant 0 : index
    %c1_87 = arith.constant 1 : index
    %c0_88 = arith.constant 0 : index
    %107 = vector.load %arg8[%c0_86, %c1_87, %c0_88] : memref<3x4x32xbf16, #tpu.memory_space<vmem>>, vector<1x2x32xbf16>
    %108 = vector.shape_cast %107 : vector<1x2x32xbf16> to vector<2x32xbf16>
    %c1_89 = arith.constant 1 : index
    %c0_90 = arith.constant 0 : index
    %c0_91 = arith.constant 0 : index
    %109 = vector.load %arg5[%c1_89, %c0_90, %c0_91] : memref<9x32x32xbf16, #tpu.memory_space<vmem>>, vector<1x32x32xbf16>
    %110 = vector.shape_cast %109 : vector<1x32x32xbf16> to vector<32x32xbf16>
    %cst_92 = arith.constant dense<0.000000e+00> : vector<2x32xf32>
    %111 = tpu.matmul %108, %110, %cst_92 {dimension_numbers = #tpu.dot_dimension_numbers<[1], [0], [0], [1], [0, 0, 1, 1], [], []>} : vector<2x32xbf16>, vector<32x32xbf16>, vector<2x32xf32> -> vector<2x32xf32>
    %112 = arith.addf %106, %111 : vector<2x32xf32>
    %c0_93 = arith.constant 0 : index
    %c2_94 = arith.constant 2 : index
    %c0_95 = arith.constant 0 : index
    %113 = vector.load %arg8[%c0_93, %c2_94, %c0_95] : memref<3x4x32xbf16, #tpu.memory_space<vmem>>, vector<1x2x32xbf16>
    %114 = vector.shape_cast %113 : vector<1x2x32xbf16> to vector<2x32xbf16>
    %c2_96 = arith.constant 2 : index
    %c0_97 = arith.constant 0 : index
    %c0_98 = arith.constant 0 : index
    %115 = vector.load %arg5[%c2_96, %c0_97, %c0_98] : memref<9x32x32xbf16, #tpu.memory_space<vmem>>, vector<1x32x32xbf16>
    %116 = vector.shape_cast %115 : vector<1x32x32xbf16> to vector<32x32xbf16>
    %cst_99 = arith.constant dense<0.000000e+00> : vector<2x32xf32>
    %117 = tpu.matmul %114, %116, %cst_99 {dimension_numbers = #tpu.dot_dimension_numbers<[1], [0], [0], [1], [0, 0, 1, 1], [], []>} : vector<2x32xbf16>, vector<32x32xbf16>, vector<2x32xf32> -> vector<2x32xf32>
    %118 = arith.addf %112, %117 : vector<2x32xf32>
    %c1_100 = arith.constant 1 : index
    %c0_101 = arith.constant 0 : index
    %c0_102 = arith.constant 0 : index
    %119 = vector.load %arg8[%c1_100, %c0_101, %c0_102] : memref<3x4x32xbf16, #tpu.memory_space<vmem>>, vector<1x2x32xbf16>
    %120 = vector.shape_cast %119 : vector<1x2x32xbf16> to vector<2x32xbf16>
    %c3_103 = arith.constant 3 : index
    %c0_104 = arith.constant 0 : index
    %c0_105 = arith.constant 0 : index
    %121 = vector.load %arg5[%c3_103, %c0_104, %c0_105] : memref<9x32x32xbf16, #tpu.memory_space<vmem>>, vector<1x32x32xbf16>
    %122 = vector.shape_cast %121 : vector<1x32x32xbf16> to vector<32x32xbf16>
    %cst_106 = arith.constant dense<0.000000e+00> : vector<2x32xf32>
    %123 = tpu.matmul %120, %122, %cst_106 {dimension_numbers = #tpu.dot_dimension_numbers<[1], [0], [0], [1], [0, 0, 1, 1], [], []>} : vector<2x32xbf16>, vector<32x32xbf16>, vector<2x32xf32> -> vector<2x32xf32>
    %124 = arith.addf %118, %123 : vector<2x32xf32>
    %c1_107 = arith.constant 1 : index
    %c1_108 = arith.constant 1 : index
    %c0_109 = arith.constant 0 : index
    %125 = vector.load %arg8[%c1_107, %c1_108, %c0_109] : memref<3x4x32xbf16, #tpu.memory_space<vmem>>, vector<1x2x32xbf16>
    %126 = vector.shape_cast %125 : vector<1x2x32xbf16> to vector<2x32xbf16>
    %c4_110 = arith.constant 4 : index
    %c0_111 = arith.constant 0 : index
    %c0_112 = arith.constant 0 : index
    %127 = vector.load %arg5[%c4_110, %c0_111, %c0_112] : memref<9x32x32xbf16, #tpu.memory_space<vmem>>, vector<1x32x32xbf16>
    %128 = vector.shape_cast %127 : vector<1x32x32xbf16> to vector<32x32xbf16>
    %cst_113 = arith.constant dense<0.000000e+00> : vector<2x32xf32>
    %129 = tpu.matmul %126, %128, %cst_113 {dimension_numbers = #tpu.dot_dimension_numbers<[1], [0], [0], [1], [0, 0, 1, 1], [], []>} : vector<2x32xbf16>, vector<32x32xbf16>, vector<2x32xf32> -> vector<2x32xf32>
    %130 = arith.addf %124, %129 : vector<2x32xf32>
    %c1_114 = arith.constant 1 : index
    %c2_115 = arith.constant 2 : index
    %c0_116 = arith.constant 0 : index
    %131 = vector.load %arg8[%c1_114, %c2_115, %c0_116] : memref<3x4x32xbf16, #tpu.memory_space<vmem>>, vector<1x2x32xbf16>
    %132 = vector.shape_cast %131 : vector<1x2x32xbf16> to vector<2x32xbf16>
    %c5_117 = arith.constant 5 : index
    %c0_118 = arith.constant 0 : index
    %c0_119 = arith.constant 0 : index
    %133 = vector.load %arg5[%c5_117, %c0_118, %c0_119] : memref<9x32x32xbf16, #tpu.memory_space<vmem>>, vector<1x32x32xbf16>
    %134 = vector.shape_cast %133 : vector<1x32x32xbf16> to vector<32x32xbf16>
    %cst_120 = arith.constant dense<0.000000e+00> : vector<2x32xf32>
    %135 = tpu.matmul %132, %134, %cst_120 {dimension_numbers = #tpu.dot_dimension_numbers<[1], [0], [0], [1], [0, 0, 1, 1], [], []>} : vector<2x32xbf16>, vector<32x32xbf16>, vector<2x32xf32> -> vector<2x32xf32>
    %136 = arith.addf %130, %135 : vector<2x32xf32>
    %c2_121 = arith.constant 2 : index
    %c0_122 = arith.constant 0 : index
    %c0_123 = arith.constant 0 : index
    %137 = vector.load %arg8[%c2_121, %c0_122, %c0_123] : memref<3x4x32xbf16, #tpu.memory_space<vmem>>, vector<1x2x32xbf16>
    %138 = vector.shape_cast %137 : vector<1x2x32xbf16> to vector<2x32xbf16>
    %c6_124 = arith.constant 6 : index
    %c0_125 = arith.constant 0 : index
    %c0_126 = arith.constant 0 : index
    %139 = vector.load %arg5[%c6_124, %c0_125, %c0_126] : memref<9x32x32xbf16, #tpu.memory_space<vmem>>, vector<1x32x32xbf16>
    %140 = vector.shape_cast %139 : vector<1x32x32xbf16> to vector<32x32xbf16>
    %cst_127 = arith.constant dense<0.000000e+00> : vector<2x32xf32>
    %141 = tpu.matmul %138, %140, %cst_127 {dimension_numbers = #tpu.dot_dimension_numbers<[1], [0], [0], [1], [0, 0, 1, 1], [], []>} : vector<2x32xbf16>, vector<32x32xbf16>, vector<2x32xf32> -> vector<2x32xf32>
    %142 = arith.addf %136, %141 : vector<2x32xf32>
    %c2_128 = arith.constant 2 : index
    %c1_129 = arith.constant 1 : index
    %c0_130 = arith.constant 0 : index
    %143 = vector.load %arg8[%c2_128, %c1_129, %c0_130] : memref<3x4x32xbf16, #tpu.memory_space<vmem>>, vector<1x2x32xbf16>
    %144 = vector.shape_cast %143 : vector<1x2x32xbf16> to vector<2x32xbf16>
    %c7_131 = arith.constant 7 : index
    %c0_132 = arith.constant 0 : index
    %c0_133 = arith.constant 0 : index
    %145 = vector.load %arg5[%c7_131, %c0_132, %c0_133] : memref<9x32x32xbf16, #tpu.memory_space<vmem>>, vector<1x32x32xbf16>
    %146 = vector.shape_cast %145 : vector<1x32x32xbf16> to vector<32x32xbf16>
    %cst_134 = arith.constant dense<0.000000e+00> : vector<2x32xf32>
    %147 = tpu.matmul %144, %146, %cst_134 {dimension_numbers = #tpu.dot_dimension_numbers<[1], [0], [0], [1], [0, 0, 1, 1], [], []>} : vector<2x32xbf16>, vector<32x32xbf16>, vector<2x32xf32> -> vector<2x32xf32>
    %148 = arith.addf %142, %147 : vector<2x32xf32>
    %c2_135 = arith.constant 2 : index
    %c2_136 = arith.constant 2 : index
    %c0_137 = arith.constant 0 : index
    %149 = vector.load %arg8[%c2_135, %c2_136, %c0_137] : memref<3x4x32xbf16, #tpu.memory_space<vmem>>, vector<1x2x32xbf16>
    %150 = vector.shape_cast %149 : vector<1x2x32xbf16> to vector<2x32xbf16>
    %c8_138 = arith.constant 8 : index
    %c0_139 = arith.constant 0 : index
    %c0_140 = arith.constant 0 : index
    %151 = vector.load %arg5[%c8_138, %c0_139, %c0_140] : memref<9x32x32xbf16, #tpu.memory_space<vmem>>, vector<1x32x32xbf16>
    %152 = vector.shape_cast %151 : vector<1x32x32xbf16> to vector<32x32xbf16>
    %cst_141 = arith.constant dense<0.000000e+00> : vector<2x32xf32>
    %153 = tpu.matmul %150, %152, %cst_141 {dimension_numbers = #tpu.dot_dimension_numbers<[1], [0], [0], [1], [0, 0, 1, 1], [], []>} : vector<2x32xbf16>, vector<32x32xbf16>, vector<2x32xf32> -> vector<2x32xf32>
    %154 = arith.addf %148, %153 : vector<2x32xf32>
    %c0_142 = arith.constant 0 : index
    %c0_143 = arith.constant 0 : index
    %155 = vector.load %arg6[%c0_142, %c0_143] : memref<1x32xf32, #tpu.memory_space<vmem>>, vector<1x32xf32>
    %156 = vector.broadcast %155 : vector<1x32xf32> to vector<2x32xf32>
    %157 = arith.addf %154, %156 : vector<2x32xf32>
    %cst_144 = arith.constant 0.000000e+00 : f32
    %158 = vector.broadcast %cst_144 : f32 to vector<2x32xf32>
    %159 = arith.cmpf oge, %157, %158 : vector<2x32xf32>
    %cst_145 = arith.constant 2.000000e-01 : f32
    %160 = vector.broadcast %cst_145 : f32 to vector<2x32xf32>
    %161 = arith.mulf %157, %160 : vector<2x32xf32>
    %162 = arith.select %159, %157, %161 : vector<2x32xi1>, vector<2x32xf32>
    %c2_i32_146 = arith.constant 2 : i32
    %163 = arith.addi %0, %c2_i32_146 : i32
    %c0_147 = arith.constant 0 : index
    %164 = arith.index_cast %163 : i32 to index
    %c2_148 = arith.constant 2 : index
    %c0_149 = arith.constant 0 : index
    %165 = vector.load %arg2[%c0_147, %164, %c2_148, %c0_149] : memref<1x6x6x32xbf16, #tpu.memory_space<vmem>>, vector<1x1x2x32xbf16>
    %166 = vector.shape_cast %165 : vector<1x1x2x32xbf16> to vector<1x2x32xbf16>
    %167 = arith.extf %166 : vector<1x2x32xbf16> to vector<1x2x32xf32>
    %168 = vector.shape_cast %167 : vector<1x2x32xf32> to vector<2x32xf32>
    %169 = arith.addf %162, %168 : vector<2x32xf32>
    %170 = vector.shape_cast %169 : vector<2x32xf32> to vector<1x2x32xf32>
    %171 = arith.truncf %170 : vector<1x2x32xf32> to vector<1x2x32xbf16>
    %c0_150 = arith.constant 0 : index
    %c0_151 = arith.constant 0 : index
    %c0_152 = arith.constant 0 : index
    %c0_153 = arith.constant 0 : index
    %172 = vector.load %arg7[%c0_150, %c0_151, %c0_152, %c0_153] : memref<1x1x2x32xbf16, #tpu.memory_space<vmem>>, vector<1x1x2x32xbf16>
    %173 = vector.shape_cast %172 : vector<1x1x2x32xbf16> to vector<1x2x32xbf16>
    %174 = vector.shape_cast %171 : vector<1x2x32xbf16> to vector<1x1x2x32xbf16>
    tpu.vector_store %arg7[%c0_150, %c0_151, %c0_152, %c0_153], %174 {strides = array<i32>} : memref<1x1x2x32xbf16, #tpu.memory_space<vmem>>, vector<1x1x2x32xbf16>,
    return
  }
  func.func @transform_0(%arg0: i32, %arg1: i32) -> (i32, i32, i32, i32) {
    %c0_i32 = arith.constant 0 : i32
    %c0_i32_0 = arith.constant 0 : i32
    %c0_i32_1 = arith.constant 0 : i32
    %c0_i32_2 = arith.constant 0 : i32
    return %arg0, %c0_i32, %c0_i32_0, %c0_i32_1 : i32, i32, i32, i32
  }
  func.func @transform_1(%arg0: i32, %arg1: i32) -> (i32, i32, i32) {
    %c0_i32 = arith.constant 0 : i32
    %c0_i32_0 = arith.constant 0 : i32
    %c0_i32_1 = arith.constant 0 : i32
    %c0_i32_2 = arith.constant 0 : i32
    return %c0_i32, %c0_i32_0, %c0_i32_1 : i32, i32, i32
  }
  func.func @transform_2(%arg0: i32, %arg1: i32) -> (i32, i32) {
    %c0_i32 = arith.constant 0 : i32
    %c0_i32_0 = arith.constant 0 : i32
    %c0_i32_1 = arith.constant 0 : i32
    return %c0_i32, %c0_i32_0 : i32, i32
  }
  func.func @transform_3(%arg0: i32, %arg1: i32) -> (i32, i32, i32) {
    %c0_i32 = arith.constant 0 : i32
    %c0_i32_0 = arith.constant 0 : i32
    %c0_i32_1 = arith.constant 0 : i32
    %c0_i32_2 = arith.constant 0 : i32
    return %c0_i32, %c0_i32_0, %c0_i32_1 : i32, i32, i32
  }
  func.func @transform_4(%arg0: i32, %arg1: i32) -> (i32, i32) {
    %c0_i32 = arith.constant 0 : i32
    %c0_i32_0 = arith.constant 0 : i32
    %c0_i32_1 = arith.constant 0 : i32
    return %c0_i32, %c0_i32_0 : i32, i32
  }
  func.func @transform_5(%arg0: i32, %arg1: i32) -> (i32, i32, i32, i32) {
    %c0_i32 = arith.constant 0 : i32
    %c0_i32_0 = arith.constant 0 : i32
    %c0_i32_1 = arith.constant 0 : i32
    return %arg0, %arg1, %c0_i32, %c0_i32_0 : i32, i32, i32, i32
  }
}

module attributes {stable_mosaic.version = 11 : i64} {
  func.func @kernel(%arg0: i32, %arg1: i32, %arg2: memref<1x4x4x32xbf16, #tpu.memory_space<vmem>>, %arg3: memref<9x32x32xbf16, #tpu.memory_space<vmem>>, %arg4: memref<1x32xf32, #tpu.memory_space<vmem>>, %arg5: memref<1x1x2x32xf32, #tpu.memory_space<vmem>>) attributes {dimension_semantics = [#tpu.dimension_semantics<parallel>, #tpu.dimension_semantics<parallel>], iteration_bounds = array<i64: 2, 2>, scalar_prefetch = 0 : i64, scratch_operands = 0 : i64, tpu.core_type = #tpu.core_type<tc>, window_params = [{transform_indices = @transform_0, window_bounds = array<i64: 1, 4, 4, 32>}, {pipeline_mode = #tpu.pipeline_mode<synchronous>, transform_indices = @transform_1, window_bounds = array<i64: 9, 32, 32>}, {pipeline_mode = #tpu.pipeline_mode<synchronous>, transform_indices = @transform_2, window_bounds = array<i64: 1, 32>}, {transform_indices = @transform_3, window_bounds = array<i64: 1, 1, 2, 32>}]} {
    %c1_i32 = arith.constant 1 : i32
    %0 = arith.muli %arg1, %c1_i32 : i32
    %c0_i32 = arith.constant 0 : i32
    %1 = arith.addi %0, %c0_i32 : i32
    %c0 = arith.constant 0 : index
    %2 = arith.index_cast %1 : i32 to index
    %c0_0 = arith.constant 0 : index
    %c0_1 = arith.constant 0 : index
    %3 = vector.load %arg2[%c0, %2, %c0_0, %c0_1] : memref<1x4x4x32xbf16, #tpu.memory_space<vmem>>, vector<1x1x2x32xbf16>
    %4 = vector.shape_cast %3 : vector<1x1x2x32xbf16> to vector<1x2x32xbf16>
    %5 = vector.shape_cast %4 : vector<1x2x32xbf16> to vector<2x32xbf16>
    %c0_2 = arith.constant 0 : index
    %c0_3 = arith.constant 0 : index
    %c0_4 = arith.constant 0 : index
    %6 = vector.load %arg3[%c0_2, %c0_3, %c0_4] : memref<9x32x32xbf16, #tpu.memory_space<vmem>>, vector<1x32x32xbf16>
    %7 = vector.shape_cast %6 : vector<1x32x32xbf16> to vector<32x32xbf16>
    %cst = arith.constant dense<0.000000e+00> : vector<2x32xf32>
    %8 = tpu.matmul %5, %7, %cst {dimension_numbers = #tpu.dot_dimension_numbers<[1], [0], [0], [1], [0, 0, 1, 1], [], []>} : vector<2x32xbf16>, vector<32x32xbf16>, vector<2x32xf32> -> vector<2x32xf32>
    %c0_i32_5 = arith.constant 0 : i32
    %9 = arith.addi %0, %c0_i32_5 : i32
    %c0_6 = arith.constant 0 : index
    %10 = arith.index_cast %9 : i32 to index
    %c1 = arith.constant 1 : index
    %c0_7 = arith.constant 0 : index
    %11 = vector.load %arg2[%c0_6, %10, %c1, %c0_7] : memref<1x4x4x32xbf16, #tpu.memory_space<vmem>>, vector<1x1x2x32xbf16>
    %12 = vector.shape_cast %11 : vector<1x1x2x32xbf16> to vector<1x2x32xbf16>
    %13 = vector.shape_cast %12 : vector<1x2x32xbf16> to vector<2x32xbf16>
    %c1_8 = arith.constant 1 : index
    %c0_9 = arith.constant 0 : index
    %c0_10 = arith.constant 0 : index
    %14 = vector.load %arg3[%c1_8, %c0_9, %c0_10] : memref<9x32x32xbf16, #tpu.memory_space<vmem>>, vector<1x32x32xbf16>
    %15 = vector.shape_cast %14 : vector<1x32x32xbf16> to vector<32x32xbf16>
    %cst_11 = arith.constant dense<0.000000e+00> : vector<2x32xf32>
    %16 = tpu.matmul %13, %15, %cst_11 {dimension_numbers = #tpu.dot_dimension_numbers<[1], [0], [0], [1], [0, 0, 1, 1], [], []>} : vector<2x32xbf16>, vector<32x32xbf16>, vector<2x32xf32> -> vector<2x32xf32>
    %17 = arith.addf %8, %16 : vector<2x32xf32>
    %c0_i32_12 = arith.constant 0 : i32
    %18 = arith.addi %0, %c0_i32_12 : i32
    %c0_13 = arith.constant 0 : index
    %19 = arith.index_cast %18 : i32 to index
    %c2 = arith.constant 2 : index
    %c0_14 = arith.constant 0 : index
    %20 = vector.load %arg2[%c0_13, %19, %c2, %c0_14] : memref<1x4x4x32xbf16, #tpu.memory_space<vmem>>, vector<1x1x2x32xbf16>
    %21 = vector.shape_cast %20 : vector<1x1x2x32xbf16> to vector<1x2x32xbf16>
    %22 = vector.shape_cast %21 : vector<1x2x32xbf16> to vector<2x32xbf16>
    %c2_15 = arith.constant 2 : index
    %c0_16 = arith.constant 0 : index
    %c0_17 = arith.constant 0 : index
    %23 = vector.load %arg3[%c2_15, %c0_16, %c0_17] : memref<9x32x32xbf16, #tpu.memory_space<vmem>>, vector<1x32x32xbf16>
    %24 = vector.shape_cast %23 : vector<1x32x32xbf16> to vector<32x32xbf16>
    %cst_18 = arith.constant dense<0.000000e+00> : vector<2x32xf32>
    %25 = tpu.matmul %22, %24, %cst_18 {dimension_numbers = #tpu.dot_dimension_numbers<[1], [0], [0], [1], [0, 0, 1, 1], [], []>} : vector<2x32xbf16>, vector<32x32xbf16>, vector<2x32xf32> -> vector<2x32xf32>
    %26 = arith.addf %17, %25 : vector<2x32xf32>
    %c1_i32_19 = arith.constant 1 : i32
    %27 = arith.addi %0, %c1_i32_19 : i32
    %c0_20 = arith.constant 0 : index
    %28 = arith.index_cast %27 : i32 to index
    %c0_21 = arith.constant 0 : index
    %c0_22 = arith.constant 0 : index
    %29 = vector.load %arg2[%c0_20, %28, %c0_21, %c0_22] : memref<1x4x4x32xbf16, #tpu.memory_space<vmem>>, vector<1x1x2x32xbf16>
    %30 = vector.shape_cast %29 : vector<1x1x2x32xbf16> to vector<1x2x32xbf16>
    %31 = vector.shape_cast %30 : vector<1x2x32xbf16> to vector<2x32xbf16>
    %c3 = arith.constant 3 : index
    %c0_23 = arith.constant 0 : index
    %c0_24 = arith.constant 0 : index
    %32 = vector.load %arg3[%c3, %c0_23, %c0_24] : memref<9x32x32xbf16, #tpu.memory_space<vmem>>, vector<1x32x32xbf16>
    %33 = vector.shape_cast %32 : vector<1x32x32xbf16> to vector<32x32xbf16>
    %cst_25 = arith.constant dense<0.000000e+00> : vector<2x32xf32>
    %34 = tpu.matmul %31, %33, %cst_25 {dimension_numbers = #tpu.dot_dimension_numbers<[1], [0], [0], [1], [0, 0, 1, 1], [], []>} : vector<2x32xbf16>, vector<32x32xbf16>, vector<2x32xf32> -> vector<2x32xf32>
    %35 = arith.addf %26, %34 : vector<2x32xf32>
    %c1_i32_26 = arith.constant 1 : i32
    %36 = arith.addi %0, %c1_i32_26 : i32
    %c0_27 = arith.constant 0 : index
    %37 = arith.index_cast %36 : i32 to index
    %c1_28 = arith.constant 1 : index
    %c0_29 = arith.constant 0 : index
    %38 = vector.load %arg2[%c0_27, %37, %c1_28, %c0_29] : memref<1x4x4x32xbf16, #tpu.memory_space<vmem>>, vector<1x1x2x32xbf16>
    %39 = vector.shape_cast %38 : vector<1x1x2x32xbf16> to vector<1x2x32xbf16>
    %40 = vector.shape_cast %39 : vector<1x2x32xbf16> to vector<2x32xbf16>
    %c4 = arith.constant 4 : index
    %c0_30 = arith.constant 0 : index
    %c0_31 = arith.constant 0 : index
    %41 = vector.load %arg3[%c4, %c0_30, %c0_31] : memref<9x32x32xbf16, #tpu.memory_space<vmem>>, vector<1x32x32xbf16>
    %42 = vector.shape_cast %41 : vector<1x32x32xbf16> to vector<32x32xbf16>
    %cst_32 = arith.constant dense<0.000000e+00> : vector<2x32xf32>
    %43 = tpu.matmul %40, %42, %cst_32 {dimension_numbers = #tpu.dot_dimension_numbers<[1], [0], [0], [1], [0, 0, 1, 1], [], []>} : vector<2x32xbf16>, vector<32x32xbf16>, vector<2x32xf32> -> vector<2x32xf32>
    %44 = arith.addf %35, %43 : vector<2x32xf32>
    %c1_i32_33 = arith.constant 1 : i32
    %45 = arith.addi %0, %c1_i32_33 : i32
    %c0_34 = arith.constant 0 : index
    %46 = arith.index_cast %45 : i32 to index
    %c2_35 = arith.constant 2 : index
    %c0_36 = arith.constant 0 : index
    %47 = vector.load %arg2[%c0_34, %46, %c2_35, %c0_36] : memref<1x4x4x32xbf16, #tpu.memory_space<vmem>>, vector<1x1x2x32xbf16>
    %48 = vector.shape_cast %47 : vector<1x1x2x32xbf16> to vector<1x2x32xbf16>
    %49 = vector.shape_cast %48 : vector<1x2x32xbf16> to vector<2x32xbf16>
    %c5 = arith.constant 5 : index
    %c0_37 = arith.constant 0 : index
    %c0_38 = arith.constant 0 : index
    %50 = vector.load %arg3[%c5, %c0_37, %c0_38] : memref<9x32x32xbf16, #tpu.memory_space<vmem>>, vector<1x32x32xbf16>
    %51 = vector.shape_cast %50 : vector<1x32x32xbf16> to vector<32x32xbf16>
    %cst_39 = arith.constant dense<0.000000e+00> : vector<2x32xf32>
    %52 = tpu.matmul %49, %51, %cst_39 {dimension_numbers = #tpu.dot_dimension_numbers<[1], [0], [0], [1], [0, 0, 1, 1], [], []>} : vector<2x32xbf16>, vector<32x32xbf16>, vector<2x32xf32> -> vector<2x32xf32>
    %53 = arith.addf %44, %52 : vector<2x32xf32>
    %c2_i32 = arith.constant 2 : i32
    %54 = arith.addi %0, %c2_i32 : i32
    %c0_40 = arith.constant 0 : index
    %55 = arith.index_cast %54 : i32 to index
    %c0_41 = arith.constant 0 : index
    %c0_42 = arith.constant 0 : index
    %56 = vector.load %arg2[%c0_40, %55, %c0_41, %c0_42] : memref<1x4x4x32xbf16, #tpu.memory_space<vmem>>, vector<1x1x2x32xbf16>
    %57 = vector.shape_cast %56 : vector<1x1x2x32xbf16> to vector<1x2x32xbf16>
    %58 = vector.shape_cast %57 : vector<1x2x32xbf16> to vector<2x32xbf16>
    %c6 = arith.constant 6 : index
    %c0_43 = arith.constant 0 : index
    %c0_44 = arith.constant 0 : index
    %59 = vector.load %arg3[%c6, %c0_43, %c0_44] : memref<9x32x32xbf16, #tpu.memory_space<vmem>>, vector<1x32x32xbf16>
    %60 = vector.shape_cast %59 : vector<1x32x32xbf16> to vector<32x32xbf16>
    %cst_45 = arith.constant dense<0.000000e+00> : vector<2x32xf32>
    %61 = tpu.matmul %58, %60, %cst_45 {dimension_numbers = #tpu.dot_dimension_numbers<[1], [0], [0], [1], [0, 0, 1, 1], [], []>} : vector<2x32xbf16>, vector<32x32xbf16>, vector<2x32xf32> -> vector<2x32xf32>
    %62 = arith.addf %53, %61 : vector<2x32xf32>
    %c2_i32_46 = arith.constant 2 : i32
    %63 = arith.addi %0, %c2_i32_46 : i32
    %c0_47 = arith.constant 0 : index
    %64 = arith.index_cast %63 : i32 to index
    %c1_48 = arith.constant 1 : index
    %c0_49 = arith.constant 0 : index
    %65 = vector.load %arg2[%c0_47, %64, %c1_48, %c0_49] : memref<1x4x4x32xbf16, #tpu.memory_space<vmem>>, vector<1x1x2x32xbf16>
    %66 = vector.shape_cast %65 : vector<1x1x2x32xbf16> to vector<1x2x32xbf16>
    %67 = vector.shape_cast %66 : vector<1x2x32xbf16> to vector<2x32xbf16>
    %c7 = arith.constant 7 : index
    %c0_50 = arith.constant 0 : index
    %c0_51 = arith.constant 0 : index
    %68 = vector.load %arg3[%c7, %c0_50, %c0_51] : memref<9x32x32xbf16, #tpu.memory_space<vmem>>, vector<1x32x32xbf16>
    %69 = vector.shape_cast %68 : vector<1x32x32xbf16> to vector<32x32xbf16>
    %cst_52 = arith.constant dense<0.000000e+00> : vector<2x32xf32>
    %70 = tpu.matmul %67, %69, %cst_52 {dimension_numbers = #tpu.dot_dimension_numbers<[1], [0], [0], [1], [0, 0, 1, 1], [], []>} : vector<2x32xbf16>, vector<32x32xbf16>, vector<2x32xf32> -> vector<2x32xf32>
    %71 = arith.addf %62, %70 : vector<2x32xf32>
    %c2_i32_53 = arith.constant 2 : i32
    %72 = arith.addi %0, %c2_i32_53 : i32
    %c0_54 = arith.constant 0 : index
    %73 = arith.index_cast %72 : i32 to index
    %c2_55 = arith.constant 2 : index
    %c0_56 = arith.constant 0 : index
    %74 = vector.load %arg2[%c0_54, %73, %c2_55, %c0_56] : memref<1x4x4x32xbf16, #tpu.memory_space<vmem>>, vector<1x1x2x32xbf16>
    %75 = vector.shape_cast %74 : vector<1x1x2x32xbf16> to vector<1x2x32xbf16>
    %76 = vector.shape_cast %75 : vector<1x2x32xbf16> to vector<2x32xbf16>
    %c8 = arith.constant 8 : index
    %c0_57 = arith.constant 0 : index
    %c0_58 = arith.constant 0 : index
    %77 = vector.load %arg3[%c8, %c0_57, %c0_58] : memref<9x32x32xbf16, #tpu.memory_space<vmem>>, vector<1x32x32xbf16>
    %78 = vector.shape_cast %77 : vector<1x32x32xbf16> to vector<32x32xbf16>
    %cst_59 = arith.constant dense<0.000000e+00> : vector<2x32xf32>
    %79 = tpu.matmul %76, %78, %cst_59 {dimension_numbers = #tpu.dot_dimension_numbers<[1], [0], [0], [1], [0, 0, 1, 1], [], []>} : vector<2x32xbf16>, vector<32x32xbf16>, vector<2x32xf32> -> vector<2x32xf32>
    %80 = arith.addf %71, %79 : vector<2x32xf32>
    %c0_60 = arith.constant 0 : index
    %c0_61 = arith.constant 0 : index
    %81 = vector.load %arg4[%c0_60, %c0_61] : memref<1x32xf32, #tpu.memory_space<vmem>>, vector<1x32xf32>
    %82 = vector.broadcast %81 : vector<1x32xf32> to vector<2x32xf32>
    %83 = arith.addf %80, %82 : vector<2x32xf32>
    %84 = vector.shape_cast %83 : vector<2x32xf32> to vector<1x2x32xf32>
    %c0_62 = arith.constant 0 : index
    %c0_63 = arith.constant 0 : index
    %c0_64 = arith.constant 0 : index
    %c0_65 = arith.constant 0 : index
    %85 = vector.load %arg5[%c0_62, %c0_63, %c0_64, %c0_65] : memref<1x1x2x32xf32, #tpu.memory_space<vmem>>, vector<1x1x2x32xf32>
    %86 = vector.shape_cast %85 : vector<1x1x2x32xf32> to vector<1x2x32xf32>
    %87 = vector.shape_cast %84 : vector<1x2x32xf32> to vector<1x1x2x32xf32>
    tpu.vector_store %arg5[%c0_62, %c0_63, %c0_64, %c0_65], %87 {strides = array<i32>} : memref<1x1x2x32xf32, #tpu.memory_space<vmem>>, vector<1x1x2x32xf32>,
    return
  }
  func.func @transform_0(%arg0: i32, %arg1: i32) -> (i32, i32, i32, i32) {
    %c0_i32 = arith.constant 0 : i32
    %c0_i32_0 = arith.constant 0 : i32
    %c0_i32_1 = arith.constant 0 : i32
    %c0_i32_2 = arith.constant 0 : i32
    return %arg0, %c0_i32, %c0_i32_0, %c0_i32_1 : i32, i32, i32, i32
  }
  func.func @transform_1(%arg0: i32, %arg1: i32) -> (i32, i32, i32) {
    %c0_i32 = arith.constant 0 : i32
    %c0_i32_0 = arith.constant 0 : i32
    %c0_i32_1 = arith.constant 0 : i32
    %c0_i32_2 = arith.constant 0 : i32
    return %c0_i32, %c0_i32_0, %c0_i32_1 : i32, i32, i32
  }
  func.func @transform_2(%arg0: i32, %arg1: i32) -> (i32, i32) {
    %c0_i32 = arith.constant 0 : i32
    %c0_i32_0 = arith.constant 0 : i32
    %c0_i32_1 = arith.constant 0 : i32
    return %c0_i32, %c0_i32_0 : i32, i32
  }
  func.func @transform_3(%arg0: i32, %arg1: i32) -> (i32, i32, i32, i32) {
    %c0_i32 = arith.constant 0 : i32
    %c0_i32_0 = arith.constant 0 : i32
    %c0_i32_1 = arith.constant 0 : i32
    return %arg0, %arg1, %c0_i32, %c0_i32_0 : i32, i32, i32, i32
  }
}

</mosaic_0001>

<bundles_post_ra>
// kernel: feature_extraction.10
= control target key start
LH: loop header
LB: loop body
LE: loop exit
PB: predicated region body
PF: predicated region fallthrough
CT: control target
= control target key end

     0   :  { %s1799_s12 = smov 0   ;;  %s1801_s13 = smov 0   ;;  %s2160_s0 = inlined_call_operand.vmem [shape: bf16[2,4,10,10,4], index: 0, kind: input, shape index: {}]   ;;  %s2161_s1 = inlined_call_operand.vmem [shape: bf16[25,4,32], index: 1, kind: input, shape index: {}]   ;;  %s2162_s2 = inlined_call_operand.vmem [shape: f32[1,32], index: 2, kind: input, shape index: {}]   ;;  %s2163_s3 = inlined_call_operand.vmem [shape: bf16[2,8,8,32], index: 3, kind: output, shape index: {}]  }
   0x1   :  { %s1803_s14 = smov 0   ;;  %s1805_s15 = smov 0  }
   0x2   :  { %s1807_s16 = smov 0  }
   0x3 LB: > { %s22_s17 = sadd.s32 1, %s1769_s14  ;;  %s25_s18 = sadd.s32 1, %s1773_s15  ;;  %s1777_s16 = sphi %s1807_s16, %s13_s16   ;;  %s1773_s15 = sphi %s1805_s15, %s2171_s15   ;;  %s1769_s14 = sphi %s1803_s14, %s2170_s14   ;;  %s1765_s13 = sphi %s1801_s13, %s2169_s13   ;;  %s1761_s12 = sphi %s1799_s12, %s2168_s12  }
   0x4   : > { %p23_p0 = scmp.ge.s32.totalorder %s22_s17, 4  ;;  %p1479_p1 = scmp.ge.s32.totalorder %s1777_s16, 1 }
   0x5   : > { %p151_p2 = scmp.lt.s32.totalorder %s1777_s16, 9 }
   0x6   : > { %s2173_s17 = smov (%p23_p0, %s22_s17), 0  ;;  %s2175_s18 = smov (!%p23_p0, %s25_s18), %s1773_s15 }
   0x7   : > { %p152_p3 = pnand %p1479_p1, %p151_p2  ;;  %p27_p4 = scmp.ge.s32.totalorder %s2175_s18, 2 }
   0x8   : > { %p179_p5 = scmp.lt.s32.totalorder (!%p152_p3), %s1765_s13, 1  ;;  %s1673_s30 = sshll.u32 (!%p152_p3), %s1761_s12, 4 }
   0x9   : > { %s2177_s18 = smov (%p27_p4, %s2175_s18), 0  ;;  %155 = sbr.rel (%p152_p3) target bundleno = 271 (0x10f), region = 32 }
   0xe   : > { %v1491_v0 = vld [vmem:[%s2161_s1 + $0x2] sm:$0x3]  ;;  %vm218_vm0 = vcmask 1041408   ;;  %v201_v1 = vld [vmem:[%s2161_s1] sm:$0x3]  ;;  %s2179_s13 = smov (!%p179_p5, %s1765_s13), 1 }
   0xf   : > { %v220_v2 = vsel %vm218_vm0, %v1491_v0, 0  ;;  %v245_v3 = vsel %vm218_vm0, %v201_v1, 0  ;;  %v1512_v4 = vld [vmem:[%s2161_s1 + $0x8] sm:$0x3]  ;;  %v1502_v6 = vld [vmem:[%s2161_s1 + $0x4] sm:$0x3] }
  0x10   : > { %229 = vmatpush.bf16.msra.mxu0 %v220_v2  ;;  %254 = vmatpush.bf16.msra.mxu1 %v245_v3  ;;  %v408_v5 = vsel %vm218_vm0, %v1512_v4, 0  ;;  %v1508_v7 = vld [vmem:[%s2161_s1 + $0x6] sm:$0x3]  ;;  %v305_v8 = vsel %vm218_vm0, %v1502_v6, 0  ;;  %s1697_s29 = smul.u32 320, %s2179_s13  ;;  %vm214_vm1 = vcmask 31744  }
  0x11   : > { %v364_v9 = vsel %vm218_vm0, %v1508_v7, 0  ;;  %314 = vmatpush.bf16.msra.mxu2 %v305_v8  ;;  %v1528_v10 = vld [vmem:[%s2161_s1 + $0xc] sm:$0x3]  ;;  %v1538_v11 = vld [vmem:[%s2161_s1 + $0xe] sm:$0x3]  ;;  %vm388_vm4 = vcmask 1042432  }
  0x12   : > { %373 = vmatpush.bf16.msra.mxu3 %v364_v9  ;;  %v476_v12 = vsel %vm218_vm0, %v1528_v10, 0  ;;  %v535_v13 = vsel %vm218_vm0, %v1538_v11, 0  ;;  %v1518_v14 = vld [vmem:[%s2161_s1 + $0xa] sm:$0x3]  ;;  %s183_s19 = scalar_lea.vmem %s2160_s0, %s1697_s29  ;;  %v1544_v16 = vld [vmem:[%s2161_s1 + $0x10] sm:$0x3] }
  0x13   : > { %v442_v15 = vsel %vm218_vm0, %v1518_v14, 0  ;;  %s1873_s22 = scalar_lea.vmem %s183_s19, %s1673_s30  ;;  %vm265_vm2 = vsmask.f32 3328  ;;  %vm266_vm3 = vsmask.f32 7440  ;;  %v594_v17 = vsel %vm218_vm0, %v1544_v16, 0 }
  0x14   : > { %417 = vmatpush.bf16.msrb.mxu0 %v408_v5  ;;  %451 = vmatpush.bf16.msrb.mxu1 %v442_v15  ;;  %v1494_v18 = vld [vmem:[%s1873_s22 + $0x50] sm:$0xf]  ;;  %v1676_v19 = vld [vmem:[%s1873_s22 + $0x54] sm:$0xf0]  ;;  %v1499_v20 = vld [vmem:[%s1873_s22] sm:$0xf] }
  0x15   : > { %485 = vmatpush.bf16.msrb.mxu2 %v476_v12  ;;  %v1495_v21 = vor.u32 %v1676_v19, %v1494_v18  ;;  %v1674_v22 = vld [vmem:[%s1873_s22 + $0x4] sm:$0xf0]  ;;  %v261_v23 = vld [vmem:[%s1873_s22] sm:$0xf]  ;;  %v262_v24 = vld [vmem:[%s1873_s22 + $0x4] sm:$0x1] }
  0x16   : > { %544 = vmatpush.bf16.msrb.mxu3 %v535_v13  ;;  %v1500_v25 = vor.u32 %v1674_v22, %v1499_v20  ;;  %v263_v26 = vld [vmem:[%s1873_s22 + $0x8] sm:$0xf]  ;;  %v264_v27 = vld [vmem:[%s1873_s22 + $0xc] sm:$0x1]  ;;  %v269_v28 = vshrl.u32 %v261_v23, 16  ;;  %v272_v29 = vshll.u32 %v261_v23, 16  ;;  %vm1892_vm6 = vmor %vm265_vm2, %vm266_vm3 }
  0x17   : > { %1496 = vmatmul.msk.bf16.vlgmr.msra.gmra.mxu0 %vm214_vm1, %v1495_v21  ;;  %v278_v30 = vshll.u32 %v262_v24, 16  ;;  %v283_v31 = vshrl.u32 %v263_v26, 16  ;;  %v286_v32 = vshll.u32 %v263_v26, 16  ;;  %v292_v33 = vshll.u32 %v264_v27, 16  ;;  %v1504_v34 = vld [vmem:[%s1873_s22 + $0x50] sm:$0xf] }
  0x18   : > { %1501 = vmatmul.msk.bf16.vlgmr.msra.gmra.mxu1 %vm214_vm1, %v1500_v25  ;;  %v271_v35 = vrot.slane %v269_v28, 4  ;;  %v274_v36 = vrot.slane %v272_v29, 5  ;;  %v393_v37 = vrot.slane %v262_v24, 5  ;;  %v1505_v38 = vld [vmem:[%s1873_s22 + $0x54] sm:$0x1]  ;;  %vm389_vm5 = vcmask 1046532   ;;  %603 = vmatpush.bf16.msra.mxu0 %v594_v17 }
  0x19   : > { %v280_v39 = vrot.slane %v278_v30, 5  ;;  %v285_v40 = vrot.slane %v283_v31, 4  ;;  %v288_v41 = vrot.slane %v286_v32, 5  ;;  %v294_v42 = vrot.slane %v292_v33, 5  ;;  %v1506_v43 = vld [vmem:[%s1873_s22 + $0x58] sm:$0xf]  ;;  %vm1900_vm7 = vmor %vm388_vm4, %vm389_vm5 }
  0x1a   : > { %v275_v44 = vor.u32 %v274_v36, %v271_v35  ;;  %v1507_v45 = vld [vmem:[%s1873_s22 + $0x5c] sm:$0x1]  ;;  %v328_v46 = vshrl.u32 %v1504_v34, 16  ;;  %v331_v47 = vshll.u32 %v1504_v34, 16  ;;  %v337_v48 = vshll.u32 %v1505_v38, 16  ;;  %s1482_s9 = sshll.u32 %s2179_s13, 3 }
  0x1b   : > { %v289_v50 = vor.u32 %v288_v41, %v285_v40  ;;  %v342_v51 = vshrl.u32 %v1506_v43, 16  ;;  %v345_v52 = vshll.u32 %v1506_v43, 16  ;;  %v351_v53 = vshll.u32 %v1507_v45, 16  ;;  %v382_v54 = vld [vmem:[%s1873_s22] sm:$0xe] }
  0x1c   : > { %v276_v55 = vrot.slane %v275_v44, 4  ;;  %v397_v56 = vrot.slane %v264_v27, 5  ;;  %v330_v57 = vrot.slane %v328_v46, 4  ;;  %v333_v58 = vrot.slane %v331_v47, 5  ;;  %v383_v59 = vld [vmem:[%s1873_s22 + $0x8] sm:$0xe] }
  0x1d   : > { %v290_v60 = vrot.slane %v289_v50, 4  ;;  %v339_v61 = vrot.slane %v337_v48, 5  ;;  %v344_v62 = vrot.slane %v342_v51, 4  ;;  %v347_v63 = vrot.slane %v345_v52, 5  ;;  %v1521_v5 = vld [vmem:[%s1873_s22 + $0xa0] sm:$0xf] }
  0x1e   : > { %v281_v1 = vsel %vm1892_vm6, %v276_v55, %v280_v39  ;;  %v334_v2 = vor.u32 %v333_v58, %v330_v57  ;;  %v1510_v3 = vrot.slane %v382_v54, 9  ;;  %v1511_v4 = vrot.slane %v383_v59, 9  ;;  %v1678_v6 = vld [vmem:[%s1873_s22 + $0xa4] sm:$0xf0]  ;;  %v1534_v11 = vld [vmem:[%s1873_s22 + $0xa0] sm:$0xf] }
  0x1f   : > { %v295_v7 = vsel %vm1892_vm6, %v290_v60, %v294_v42  ;;  %v298_v8 = vunpack.c.l.b16 %v281_v1  ;;  %v348_v9 = vor.u32 %v347_v63, %v344_v62  ;;  %v353_v10 = vrot.slane %v351_v53, 5  ;;  %v1916_v16 = vld [vmem:[%s1873_s22 + $0xa4] sm:$0x1]  ;;  %v1536_v21 = vld [vmem:[%s1873_s22 + $0xa8] sm:$0xf] }
  0x20   : > { %v299_v12 = vunpack.c.l.b16 %v295_v7  ;;  %v335_v13 = vrot.slane %v334_v2, 4  ;;  %v394_v14 = vsel %vm1900_vm7, %v1510_v3, %v393_v37  ;;  %v398_v15 = vsel %vm1900_vm7, %v1511_v4, %v397_v56  ;;  %v1922_v24 = vld [vmem:[%s1873_s22 + $0xac] sm:$0x1]  ;;  %v1556_v31 = vld [vmem:[%s2161_s1 + $0x14] sm:$0x3] }
  0x21   : > { %v349_v17 = vrot.slane %v348_v9, 4  ;;  %v401_v18 = vunpack.c.l.b16 %v394_v14  ;;  %v402_v19 = vunpack.c.l.b16 %v398_v15  ;;  %v1522_v20 = vor.u32 %v1678_v6, %v1521_v5  ;;  %v1567_v36 = vld [vmem:[%s2161_s1 + $0x16] sm:$0x3]  ;;  %v1550_v39 = vld [vmem:[%s2161_s1 + $0x12] sm:$0x3] }
  0x22   : > { %v300_v22 = vpack.c.b16 %v299_v12, %v298_v8  ;;  %v340_v23 = vsel %vm1892_vm6, %v335_v13, %v339_v61  ;;  %v499_v25 = vshrl.u32 %v1534_v11, 16  ;;  %v502_v26 = vshll.u32 %v1534_v11, 16  ;;  %v1540_v40 = vld [vmem:[%s1873_s22 + $0xf0] sm:$0xf]  ;;  %v1541_v45 = vld [vmem:[%s1873_s22 + $0xf4] sm:$0x1] }
  0x23   : > { %v354_v27 = vsel %vm1892_vm6, %v349_v17, %v353_v10  ;;  %v357_v28 = vunpack.c.l.b16 %v340_v23  ;;  %v403_v29 = vpack.c.b16 %v402_v19, %v401_v18  ;;  %v508_v30 = vshll.u32 %v1916_v16, 16  ;;  %v1542_v46 = vld [vmem:[%s1873_s22 + $0xf8] sm:$0xf]  ;;  %v1543_v52 = vld [vmem:[%s1873_s22 + $0xfc] sm:$0x1] }
  0x24   : > { %1503 = vmatmul.msk.bf16.vlgmr.msra.gmra.mxu2 %vm214_vm1, %v300_v22  ;;  %v358_v32 = vunpack.c.l.b16 %v354_v27  ;;  %v501_v33 = vrot.slane %v499_v25, 4  ;;  %v504_v34 = vrot.slane %v502_v26, 5  ;;  %v513_v35 = vshrl.u32 %v1536_v21, 16  ;;  %v1948_v53 = vld [vmem:[%s1873_s22 + $0xf0] sm:$0xf] }
  0x25   : > { %v516_v37 = vshll.u32 %v1536_v21, 16  ;;  %v522_v38 = vshll.u32 %v1922_v24, 16  ;;  %v510_v43 = vrot.slane %v508_v30, 5  ;;  %v670_v50 = vsel %vm218_vm0, %v1556_v31, 0  ;;  %v1951_v54 = vld [vmem:[%s1873_s22 + $0xf4] sm:$0xf0] }
  0x26   : > { %v359_v41 = vpack.c.b16 %v358_v32, %v357_v28  ;;  %v505_v42 = vor.u32 %v504_v34, %v501_v33  ;;  %v515_v44 = vrot.slane %v513_v35, 4  ;;  %v704_v51 = vsel %vm218_vm0, %v1567_v36, 0  ;;  %v1577_v59 = vld [vmem:[%s2161_s1 + $0x18] sm:$0x3]  ;;  %679 = vmatpush.bf16.msra.mxu2 %v670_v50  ;;  %v1546_v1 = vld [vmem:[%s1873_s22 + $0xa0] sm:$0xe] }
  0x27   : > { %1513 = vmatmul.msk.bf16.vlgmr.msrb.gmra.mxu0 %vm214_vm1, %v403_v29  ;;  %v518_v47 = vrot.slane %v516_v37, 5  ;;  %v524_v48 = vrot.slane %v522_v38, 5  ;;  %v635_v56 = vsel %vm218_vm0, %v1550_v39, 0  ;;  %v558_v57 = vshrl.u32 %v1540_v40, 16  ;;  %v1547_v6 = vld [vmem:[%s1873_s22 + $0xa8] sm:$0xe] }
  0x28   : > { %1509 = vmatmul.msk.bf16.vlgmr.msra.gmra.mxu3 %vm214_vm1, %v359_v41  ;;  %1523 = vmatmul.msk.bf16.vlgmr.msrb.gmra.mxu1 %vm214_vm1, %v1522_v20  ;;  %v506_v55 = vrot.slane %v505_v42, 4  ;;  %v561_v58 = vshll.u32 %v1540_v40, 16  ;;  %v567_v61 = vshll.u32 %v1541_v45, 16  ;;  %v572_v62 = vshrl.u32 %v1542_v46, 16  ;;  %v1589_v15 = vld [vmem:[%s2161_s1 + $0x1c] sm:$0x3] }
  0x29   : > { %v519_v60 = vor.u32 %v518_v47, %v515_v44  ;;  %713 = vmatpush.bf16.msra.mxu3 %v704_v51  ;;  %v575_v63 = vshll.u32 %v1542_v46, 16  ;;  %v620_v2 = vrot.slane %v1916_v16, 5  ;;  %644 = vmatpush.bf16.msra.mxu1 %v635_v56  ;;  %v560_v3 = vrot.slane %v558_v57, 4  ;;  %v1596_v20 = vld [vmem:[%s2161_s1 + $0x1e] sm:$0x3] }
  0x2a   : > { %v563_v4 = vrot.slane %v561_v58, 5  ;;  %v581_v5 = vshll.u32 %v1543_v52, 16  ;;  %v511_v7 = vsel %vm1892_vm6, %v506_v55, %v510_v43  ;;  %v624_v9 = vrot.slane %v1922_v24, 5  ;;  %v1583_v25 = vld [vmem:[%s2161_s1 + $0x1a] sm:$0x3] }
  0x2b   : > { %v520_v8 = vrot.slane %v519_v60, 4  ;;  %v574_v10 = vrot.slane %v572_v62, 4  ;;  %v569_v12 = vrot.slane %v567_v61, 5  ;;  %v577_v13 = vrot.slane %v575_v63, 5  ;;  %v1573_v26 = vld [vmem:[%s1873_s22 + $0x8] sm:$0xf] }
  0x2c   : > { %v564_v11 = vor.u32 %v563_v4, %v560_v3  ;;  %v763_v14 = vsel %vm218_vm0, %v1577_v59, 0  ;;  %v1532_v16 = vor.u32 %v1951_v54, %v1948_v53  ;;  %v1548_v18 = vrot.slane %v1546_v1, 9  ;;  %v1984_v31 = vld [vmem:[%s1873_s22 + $0xc] sm:$0x1]  ;;  %v1575_v32 = vld [vmem:[%s1873_s22 + $0x10] sm:$0xf] }
  0x2d   : > { %v525_v17 = vsel %vm1892_vm6, %v520_v8, %v524_v48  ;;  %772 = vmatpush.bf16.msrb.mxu0 %v763_v14  ;;  %v1549_v19 = vrot.slane %v1547_v6, 9  ;;  %v528_v21 = vunpack.c.l.b16 %v511_v7  ;;  %v578_v23 = vor.u32 %v577_v13, %v574_v10  ;;  %v1992_v40 = vld [vmem:[%s1873_s22 + $0x14] sm:$0x1]  ;;  %v1579_v46 = vld [vmem:[%s1873_s22 + $0x58] sm:$0xf] }
  0x2e   : > { %v565_v22 = vrot.slane %v564_v11, 4  ;;  %v583_v24 = vrot.slane %v581_v5, 5  ;;  %v529_v27 = vunpack.c.l.b16 %v525_v17  ;;  %v621_v28 = vsel %vm1900_vm7, %v1548_v18, %v620_v2  ;;  %v1607_v52 = vld [vmem:[%s2161_s1 + $0x20] sm:$0x3]  ;;  %v1580_v53 = vld [vmem:[%s1873_s22 + $0x5c] sm:$0x1] }
  0x2f   : > { %v625_v29 = vsel %vm1900_vm7, %v1549_v19, %v624_v9  ;;  %v863_v30 = vsel %vm218_vm0, %v1589_v15, 0  ;;  %v579_v34 = vrot.slane %v578_v23, 4  ;;  %v628_v35 = vunpack.c.l.b16 %v621_v28  ;;  %v1581_v58 = vld [vmem:[%s1873_s22 + $0x60] sm:$0xf]  ;;  %v1582_v62 = vld [vmem:[%s1873_s22 + $0x64] sm:$0x1] }
  0x30   : > { %v570_v33 = vsel %vm1892_vm6, %v565_v22, %v569_v12  ;;  %v897_v36 = vsel %vm218_vm0, %v1596_v20, 0  ;;  %v629_v38 = vunpack.c.l.b16 %v625_v29  ;;  %v822_v39 = vsel %vm218_vm0, %v1583_v25, 0  ;;  %v1559_v20 = vld [vmem:[%s1873_s22 + $0x8] sm:$0xf]  ;;  %v1682_v25 = vld [vmem:[%s1873_s22 + $0xc] sm:$0xf0] }
  0x31   : > { %v587_v37 = vunpack.c.l.b16 %v570_v33  ;;  %v727_v41 = vshrl.u32 %v1573_v26, 16  ;;  %v584_v42 = vsel %vm1892_vm6, %v579_v34, %v583_v24  ;;  %831 = vmatpush.bf16.msrb.mxu1 %v822_v39  ;;  %v730_v43 = vshll.u32 %v1573_v26, 16  ;;  %v1617_v24 = vld [vmem:[%s2161_s1 + $0x22] sm:$0x3]  ;;  %v1570_v28 = vld [vmem:[%s1873_s22 + $0x58] sm:$0xf] }
  0x32   : > { %v736_v44 = vshll.u32 %v1984_v31, 16  ;;  %v741_v45 = vshrl.u32 %v1575_v32, 16  ;;  %v530_v47 = vpack.c.b16 %v529_v27, %v528_v21  ;;  %v588_v48 = vunpack.c.l.b16 %v584_v42  ;;  %v1613_v27 = vld [vmem:[%s1873_s22 + $0xa8] sm:$0xf]  ;;  %v1685_v29 = vld [vmem:[%s1873_s22 + $0x5c] sm:$0xf0] }
  0x33   : > { %v729_v50 = vrot.slane %v727_v41, 4  ;;  %v744_v51 = vshll.u32 %v1575_v32, 16  ;;  %v630_v54 = vpack.c.b16 %v629_v38, %v628_v35  ;;  %v732_v55 = vrot.slane %v730_v43, 5  ;;  %v1615_v32 = vld [vmem:[%s1873_s22 + $0xb0] sm:$0xf] }
  0x34   : > { %1533 = vmatmul.msk.bf16.vlgmr.msrb.gmra.mxu2 %vm214_vm1, %v1532_v16  ;;  %v743_v56 = vrot.slane %v741_v45, 4  ;;  %v750_v57 = vshll.u32 %v1992_v40, 16  ;;  %v589_v59 = vpack.c.b16 %v588_v48, %v587_v37  ;;  %v738_v60 = vrot.slane %v736_v44, 5  ;;  %v1623_v37 = vld [vmem:[%s2161_s1 + $0x24] sm:$0x3] }
  0x35   : > { %872 = vmatpush.bf16.msrb.mxu2 %v863_v30  ;;  %v746_v61 = vrot.slane %v744_v51, 5  ;;  %v786_v63 = vshrl.u32 %v1579_v46, 16  ;;  %v733_v1 = vor.u32 %v732_v55, %v729_v50  ;;  %v931_v2 = vsel %vm218_vm0, %v1607_v52, 0  ;;  %v1586_v43 = vld [vmem:[%s1873_s22 + $0x10] sm:$0xe] }
  0x36   : > { %v789_v3 = vshll.u32 %v1579_v46, 16  ;;  %v795_v4 = vshll.u32 %v1580_v53, 16  ;;  %v800_v7 = vshrl.u32 %v1581_v58, 16  ;;  %v803_v8 = vshll.u32 %v1581_v58, 16  ;;  %v1629_v46 = vld [vmem:[%s2161_s1 + $0x26] sm:$0x3] }
  0x37   : > { %1545 = vmatmul.msk.bf16.vlgmr.msra.gmra.mxu0 %vm214_vm1, %v589_v59  ;;  %v747_v5 = vor.u32 %v746_v61, %v743_v56  ;;  %v788_v6 = vrot.slane %v786_v63, 4  ;;  %v734_v9 = vrot.slane %v733_v1, 4  ;;  %v752_v10 = vrot.slane %v750_v57, 5  ;;  %v2041_v53 = vld [vmem:[%s1873_s22 + $0xb4] sm:$0x1] }
  0x38   : > { %1539 = vmatmul.msk.bf16.vlgmr.msrb.gmra.mxu3 %vm214_vm1, %v530_v47  ;;  %1551 = vmatmul.msk.bf16.vlgmr.msra.gmra.mxu1 %vm214_vm1, %v630_v54  ;;  %v791_v11 = vrot.slane %v789_v3, 5  ;;  %v809_v12 = vshll.u32 %v1582_v62, 16  ;;  %v802_v14 = vrot.slane %v800_v7, 4  ;;  %v805_v15 = vrot.slane %v803_v8, 5  ;;  %v2037_v47 = vld [vmem:[%s1873_s22 + $0xac] sm:$0x1] }
  0x39   : > { %906 = vmatpush.bf16.msrb.mxu3 %v897_v36  ;;  %v748_v13 = vrot.slane %v747_v5, 4  ;;  %940 = vmatpush.bf16.msra.mxu0 %v931_v2  ;;  %v797_v17 = vrot.slane %v795_v4, 5  ;;  %v739_v21 = vsel %vm1892_vm6, %v734_v9, %v738_v60  ;;  %v1585_v36 = vld [vmem:[%s1873_s22 + $0x8] sm:$0xe]  ;;  %v990_v38 = vsel %vm218_vm0, %v1617_v24, 0 }
  0x3a   : > { %v792_v16 = vor.u32 %v791_v11, %v788_v6  ;;  %v806_v18 = vor.u32 %v805_v15, %v802_v14  ;;  %v811_v19 = vrot.slane %v809_v12, 5  ;;  %v756_v33 = vunpack.c.l.b16 %v739_v21  ;;  %999 = vmatpush.bf16.msra.mxu1 %v990_v38  ;;  %v1635_v58 = vld [vmem:[%s2161_s1 + $0x28] sm:$0x3]  ;;  %v1619_v2 = vld [vmem:[%s1873_s22 + $0xf8] sm:$0xf] }
  0x3b   : > { %v753_v22 = vsel %vm1892_vm6, %v748_v13, %v752_v10  ;;  %v1560_v39 = vor.u32 %v1682_v25, %v1559_v20  ;;  %v954_v44 = vshrl.u32 %v1613_v27, 16  ;;  %v1571_v45 = vor.u32 %v1685_v29, %v1570_v28  ;;  %v1621_v5 = vld [vmem:[%s1873_s22 + $0x100] sm:$0xf]  ;;  %v1622_v28 = vld [vmem:[%s1873_s22 + $0x104] sm:$0x1] }
  0x3c   : > { %v793_v23 = vrot.slane %v792_v16, 4  ;;  %v807_v26 = vrot.slane %v806_v18, 4  ;;  %v757_v34 = vunpack.c.l.b16 %v753_v22  ;;  %v957_v48 = vshll.u32 %v1613_v27, 16  ;;  %v1646_v18 = vld [vmem:[%s2161_s1 + $0x2a] sm:$0x3] }
  0x3d   : > { %v968_v50 = vshrl.u32 %v1615_v32, 16  ;;  %v1587_v51 = vrot.slane %v1585_v36, 9  ;;  %v1049_v52 = vsel %vm218_vm0, %v1623_v37, 0  ;;  %v956_v54 = vrot.slane %v954_v44, 4  ;;  %v1691_v36 = vld [vmem:[%s1873_s22 + $0xfc] sm:$0xf0] }
  0x3e   : > { %v798_v30 = vsel %vm1892_vm6, %v793_v23, %v797_v17  ;;  %v812_v35 = vsel %vm1892_vm6, %v807_v26, %v811_v19  ;;  %v971_v55 = vshll.u32 %v1615_v32, 16  ;;  %v758_v56 = vpack.c.b16 %v757_v34, %v756_v33  ;;  %v1620_v23 = vld [vmem:[%s1873_s22 + $0xfc] sm:$0x1]  ;;  %v1656_v34 = vld [vmem:[%s2161_s1 + $0x2c] sm:$0x3] }
  0x3f   : > { %v815_v41 = vunpack.c.l.b16 %v798_v30  ;;  %v816_v42 = vunpack.c.l.b16 %v812_v35  ;;  %v848_v57 = vrot.slane %v1984_v31, 5  ;;  %v959_v59 = vrot.slane %v957_v48, 5  ;;  %v1610_v35 = vld [vmem:[%s1873_s22 + $0xf8] sm:$0xf]  ;;  %v1625_v44 = vld [vmem:[%s1873_s22 + $0xa8] sm:$0xe] }
  0x40   : > { %v970_v60 = vrot.slane %v968_v50, 4  ;;  %v1588_v62 = vrot.slane %v1586_v43, 9  ;;  %v852_v63 = vrot.slane %v1992_v40, 5  ;;  %v973_v1 = vrot.slane %v971_v55, 5  ;;  %v1688_v43 = vld [vmem:[%s1873_s22 + $0xac] sm:$0xf0] }
  0x41   : > { %v817_v61 = vpack.c.b16 %v816_v42, %v815_v41  ;;  %v960_v3 = vor.u32 %v959_v59, %v956_v54  ;;  %v963_v4 = vshll.u32 %v2037_v47, 16  ;;  %v977_v31 = vshll.u32 %v2041_v53, 16  ;;  %v1599_v42 = vld [vmem:[%s1873_s22 + $0xa8] sm:$0xf]  ;;  %v1652_v59 = vld [vmem:[%s1873_s22 + $0x10] sm:$0xf] }
  0x42   : > { %v1090_v6 = vsel %vm218_vm0, %v1629_v46, 0  ;;  %v1125_v7 = vsel %vm218_vm0, %v1635_v58, 0  ;;  %v974_v8 = vor.u32 %v973_v1, %v970_v60  ;;  %v1013_v9 = vshrl.u32 %v1619_v2, 16  ;;  %v1626_v58 = vld [vmem:[%s1873_s22 + $0xb0] sm:$0xe] }
  0x43   : > { %v1016_v10 = vshll.u32 %v1619_v2, 16  ;;  %v849_v40 = vsel %vm1900_vm7, %v1587_v51, %v848_v57  ;;  %v853_v11 = vsel %vm1900_vm7, %v1588_v62, %v852_v63  ;;  %v1027_v12 = vshrl.u32 %v1621_v5, 16  ;;  %v1662_v51 = vld [vmem:[%s2161_s1 + $0x2e] sm:$0x3]  ;;  %v1654_v60 = vld [vmem:[%s1873_s22 + $0x18] sm:$0xf] }
  0x44   : > { %1561 = vmatmul.msk.bf16.vlgmr.msra.gmra.mxu2 %vm214_vm1, %v1560_v39  ;;  %v1030_v13 = vshll.u32 %v1621_v5, 16  ;;  %v961_v14 = vrot.slane %v960_v3, 4  ;;  %v965_v15 = vrot.slane %v963_v4, 5  ;;  %v975_v16 = vrot.slane %v974_v8, 4 }
  0x45   : > { %1058 = vmatpush.bf16.msra.mxu2 %v1049_v52  ;;  %v979_v17 = vrot.slane %v977_v31, 5  ;;  %v856_v19 = vunpack.c.l.b16 %v849_v40  ;;  %v857_v20 = vunpack.c.l.b16 %v853_v11  ;;  %v1015_v21 = vrot.slane %v1013_v9, 4  ;;  %v1668_v52 = vld [vmem:[%s2161_s1 + $0x30] sm:$0x3]  ;;  %v1658_v9 = vld [vmem:[%s1873_s22 + $0x60] sm:$0xf] }
  0x46   : > { %v1018_v22 = vrot.slane %v1016_v10, 5  ;;  %v1029_v24 = vrot.slane %v1027_v12, 4  ;;  %v1032_v25 = vrot.slane %v1030_v13, 5  ;;  %v966_v26 = vsel %vm1892_vm6, %v961_v14, %v965_v15  ;;  %v1653_v12 = vld [vmem:[%s1873_s22 + $0x14] sm:$0x1] }
  0x47   : > { %1578 = vmatmul.msk.bf16.vlgmr.msrb.gmra.mxu0 %vm214_vm1, %v758_v56  ;;  %v980_v27 = vsel %vm1892_vm6, %v975_v16, %v979_v17  ;;  %v1159_v29 = vsel %vm218_vm0, %v1646_v18, 0  ;;  %v858_v30 = vpack.c.b16 %v857_v20, %v856_v19  ;;  %v1022_v33 = vshll.u32 %v1620_v23, 16  ;;  %v1655_v17 = vld [vmem:[%s1873_s22 + $0x1c] sm:$0x1] }
  0x48   : > { %1572 = vmatmul.msk.bf16.vlgmr.msra.gmra.mxu3 %vm214_vm1, %v1571_v45  ;;  %1584 = vmatmul.msk.bf16.vlgmr.msrb.gmra.mxu1 %vm214_vm1, %v817_v61  ;;  %v1019_v32 = vor.u32 %v1018_v22, %v1015_v21  ;;  %v983_v37 = vunpack.c.l.b16 %v966_v26  ;;  %v984_v38 = vunpack.c.l.b16 %v980_v27  ;;  %v1033_v39 = vor.u32 %v1032_v25, %v1029_v24  ;;  %v1638_v22 = vld [vmem:[%s1873_s22 + $0x10] sm:$0xf]  ;;  %v1693_v25 = vld [vmem:[%s1873_s22 + $0x14] sm:$0xf0]  ;;  %v1649_v26 = vld [vmem:[%s1873_s22 + $0x60] sm:$0xf] }
  0x49   : > { %1099 = vmatpush.bf16.msra.mxu3 %v1090_v6  ;;  %1134 = vmatpush.bf16.msrb.mxu0 %v1125_v7  ;;  %v1036_v41 = vshll.u32 %v1622_v28, 16  ;;  %v1218_v45 = vsel %vm218_vm0, %v1656_v34, 0  ;;  %v1611_v46 = vor.u32 %v1691_v36, %v1610_v35  ;;  %v1024_v50 = vrot.slane %v1022_v33, 5  ;;  %v1661_v33 = vld [vmem:[%s1873_s22 + $0x6c] sm:$0x1] }
  0x4a   : > { %1168 = vmatpush.bf16.msrb.mxu1 %v1159_v29  ;;  %v1020_v48 = vrot.slane %v1019_v32, 4  ;;  %v1600_v54 = vor.u32 %v1688_v43, %v1599_v42  ;;  %v985_v55 = vpack.c.b16 %v984_v38, %v983_v37  ;;  %v1034_v56 = vrot.slane %v1033_v39, 4  ;;  %v1659_v32 = vld [vmem:[%s1873_s22 + $0x64] sm:$0x1]  ;;  %v1696_v35 = vld [vmem:[%s1873_s22 + $0x64] sm:$0xf0] }
  0x4b   : > { %v1038_v57 = vrot.slane %v1036_v41, 5  ;;  %v1627_v61 = vrot.slane %v1625_v44, 9  ;;  %v1277_v62 = vsel %vm218_vm0, %v1662_v51, 0  ;;  %v1318_v63 = vsel %vm218_vm0, %v1668_v52, 0 }
  0x4c   : > { %v1025_v1 = vsel %vm1892_vm6, %v1020_v48, %v1024_v50  ;;  %v1075_v2 = vrot.slane %v2037_v47, 5  ;;  %v1628_v3 = vrot.slane %v1626_v58, 9  ;;  %v1079_v4 = vrot.slane %v2041_v53, 5  ;;  %v1660_v47 = vld [vmem:[%s1873_s22 + $0x68] sm:$0xf] }
  0x4d   : > { %v1039_v31 = vsel %vm1892_vm6, %v1034_v56, %v1038_v57  ;;  %v1182_v5 = vshrl.u32 %v1652_v59, 16  ;;  %v1185_v6 = vshll.u32 %v1652_v59, 16  ;;  %v1196_v7 = vshrl.u32 %v1654_v60, 16  ;;  %v1665_v56 = vld [vmem:[%s1873_s22 + $0x18] sm:$0xe] }
  0x4e   : > { %v1199_v8 = vshll.u32 %v1654_v60, 16  ;;  %v1042_v10 = vunpack.c.l.b16 %v1025_v1  ;;  %v1043_v53 = vunpack.c.l.b16 %v1039_v31  ;;  %v1076_v40 = vsel %vm1900_vm7, %v1627_v61, %v1075_v2 }
  0x4f   : > { %v1080_v11 = vsel %vm1900_vm7, %v1628_v3, %v1079_v4  ;;  %v1184_v13 = vrot.slane %v1182_v5, 4  ;;  %v1187_v14 = vrot.slane %v1185_v6, 5  ;;  %v1198_v15 = vrot.slane %v1196_v7, 4 }
  0x50   : > { %v1241_v16 = vshrl.u32 %v1658_v9, 16  ;;  %v1201_v18 = vrot.slane %v1199_v8, 5  ;;  %v1244_v19 = vshll.u32 %v1658_v9, 16  ;;  %v1255_v20 = vshrl.u32 %v1660_v47, 16 }
  0x51   : > { %v1258_v21 = vshll.u32 %v1660_v47, 16  ;;  %v1083_v23 = vunpack.c.l.b16 %v1076_v40  ;;  %v1084_v24 = vunpack.c.l.b16 %v1080_v11  ;;  %v1191_v27 = vshll.u32 %v1653_v12, 16 }
  0x52   : > { %v1044_v28 = vpack.c.b16 %v1043_v53, %v1042_v10  ;;  %v1188_v29 = vor.u32 %v1187_v14, %v1184_v13  ;;  %v1243_v34 = vrot.slane %v1241_v16, 4  ;;  %v1202_v36 = vor.u32 %v1201_v18, %v1198_v15 }
  0x53   : > { %v1246_v37 = vrot.slane %v1244_v19, 5  ;;  %v1257_v38 = vrot.slane %v1255_v20, 4  ;;  %v1260_v39 = vrot.slane %v1258_v21, 5  ;;  %v1639_v41 = vor.u32 %v1693_v25, %v1638_v22 }
  0x54   : > { %1590 = vmatmul.msk.bf16.vlgmr.msrb.gmra.mxu2 %vm214_vm1, %v858_v30  ;;  %v1205_v30 = vshll.u32 %v1655_v17, 16  ;;  %v1250_v42 = vshll.u32 %v1659_v32, 16  ;;  %v1264_v43 = vshll.u32 %v1661_v33, 16  ;;  %v1085_v44 = vpack.c.b16 %v1084_v24, %v1083_v23 }
  0x55   : > { %1227 = vmatpush.bf16.msrb.mxu2 %v1218_v45  ;;  %v1650_v45 = vor.u32 %v1696_v35, %v1649_v26  ;;  %v1189_v50 = vrot.slane %v1188_v29, 4  ;;  %v1203_v51 = vrot.slane %v1202_v36, 4  ;;  %v1247_v52 = vor.u32 %v1246_v37, %v1243_v34 }
  0x56   : > { %v1207_v48 = vrot.slane %v1205_v30, 5  ;;  %v1252_v57 = vrot.slane %v1250_v42, 5  ;;  %v1266_v58 = vrot.slane %v1264_v43, 5  ;;  %v1303_v60 = vrot.slane %v1653_v12, 5 }
  0x57   : > { %1612 = vmatmul.msk.bf16.vlgmr.msra.gmra.mxu0 %vm214_vm1, %v1611_v46  ;;  %v1193_v46 = vrot.slane %v1191_v27, 5  ;;  %v1667_v61 = vrot.slane %v1665_v56, 9  ;;  %v1248_v2 = vrot.slane %v1247_v52, 4  ;;  %vm1346_vm8 = vcmask 257024  }
  0x58   : > { %1601 = vmatmul.msk.bf16.vlgmr.msrb.gmra.mxu3 %vm214_vm1, %v1600_v54  ;;  %1618 = vmatmul.msk.bf16.vlgmr.msra.gmra.mxu1 %vm214_vm1, %v985_v55  ;;  %v1261_v54 = vor.u32 %v1260_v39, %v1257_v38  ;;  %v1664_v55 = vld [vmem:[%s1873_s22 + $0x10] sm:$0xe]  ;;  %v1208_v1 = vsel %vm1892_vm6, %v1203_v51, %v1207_v48  ;;  %s1481_s22 = sshll.u32 %s1761_s12, 1 }
  0x59   : > { %1286 = vmatpush.bf16.msrb.mxu3 %v1277_v62  ;;  %1327 = vmatpush.bf16.msra.mxu0 %v1318_v63  ;;  %v1666_v59 = vrot.slane %v1664_v55, 9  ;;  %v1307_v62 = vrot.slane %v1655_v17, 5  ;;  %v1194_v63 = vsel %vm1892_vm6, %v1189_v50, %v1193_v46  ;;  %v1212_v31 = vunpack.c.l.b16 %v1208_v1  ;;  %p187_p6 = scmp.lt.s32.totalorder %s1481_s22, 7 }
  0x5a   : > { %v1262_v3 = vrot.slane %v1261_v54, 4  ;;  %v1211_v4 = vunpack.c.l.b16 %v1194_v63  ;;  %v1253_v7 = vsel %vm1892_vm6, %v1248_v2, %v1252_v57 }
  0x5b   : > { %v1304_v5 = vsel %vm1900_vm7, %v1666_v59, %v1303_v60  ;;  %v1308_v6 = vsel %vm1900_vm7, %v1667_v61, %v1307_v62  ;;  %v1270_v53 = vunpack.c.l.b16 %v1253_v7  ;;  %s2181_s22 = smov (!%p187_p6, %s1481_s22), 7 }
  0x5c   : > { %v1267_v8 = vsel %vm1892_vm6, %v1262_v3, %v1266_v58  ;;  %v1311_v9 = vunpack.c.l.b16 %v1304_v5  ;;  %v1312_v47 = vunpack.c.l.b16 %v1308_v6  ;;  %v1213_v10 = vpack.c.b16 %v1212_v31, %v1211_v4  ;;  %s190_s19 = sadd.s32 %s1482_s9, %s2181_s22 }
  0x5d   : > { %v1271_v40 = vunpack.c.l.b16 %v1267_v8  ;;  %s1483_s12 = sshll.u32 %s190_s19, 2 }
  0x5e   : > { %v1313_v11 = vpack.c.b16 %v1312_v47, %v1311_v9  ;;  %s192_s23 = scalar_lea.vmem %s2163_s3, %s1483_s12 }
  0x5f   : > { %v1272_v12 = vpack.c.b16 %v1271_v40, %v1270_v53 }
  0x64   : > { %1624 = vmatmul.msk.bf16.vlgmr.msra.gmra.mxu2 %vm214_vm1, %v1044_v28 }
  0x67   : > { %1640 = vmatmul.msk.bf16.vlgmr.msrb.gmra.mxu0 %vm214_vm1, %v1639_v41 }
  0x68   : > { %1630 = vmatmul.msk.bf16.vlgmr.msra.gmra.mxu3 %vm214_vm1, %v1085_v44  ;;  %1651 = vmatmul.msk.bf16.vlgmr.msrb.gmra.mxu1 %vm214_vm1, %v1650_v45 }
  0x74   : > { %1657 = vmatmul.msk.bf16.vlgmr.msrb.gmra.mxu2 %vm214_vm1, %v1213_v10 }
  0x77   : > { %1669 = vmatmul.msk.bf16.vlgmr.msra.gmra.mxu0 %vm214_vm1, %v1313_v11 }
  0x78   : > { %1663 = vmatmul.msk.bf16.vlgmr.msrb.gmra.mxu3 %vm214_vm1, %v1272_v12 }
  0x94   : > { %v231_v0 = vpop.f32.mrf.mxu0 }
  0x95   : > { %v256_v13 = vpop.f32.mrf.mxu1 }
  0x96   : > { %v257_v22 = vadd.f32 %v256_v13, %v231_v0 }
  0x9c   : > { %v233_v14 = vpop.f32.mrf.mxu0 }
  0x9d   : > { %v258_v15 = vpop.f32.mrf.mxu1 }
  0x9e   : > { %v259_v29 = vadd.f32 %v258_v15, %v233_v14 }
  0xa4   : > { %v419_v16 = vpop.f32.mrf.mxu0 }
  0xa5   : > { %v453_v49 = vpop.f32.mrf.mxu1 }
  0xa7   : > { %v316_v17 = vpop.f32.mrf.mxu2 }
  0xa8   : > { %v321_v23 = vadd.f32 %v316_v17, %v257_v22 }
  0xab   : > { %v375_v18 = vpop.f32.mrf.mxu3 }
  0xac   : > { %v421_v19 = vpop.f32.mrf.mxu0  ;;  %v380_v27 = vadd.f32 %v375_v18, %v321_v23 }
  0xad   : > { %v455_v20 = vpop.f32.mrf.mxu1 }
  0xae   : > { %v424_v30 = vadd.f32 %v419_v16, %v380_v27 }
  0xaf   : > { %v318_v21 = vpop.f32.mrf.mxu2 }
  0xb0   : > { %v322_v32 = vadd.f32 %v318_v21, %v259_v29  ;;  %v458_v35 = vadd.f32 %v453_v49, %v424_v30 }
  0xb3   : > { %v377_v24 = vpop.f32.mrf.mxu3 }
  0xb4   : > { %v605_v25 = vpop.f32.mrf.mxu0  ;;  %v381_v36 = vadd.f32 %v377_v24, %v322_v32 }
  0xb5   : > { %v646_v26 = vpop.f32.mrf.mxu1 }
  0xb6   : > { %v425_v41 = vadd.f32 %v421_v19, %v381_v36 }
  0xb7   : > { %v487_v28 = vpop.f32.mrf.mxu2 }
  0xb8   : > { %v492_v39 = vadd.f32 %v487_v28, %v458_v35  ;;  %v459_v45 = vadd.f32 %v455_v20, %v425_v41 }
  0xbb   : > { %v546_v33 = vpop.f32.mrf.mxu3 }
  0xbc   : > { %v607_v34 = vpop.f32.mrf.mxu0  ;;  %v551_v43 = vadd.f32 %v546_v33, %v492_v39 }
  0xbd   : > { %v648_v37 = vpop.f32.mrf.mxu1 }
  0xbe   : > { %v610_v48 = vadd.f32 %v605_v25, %v551_v43 }
  0xbf   : > { %v489_v38 = vpop.f32.mrf.mxu2 }
  0xc0   : > { %v493_v50 = vadd.f32 %v489_v38, %v459_v45  ;;  %v651_v54 = vadd.f32 %v646_v26, %v610_v48  ;;  %v1738_v38 = vld [vmem:[%s2162_s2] ss:$0 sm:$0xff] }
  0xc3   : > { %v548_v42 = vpop.f32.mrf.mxu3 }
  0xc4   : > { %v774_v44 = vpop.f32.mrf.mxu0  ;;  %v552_v55 = vadd.f32 %v548_v42, %v493_v50 }
  0xc5   : > { %v833_v51 = vpop.f32.mrf.mxu1 }
  0xc6   : > { %v611_v59 = vadd.f32 %v607_v34, %v552_v55 }
  0xc7   : > { %v681_v46 = vpop.f32.mrf.mxu2 }
  0xc8   : > { %v686_v57 = vadd.f32 %v681_v46, %v651_v54  ;;  %v652_v63 = vadd.f32 %v648_v37, %v611_v59 }
  0xcb   : > { %v715_v52 = vpop.f32.mrf.mxu3 }
  0xcc   : > { %v776_v56 = vpop.f32.mrf.mxu0  ;;  %v720_v60 = vadd.f32 %v715_v52, %v686_v57 }
  0xcd   : > { %v835_v61 = vpop.f32.mrf.mxu1 }
  0xce   : > { %v779_v2 = vadd.f32 %v774_v44, %v720_v60 }
  0xcf   : > { %v683_v58 = vpop.f32.mrf.mxu2 }
  0xd0   : > { %v687_v3 = vadd.f32 %v683_v58, %v652_v63  ;;  %v838_v31 = vadd.f32 %v833_v51, %v779_v2 }
  0xd3   : > { %v717_v62 = vpop.f32.mrf.mxu3 }
  0xd4   : > { %v942_v1 = vpop.f32.mrf.mxu0  ;;  %v721_v5 = vadd.f32 %v717_v62, %v687_v3 }
  0xd5   : > { %v1001_v8 = vpop.f32.mrf.mxu1 }
  0xd6   : > { %v780_v47 = vadd.f32 %v776_v56, %v721_v5 }
  0xd7   : > { %v874_v4 = vpop.f32.mrf.mxu2 }
  0xd8   : > { %v879_v7 = vadd.f32 %v874_v4, %v838_v31  ;;  %v839_v40 = vadd.f32 %v835_v61, %v780_v47 }
  0xdb   : > { %v908_v6 = vpop.f32.mrf.mxu3 }
  0xdc   : > { %v944_v9 = vpop.f32.mrf.mxu0  ;;  %v913_v53 = vadd.f32 %v908_v6, %v879_v7 }
  0xdd   : > { %v1003_v13 = vpop.f32.mrf.mxu1 }
  0xde   : > { %v947_v12 = vadd.f32 %v942_v1, %v913_v53 }
  0xdf   : > { %v876_v10 = vpop.f32.mrf.mxu2 }
  0xe0   : > { %v880_v0 = vadd.f32 %v876_v10, %v839_v40  ;;  %v1006_v16 = vadd.f32 %v1001_v8, %v947_v12 }
  0xe3   : > { %v910_v11 = vpop.f32.mrf.mxu3 }
  0xe4   : > { %v1136_v14 = vpop.f32.mrf.mxu0  ;;  %v914_v49 = vadd.f32 %v910_v11, %v880_v0 }
  0xe5   : > { %v1170_v23 = vpop.f32.mrf.mxu1 }
  0xe6   : > { %v948_v19 = vadd.f32 %v944_v9, %v914_v49 }
  0xe7   : > { %v1060_v15 = vpop.f32.mrf.mxu2 }
  0xe8   : > { %v1065_v17 = vadd.f32 %v1060_v15, %v1006_v16  ;;  %v1007_v22 = vadd.f32 %v1003_v13, %v948_v19 }
  0xeb   : > { %v1101_v18 = vpop.f32.mrf.mxu3 }
  0xec   : > { %v1106_v20 = vadd.f32 %v1101_v18, %v1065_v17  ;;  %v1138_v24 = vpop.f32.mrf.mxu0 }
  0xed   : > { %v1172_v34 = vpop.f32.mrf.mxu1 }
  0xee   : > { %v1141_v25 = vadd.f32 %v1136_v14, %v1106_v20 }
  0xef   : > { %v1062_v21 = vpop.f32.mrf.mxu2 }
  0xf0   : > { %v1066_v26 = vadd.f32 %v1062_v21, %v1007_v22  ;;  %v1175_v28 = vadd.f32 %v1170_v23, %v1141_v25 }
  0xf3   : > { %v1103_v27 = vpop.f32.mrf.mxu3 }
  0xf4   : > { %v1107_v29 = vadd.f32 %v1103_v27, %v1066_v26  ;;  %v1329_v35 = vpop.f32.mrf.mxu0 }
  0xf6   : > { %v1142_v33 = vadd.f32 %v1138_v24, %v1107_v29 }
  0xf7   : > { %v1229_v30 = vpop.f32.mrf.mxu2 }
  0xf8   : > { %v1234_v32 = vadd.f32 %v1229_v30, %v1175_v28  ;;  %v1176_v39 = vadd.f32 %v1172_v34, %v1142_v33 }
  0xfb   : > { %v1288_v36 = vpop.f32.mrf.mxu3 }
  0xfc   : > { %v1293_v37 = vadd.f32 %v1288_v36, %v1234_v32  ;;  %v1331_v51 = vpop.f32.mrf.mxu0 }
  0xfe   : > { %v1334_v41 = vadd.f32 %v1329_v35, %v1293_v37 }
  0xff   : > { %v1231_v42 = vpop.f32.mrf.mxu2 }
 0x100   : > { %v1340_v43 = vadd.f32 %v1738_v38, %v1334_v41  ;;  %v1235_v44 = vadd.f32 %v1231_v42, %v1176_v39 }
 0x102   : > { %v1342_v45 = vmax.f32 %v1340_v43, 0.0 }
 0x103   : > { %v1290_v46 = vpop.f32.mrf.mxu3 }
 0x104   : > { %v1344_v48 = vpack.c.bf16 %v1342_v45, %v1342_v45  ;;  %v1294_v50 = vadd.f32 %v1290_v46, %v1235_v44 }
 0x106   : > { %1347 = vst.msk [vmem:[%s192_s23] sm:$0xf] %vm1346_vm8, %v1344_v48  ;;  %v1335_v52 = vadd.f32 %v1331_v51, %v1294_v50 }
 0x108   : > { %v1341_v54 = vadd.f32 %v1738_v38, %v1335_v52 }
 0x10a   : > { %v1343_v55 = vmax.f32 %v1341_v54, 0.0 }
 0x10c   : > { %v1345_v56 = vpack.c.bf16 %v1343_v55, %v1343_v55 }
 0x10e   : > { %1348 = vst.msk [vmem:[%s192_s23 + $0x4] sm:$0xf] %vm1346_vm8, %v1345_v56 }
 0x10f PF: > { %s13_s16 = sadd.s32 1, %s1777_s16   ;;  %s2168_s12 = smov %s1769_s14 }
 0x110   : > { %p10_p7 = scmp.ge.s32.totalorder %s13_s16, 10   ;;  %s2169_s13 = smov %s1773_s15 }
 0x111   : > { %s2170_s14 = smov %s2173_s17  ;;  %s2171_s15 = smov %s2177_s18 }
 0x112   :  { %12 = sbr.rel (!%p10_p7) target bundleno = 3 (0x3), region = 96 }

// kernel: feature_extraction.11
= control target key start
LH: loop header
LB: loop body
LE: loop exit
PB: predicated region body
PF: predicated region fallthrough
CT: control target
= control target key end

     0   :  { %s1847_s12 = smov 0   ;;  %s1849_s13 = smov 0   ;;  %s2112_s0 = inlined_call_operand.vmem [shape: bf16[2,4,6,6,32], index: 0, kind: input, shape index: {}]   ;;  %s2113_s1 = inlined_call_operand.vmem [shape: bf16[25,32,32], index: 1, kind: input, shape index: {}]   ;;  %s2114_s2 = inlined_call_operand.vmem [shape: f32[1,32], index: 2, kind: input, shape index: {}]   ;;  %s2115_s3 = inlined_call_operand.vmem [shape: bf16[2,4,4,32], index: 3, kind: output, shape index: {}]  }
   0x1   :  { %s1851_s14 = smov 0   ;;  %s1853_s15 = smov 0  }
   0x2   :  { %s1855_s16 = smov 0  }
   0x3 LB: > { %s22_s17 = sadd.s32 1, %s1817_s14  ;;  %s25_s18 = sadd.s32 1, %s1821_s15  ;;  %s1825_s16 = sphi %s1855_s16, %s13_s16   ;;  %s1821_s15 = sphi %s1853_s15, %s2119_s15   ;;  %s1817_s14 = sphi %s1851_s14, %s2118_s14   ;;  %s1813_s13 = sphi %s1849_s13, %s2117_s13   ;;  %s1809_s12 = sphi %s1847_s12, %s2116_s12  }
   0x4   : > { %p23_p0 = scmp.ge.s32.totalorder %s22_s17, 4  ;;  %p1336_p1 = scmp.ge.s32.totalorder %s1825_s16, 1 }
   0x5   : > { %p151_p2 = scmp.lt.s32.totalorder %s1825_s16, 9 }
   0x6   : > { %s2121_s17 = smov (%p23_p0, %s22_s17), 0  ;;  %s2123_s18 = smov (!%p23_p0, %s25_s18), %s1821_s15 }
   0x7   : > { %p152_p3 = pnand %p1336_p1, %p151_p2  ;;  %p27_p4 = scmp.ge.s32.totalorder %s2123_s18, 2 }
   0x8   : > { %p178_p5 = scmp.lt.s32.totalorder (!%p152_p3), %s1813_s13, 1  ;;  %s1340_s9 = sshll.u32 (!%p152_p3), %s1809_s12, 2 }
   0x9   : > { %s2125_s18 = smov (%p27_p4, %s2123_s18), 0  ;;  %155 = sbr.rel (%p152_p3) target bundleno = 257 (0x101), region = 32 }
   0xa   : > { %p185_p6 = scmp.lt.s32.totalorder (!%p152_p3), %s1809_s12, 3 }
   0xe   : > { %v1698_v0 = vld [vmem:[%s2113_s1 + $0x18] sm:$0xff]  ;;  %v1696_v1 = vld [vmem:[%s2113_s1 + $0x8] sm:$0xff]  ;;  %v1697_v4 = vld [vmem:[%s2113_s1 + $0x10] sm:$0xff]  ;;  %s2127_s13 = smov (!%p178_p5, %s1813_s13), 1  ;;  %vm220_vm0 = vcmask 261120   ;;  %s2129_s12 = smov (!%p185_p6, %s1809_s12), 3 }
   0xf   : > { %v1700_v2 = vld [vmem:[%s2113_s1 + $0x28] sm:$0xff]  ;;  %v1702_v3 = vld [vmem:[%s2113_s1 + $0x38] sm:$0xff]  ;;  %230 = vmatpush.bf16.msra.mxu0 %v1698_v0  ;;  %258 = vmatpush.bf16.msra.mxu1 %v1696_v1  ;;  %v1695_v5 = vld [vmem:[%s2113_s1] sm:$0xff]  ;;  %s1745_s8 = smul.u32 96, %s2127_s13  ;;  %vm1221_vm1 = vcmask 254976  }
  0x10   : > { %302 = vmatpush.bf16.msra.mxu2 %v1700_v2  ;;  %347 = vmatpush.bf16.msra.mxu3 %v1702_v3  ;;  %v1704_v6 = vld [vmem:[%s2113_s1 + $0x48] sm:$0xff]  ;;  %v1699_v7 = vld [vmem:[%s2113_s1 + $0x20] sm:$0xff]  ;;  %v1701_v8 = vld [vmem:[%s2113_s1 + $0x30] sm:$0xff] }
  0x11   : > { %v1708_v9 = vld [vmem:[%s2113_s1 + $0x68] sm:$0xff]  ;;  %s182_s23 = scalar_lea.vmem %s2112_s0, %s1745_s8  ;;  %v1703_v10 = vld [vmem:[%s2113_s1 + $0x40] sm:$0xff]  ;;  %v1710_v11 = vld [vmem:[%s2113_s1 + $0x78] sm:$0xff] }
  0x12   : > { %v1706_v12 = vld [vmem:[%s2113_s1 + $0x58] sm:$0xff]  ;;  %s1925_s30 = scalar_lea.vmem %s182_s23, %s1340_s9  ;;  %v1707_v13 = vld [vmem:[%s2113_s1 + $0x60] sm:$0xff]  ;;  %v1712_v14 = vld [vmem:[%s2113_s1 + $0x88] sm:$0xff] }
  0x13   : > { %231 = vmatpush.bf16.msra.mxu0 %v1697_v4  ;;  %259 = vmatpush.bf16.msra.mxu1 %v1695_v5  ;;  %v1342_v15 = vld [vmem:[%s1925_s30 + $0x18] sm:$0x3]  ;;  %v194_v16 = vld [vmem:[%s1925_s30] sm:$0x3]  ;;  %v1705_v22 = vld [vmem:[%s2113_s1 + $0x50] sm:$0xff] }
  0x14   : > { %303 = vmatpush.bf16.msra.mxu2 %v1699_v7  ;;  %348 = vmatpush.bf16.msra.mxu3 %v1701_v8  ;;  %v265_v17 = vld [vmem:[%s1925_s30] sm:$0x7]  ;;  %v1378_v19 = vld [vmem:[%s1925_s30 + $0x18] sm:$0x7]  ;;  %v1709_v23 = vld [vmem:[%s2113_s1 + $0x70] sm:$0xff] }
  0x15   : > { %v272_v18 = vunpack.c.l.b16 %v265_v17  ;;  %v317_v20 = vunpack.c.l.b16 %v1378_v19  ;;  %v355_v21 = vld [vmem:[%s1925_s30] sm:$0x6]  ;;  %v1714_v25 = vld [vmem:[%s2113_s1 + $0x98] sm:$0xff]  ;;  %v1435_v31 = vld [vmem:[%s1925_s30 + $0x30] sm:$0x7] }
  0x16   : > { %1355 = vmatmul.msk.bf16.vlgmr.msra.gmra.mxu0 %vm220_vm0, %v1342_v15  ;;  %1364 = vmatmul.msk.bf16.vlgmr.msra.gmra.mxu1 %vm220_vm0, %v194_v16  ;;  %v1711_v27 = vld [vmem:[%s2113_s1 + $0x80] sm:$0xff]  ;;  %v362_v30 = vunpack.c.l.b16 %v355_v21  ;;  %v1713_v35 = vld [vmem:[%s2113_s1 + $0x90] sm:$0xff]  ;;  %v477_v37 = vunpack.c.l.b16 %v1435_v31  ;;  %v1716_v38 = vld [vmem:[%s2113_s1 + $0xa8] sm:$0xff] }
  0x17   : > { %386 = vmatpush.bf16.msrb.mxu0 %v1704_v6  ;;  %424 = vmatpush.bf16.msrb.mxu1 %v1706_v12  ;;  %v273_v24 = vpack.c.b16 %v272_v18, %v272_v18  ;;  %v318_v26 = vpack.c.b16 %v317_v20, %v317_v20  ;;  %v1718_v41 = vld [vmem:[%s2113_s1 + $0xb8] sm:$0xff]  ;;  %v1449_v43 = vld [vmem:[%s1925_s30 + $0x48] sm:$0x7]  ;;  %v1715_v45 = vld [vmem:[%s2113_s1 + $0xa0] sm:$0xff] }
  0x18   : > { %462 = vmatpush.bf16.msrb.mxu2 %v1708_v9  ;;  %507 = vmatpush.bf16.msrb.mxu3 %v1710_v11  ;;  %v363_v40 = vpack.c.b16 %v362_v30, %v362_v30  ;;  %v478_v44 = vpack.c.b16 %v477_v37, %v477_v37  ;;  %v522_v47 = vunpack.c.l.b16 %v1449_v43  ;;  %v1406_v48 = vld [vmem:[%s1925_s30 + $0x30] sm:$0x3]  ;;  %v1720_v50 = vld [vmem:[%s2113_s1 + $0xc8] sm:$0xff]  ;;  %v1722_v51 = vld [vmem:[%s2113_s1 + $0xd8] sm:$0xff] }
  0x19   : > { %v275_v28 = vshrl.u32 %v273_v24, 16  ;;  %v277_v29 = vshll.u32 %v273_v24, 16  ;;  %v320_v32 = vshrl.u32 %v318_v26, 16  ;;  %v322_v33 = vshll.u32 %v318_v26, 16  ;;  %v1717_v49 = vld [vmem:[%s2113_s1 + $0xb0] sm:$0xff]  ;;  %v1719_v55 = vld [vmem:[%s2113_s1 + $0xc0] sm:$0xff] }
  0x1a   : > { %v364_v46 = vrot.slane %v363_v40, 1  ;;  %v482_v52 = vshll.u32 %v478_v44, 16  ;;  %v523_v53 = vpack.c.b16 %v522_v47, %v522_v47  ;;  %v1463_v54 = vld [vmem:[%s1925_s30 + $0x30] sm:$0x6]  ;;  %v480_v57 = vshrl.u32 %v478_v44, 16  ;;  %v1724_v63 = vld [vmem:[%s2113_s1 + $0xe8] sm:$0xff] }
  0x1b   : > { %387 = vmatpush.bf16.msrb.mxu0 %v1703_v10  ;;  %425 = vmatpush.bf16.msrb.mxu1 %v1705_v22  ;;  %v279_v34 = vrot.slane %v277_v29, 1  ;;  %v324_v36 = vrot.slane %v322_v33, 1  ;;  %v1721_v56 = vld [vmem:[%s2113_s1 + $0xd0] sm:$0xff]  ;;  %v567_v60 = vunpack.c.l.b16 %v1463_v54  ;;  %v1421_v61 = vld [vmem:[%s1925_s30 + $0x48] sm:$0x3]  ;;  %v1726_v3 = vld [vmem:[%s2113_s1 + $0xf8] sm:$0xff] }
  0x1c   : > { %463 = vmatpush.bf16.msrb.mxu2 %v1707_v13  ;;  %508 = vmatpush.bf16.msrb.mxu3 %v1709_v23  ;;  %v484_v58 = vrot.slane %v482_v52, 1  ;;  %v527_v59 = vshll.u32 %v523_v53, 16  ;;  %v525_v0 = vshrl.u32 %v523_v53, 16  ;;  %v1507_v4 = vld [vmem:[%s1925_s30 + $0x4] sm:$0x7]  ;;  %v1725_v11 = vld [vmem:[%s2113_s1 + $0xf0] sm:$0xff] }
  0x1d   : > { %v280_v39 = vor.u32 %v279_v34, %v275_v28  ;;  %v325_v42 = vor.u32 %v324_v36, %v320_v32  ;;  %v568_v2 = vpack.c.b16 %v567_v60, %v567_v60  ;;  %v1521_v5 = vld [vmem:[%s1925_s30 + $0x1c] sm:$0x7]  ;;  %v1723_v6 = vld [vmem:[%s2113_s1 + $0xe0] sm:$0xff]  ;;  %v682_v9 = vunpack.c.l.b16 %v1507_v4  ;;  %v1728_v12 = vld [vmem:[%s2113_s1 + $0x108] sm:$0xff] }
  0x1e   : > { %v485_v62 = vor.u32 %v484_v58, %v480_v57  ;;  %v529_v1 = vrot.slane %v527_v59, 1  ;;  %v727_v10 = vunpack.c.l.b16 %v1521_v5  ;;  %v1730_v13 = vld [vmem:[%s2113_s1 + $0x118] sm:$0xff]  ;;  %v1727_v16 = vld [vmem:[%s2113_s1 + $0x100] sm:$0xff]  ;;  %v1729_v17 = vld [vmem:[%s2113_s1 + $0x110] sm:$0xff] }
  0x1f   : > { %552 = vmatpush.bf16.msra.mxu0 %v1712_v14  ;;  %591 = vmatpush.bf16.msra.mxu1 %v1714_v25  ;;  %v569_v8 = vrot.slane %v568_v2, 1  ;;  %v683_v14 = vpack.c.b16 %v682_v9, %v682_v9  ;;  %v1478_v20 = vld [vmem:[%s1925_s30 + $0x4] sm:$0x3]  ;;  %v1493_v21 = vld [vmem:[%s1925_s30 + $0x1c] sm:$0x3]  ;;  %v1732_v22 = vld [vmem:[%s2113_s1 + $0x128] sm:$0xff] }
  0x20   : > { %1377 = vmatmul.msk.bf16.vlgmr.msra.gmra.mxu2 %vm220_vm0, %v280_v39  ;;  %1391 = vmatmul.msk.bf16.vlgmr.msra.gmra.mxu3 %vm220_vm0, %v325_v42  ;;  %v530_v7 = vor.u32 %v529_v1, %v525_v0  ;;  %v728_v15 = vpack.c.b16 %v727_v10, %v727_v10  ;;  %v1579_v28 = vld [vmem:[%s1925_s30 + $0x34] sm:$0x7]  ;;  %v1535_v29 = vld [vmem:[%s1925_s30 + $0x4] sm:$0x6]  ;;  %v1738_v37 = vld [vmem:[%s2113_s1 + $0x158] sm:$0xff] }
  0x21   : > { %629 = vmatpush.bf16.msra.mxu2 %v1716_v38  ;;  %667 = vmatpush.bf16.msra.mxu3 %v1718_v41  ;;  %v687_v18 = vshll.u32 %v683_v14, 16  ;;  %v685_v23 = vshrl.u32 %v683_v14, 16  ;;  %v1731_v30 = vld [vmem:[%s2113_s1 + $0x120] sm:$0xff]  ;;  %v887_v33 = vunpack.c.l.b16 %v1579_v28  ;;  %v1733_v34 = vld [vmem:[%s2113_s1 + $0x130] sm:$0xff]  ;;  %v772_v36 = vunpack.c.l.b16 %v1535_v29  ;;  %v1593_v42 = vld [vmem:[%s1925_s30 + $0x4c] sm:$0x7] }
  0x22   : > { %v732_v19 = vshll.u32 %v728_v15, 16  ;;  %v730_v25 = vshrl.u32 %v728_v15, 16  ;;  %v1735_v39 = vld [vmem:[%s2113_s1 + $0x140] sm:$0xff]  ;;  %v1737_v41 = vld [vmem:[%s2113_s1 + $0x150] sm:$0xff]  ;;  %v1744_v57 = vld [vmem:[%s2113_s1 + $0x188] sm:$0xff] }
  0x23   : > { %553 = vmatpush.bf16.msra.mxu0 %v1711_v27  ;;  %592 = vmatpush.bf16.msra.mxu1 %v1713_v35  ;;  %v689_v24 = vrot.slane %v687_v18, 1  ;;  %v1734_v27 = vld [vmem:[%s2113_s1 + $0x138] sm:$0xff]  ;;  %v1736_v35 = vld [vmem:[%s2113_s1 + $0x148] sm:$0xff]  ;;  %v888_v38 = vpack.c.b16 %v887_v33, %v887_v33  ;;  %v773_v40 = vpack.c.b16 %v772_v36, %v772_v36  ;;  %v1550_v47 = vld [vmem:[%s1925_s30 + $0x34] sm:$0x3] }
  0x24   : > { %v734_v26 = vrot.slane %v732_v19, 1  ;;  %v1739_v52 = vld [vmem:[%s2113_s1 + $0x160] sm:$0xff]  ;;  %v1607_v54 = vld [vmem:[%s1925_s30 + $0x34] sm:$0x6]  ;;  %v1651_v0 = vld [vmem:[%s1925_s30 + $0x8] sm:$0x7] }
  0x25   : > { %630 = vmatpush.bf16.msra.mxu2 %v1715_v45  ;;  %668 = vmatpush.bf16.msra.mxu3 %v1717_v49  ;;  %v690_v31 = vor.u32 %v689_v24, %v685_v23  ;;  %v892_v43 = vshll.u32 %v888_v38, 16  ;;  %v774_v44 = vrot.slane %v773_v40, 1  ;;  %v932_v45 = vunpack.c.l.b16 %v1593_v42  ;;  %v1743_v60 = vld [vmem:[%s2113_s1 + $0x180] sm:$0xff] }
  0x26   : > { %1404 = vmatmul.msk.bf16.vlgmr.msrb.gmra.mxu0 %vm220_vm0, %v364_v46  ;;  %1419 = vmatmul.msk.bf16.vlgmr.msrb.gmra.mxu1 %vm220_vm0, %v1406_v48  ;;  %v735_v32 = vor.u32 %v734_v26, %v730_v25  ;;  %v1740_v46 = vld [vmem:[%s2113_s1 + $0x168] sm:$0xff]  ;;  %v890_v48 = vshrl.u32 %v888_v38, 16  ;;  %v977_v59 = vunpack.c.l.b16 %v1607_v54  ;;  %v1665_v1 = vld [vmem:[%s1925_s30 + $0x20] sm:$0x7] }
  0x27   : > { %712 = vmatpush.bf16.msrb.mxu0 %v1720_v50  ;;  %757 = vmatpush.bf16.msrb.mxu1 %v1722_v51  ;;  %v894_v49 = vrot.slane %v892_v43, 1  ;;  %v1742_v50 = vld [vmem:[%s2113_s1 + $0x178] sm:$0xff]  ;;  %v933_v51 = vpack.c.b16 %v932_v45, %v932_v45  ;;  %v1137_v5 = vunpack.c.l.b16 %v1665_v1  ;;  %v1637_v9 = vld [vmem:[%s1925_s30 + $0x20] sm:$0x3] }
  0x29   : > { %v895_v53 = vor.u32 %v894_v49, %v890_v48  ;;  %v937_v58 = vshll.u32 %v933_v51, 16 }
  0x2b   : > { %713 = vmatpush.bf16.msrb.mxu0 %v1719_v55  ;;  %758 = vmatpush.bf16.msrb.mxu1 %v1721_v56  ;;  %v1565_v55 = vld [vmem:[%s1925_s30 + $0x4c] sm:$0x3]  ;;  %v1741_v56 = vld [vmem:[%s2113_s1 + $0x170] sm:$0xff] }
  0x30   : > { %1434 = vmatmul.msk.bf16.vlgmr.msrb.gmra.mxu2 %vm220_vm0, %v1421_v61  ;;  %1448 = vmatmul.msk.bf16.vlgmr.msrb.gmra.mxu3 %vm220_vm0, %v485_v62  ;;  %v935_v61 = vshrl.u32 %v933_v51, 16  ;;  %v939_v62 = vrot.slane %v937_v58, 1 }
  0x31   : > { %796 = vmatpush.bf16.msrb.mxu2 %v1724_v63  ;;  %834 = vmatpush.bf16.msrb.mxu3 %v1726_v3  ;;  %v978_v63 = vpack.c.b16 %v977_v59, %v977_v59  ;;  %v1092_v3 = vunpack.c.l.b16 %v1651_v0 }
  0x32   : > { %v940_v2 = vor.u32 %v939_v62, %v935_v61 }
  0x33   : > { %v979_v4 = vrot.slane %v978_v63, 1 }
  0x35   : > { %797 = vmatpush.bf16.msrb.mxu2 %v1723_v6  ;;  %835 = vmatpush.bf16.msrb.mxu3 %v1725_v11  ;;  %v1093_v6 = vpack.c.b16 %v1092_v3, %v1092_v3 }
  0x36   : > { %1462 = vmatmul.msk.bf16.vlgmr.msra.gmra.mxu0 %vm220_vm0, %v530_v7  ;;  %1476 = vmatmul.msk.bf16.vlgmr.msra.gmra.mxu1 %vm220_vm0, %v569_v8  ;;  %v1138_v7 = vpack.c.b16 %v1137_v5, %v1137_v5  ;;  %v1622_v8 = vld [vmem:[%s1925_s30 + $0x8] sm:$0x3] }
  0x37   : > { %872 = vmatpush.bf16.msra.mxu0 %v1728_v12  ;;  %917 = vmatpush.bf16.msra.mxu1 %v1730_v13  ;;  %v1097_v10 = vshll.u32 %v1093_v6, 16  ;;  %v1679_v12 = vld [vmem:[%s1925_s30 + $0x8] sm:$0x6]  ;;  %v1095_v13 = vshrl.u32 %v1093_v6, 16  ;;  %s1338_s30 = sshll.u32 %s2127_s13, 2 }
  0x38   : > { %v1142_v11 = vshll.u32 %v1138_v7, 16  ;;  %v1140_v15 = vshrl.u32 %v1138_v7, 16  ;;  %s188_s4 = sadd.s32 %s1338_s30, %s2129_s12 }
  0x39   : > { %v1099_v14 = vrot.slane %v1097_v10, 1  ;;  %s1339_s5 = sshll.u32 %s188_s4, 1 }
  0x3a   : > { %s190_s8 = scalar_lea.vmem %s2115_s3, %s1339_s5 }
  0x3b   : > { %873 = vmatpush.bf16.msra.mxu0 %v1727_v16  ;;  %918 = vmatpush.bf16.msra.mxu1 %v1729_v17  ;;  %v1144_v16 = vrot.slane %v1142_v11, 1  ;;  %v1182_v17 = vunpack.c.l.b16 %v1679_v12  ;;  %v1100_v18 = vor.u32 %v1099_v14, %v1095_v13 }
  0x3d   : > { %v1145_v19 = vor.u32 %v1144_v16, %v1140_v15 }
  0x40   : > { %1491 = vmatmul.msk.bf16.vlgmr.msra.gmra.mxu2 %vm220_vm0, %v1478_v20  ;;  %1506 = vmatmul.msk.bf16.vlgmr.msra.gmra.mxu3 %vm220_vm0, %v1493_v21  ;;  %v1183_v20 = vpack.c.b16 %v1182_v17, %v1182_v17 }
  0x41   : > { %962 = vmatpush.bf16.msra.mxu2 %v1732_v22  ;;  %1001 = vmatpush.bf16.msra.mxu3 %v1734_v27 }
  0x42   : > { %v1184_v21 = vrot.slane %v1183_v20, 1 }
  0x45   : > { %963 = vmatpush.bf16.msra.mxu2 %v1731_v30  ;;  %1002 = vmatpush.bf16.msra.mxu3 %v1733_v34 }
  0x46   : > { %1520 = vmatmul.msk.bf16.vlgmr.msrb.gmra.mxu0 %vm220_vm0, %v690_v31  ;;  %1534 = vmatmul.msk.bf16.vlgmr.msrb.gmra.mxu1 %vm220_vm0, %v735_v32 }
  0x47   : > { %1039 = vmatpush.bf16.msrb.mxu0 %v1736_v35  ;;  %1077 = vmatpush.bf16.msrb.mxu1 %v1738_v37 }
  0x4b   : > { %1040 = vmatpush.bf16.msrb.mxu0 %v1735_v39  ;;  %1078 = vmatpush.bf16.msrb.mxu1 %v1737_v41 }
  0x50   : > { %1548 = vmatmul.msk.bf16.vlgmr.msrb.gmra.mxu2 %vm220_vm0, %v774_v44  ;;  %1563 = vmatmul.msk.bf16.vlgmr.msrb.gmra.mxu3 %vm220_vm0, %v1550_v47 }
  0x51   : > { %1122 = vmatpush.bf16.msrb.mxu2 %v1740_v46  ;;  %1167 = vmatpush.bf16.msrb.mxu3 %v1742_v50 }
  0x55   : > { %1123 = vmatpush.bf16.msrb.mxu2 %v1739_v52  ;;  %1168 = vmatpush.bf16.msrb.mxu3 %v1741_v56 }
  0x56   : > { %1578 = vmatmul.msk.bf16.vlgmr.msra.gmra.mxu0 %vm220_vm0, %v1565_v55  ;;  %1592 = vmatmul.msk.bf16.vlgmr.msra.gmra.mxu1 %vm220_vm0, %v895_v53 }
  0x57   : > { %1206 = vmatpush.bf16.msra.mxu0 %v1744_v57 }
  0x5b   : > { %1207 = vmatpush.bf16.msra.mxu0 %v1743_v60 }
  0x60   : > { %1606 = vmatmul.msk.bf16.vlgmr.msra.gmra.mxu2 %vm220_vm0, %v940_v2  ;;  %1620 = vmatmul.msk.bf16.vlgmr.msra.gmra.mxu3 %vm220_vm0, %v979_v4 }
  0x66   : > { %1635 = vmatmul.msk.bf16.vlgmr.msrb.gmra.mxu0 %vm220_vm0, %v1622_v8  ;;  %1650 = vmatmul.msk.bf16.vlgmr.msrb.gmra.mxu1 %vm220_vm0, %v1637_v9 }
  0x70   : > { %1664 = vmatmul.msk.bf16.vlgmr.msrb.gmra.mxu2 %vm220_vm0, %v1100_v18  ;;  %1678 = vmatmul.msk.bf16.vlgmr.msrb.gmra.mxu3 %vm220_vm0, %v1145_v19 }
  0x76   : > { %1692 = vmatmul.msk.bf16.vlgmr.msra.gmra.mxu0 %vm220_vm0, %v1184_v21 }
  0x93   : > { %v233_v22 = vpop.f32.mrf.mxu0  ;;  %v261_v23 = vpop.f32.mrf.mxu1 }
  0x94   : > { %v262_v32 = vadd.f32 %v261_v23, %v233_v22 }
  0x9b   : > { %v235_v24 = vpop.f32.mrf.mxu0  ;;  %v263_v25 = vpop.f32.mrf.mxu1 }
  0xa3   : > { %v305_v26 = vpop.f32.mrf.mxu2  ;;  %v389_v27 = vpop.f32.mrf.mxu0 }
  0xa4   : > { %v350_v28 = vpop.f32.mrf.mxu3  ;;  %v427_v29 = vpop.f32.mrf.mxu1  ;;  %v309_v35 = vadd.f32 %v305_v26, %v262_v32 }
  0xa6   : > { %v354_v36 = vadd.f32 %v350_v28, %v309_v35  ;;  %v1786_v28 = vld [vmem:[%s2114_s2] ss:$0 sm:$0xff] }
  0xa8   : > { %v393_v41 = vadd.f32 %v389_v27, %v354_v36 }
  0xaa   : > { %v431_v42 = vadd.f32 %v427_v29, %v393_v41 }
  0xab   : > { %v307_v30 = vpop.f32.mrf.mxu2  ;;  %v391_v31 = vpop.f32.mrf.mxu0 }
  0xac   : > { %v352_v33 = vpop.f32.mrf.mxu3  ;;  %v429_v34 = vpop.f32.mrf.mxu1 }
  0xb3   : > { %v465_v37 = vpop.f32.mrf.mxu2  ;;  %v555_v38 = vpop.f32.mrf.mxu0 }
  0xb4   : > { %v510_v39 = vpop.f32.mrf.mxu3  ;;  %v594_v40 = vpop.f32.mrf.mxu1  ;;  %v469_v45 = vadd.f32 %v465_v37, %v431_v42 }
  0xb6   : > { %v514_v48 = vadd.f32 %v510_v39, %v469_v45 }
  0xb8   : > { %v559_v51 = vadd.f32 %v555_v38, %v514_v48 }
  0xba   : > { %v598_v54 = vadd.f32 %v594_v40, %v559_v51 }
  0xbb   : > { %v467_v43 = vpop.f32.mrf.mxu2  ;;  %v557_v44 = vpop.f32.mrf.mxu0 }
  0xbc   : > { %v512_v46 = vpop.f32.mrf.mxu3  ;;  %v596_v47 = vpop.f32.mrf.mxu1 }
  0xc3   : > { %v632_v49 = vpop.f32.mrf.mxu2  ;;  %v715_v50 = vpop.f32.mrf.mxu0 }
  0xc4   : > { %v670_v52 = vpop.f32.mrf.mxu3  ;;  %v760_v53 = vpop.f32.mrf.mxu1  ;;  %v636_v55 = vadd.f32 %v632_v49, %v598_v54 }
  0xc6   : > { %v674_v60 = vadd.f32 %v670_v52, %v636_v55 }
  0xc8   : > { %v719_v61 = vadd.f32 %v715_v50, %v674_v60 }
  0xca   : > { %v764_v2 = vadd.f32 %v760_v53, %v719_v61 }
  0xcb   : > { %v634_v56 = vpop.f32.mrf.mxu2  ;;  %v717_v57 = vpop.f32.mrf.mxu0 }
  0xcc   : > { %v672_v58 = vpop.f32.mrf.mxu3  ;;  %v762_v59 = vpop.f32.mrf.mxu1 }
  0xd3   : > { %v799_v62 = vpop.f32.mrf.mxu2  ;;  %v875_v63 = vpop.f32.mrf.mxu0 }
  0xd4   : > { %v837_v0 = vpop.f32.mrf.mxu3  ;;  %v920_v1 = vpop.f32.mrf.mxu1  ;;  %v803_v3 = vadd.f32 %v799_v62, %v764_v2 }
  0xd6   : > { %v841_v6 = vadd.f32 %v837_v0, %v803_v3 }
  0xd8   : > { %v879_v9 = vadd.f32 %v875_v63, %v841_v6 }
  0xda   : > { %v924_v12 = vadd.f32 %v920_v1, %v879_v9 }
  0xdb   : > { %v801_v4 = vpop.f32.mrf.mxu2  ;;  %v877_v5 = vpop.f32.mrf.mxu0 }
  0xdc   : > { %v839_v7 = vpop.f32.mrf.mxu3  ;;  %v922_v8 = vpop.f32.mrf.mxu1 }
  0xe3   : > { %v965_v10 = vpop.f32.mrf.mxu2  ;;  %v1042_v11 = vpop.f32.mrf.mxu0 }
  0xe4   : > { %v1004_v13 = vpop.f32.mrf.mxu3  ;;  %v1080_v14 = vpop.f32.mrf.mxu1  ;;  %v969_v15 = vadd.f32 %v965_v10, %v924_v12 }
  0xe6   : > { %v1008_v16 = vadd.f32 %v1004_v13, %v969_v15 }
  0xe8   : > { %v1046_v21 = vadd.f32 %v1042_v11, %v1008_v16 }
  0xea   : > { %v1084_v22 = vadd.f32 %v1080_v14, %v1046_v21 }
  0xeb   : > { %v967_v17 = vpop.f32.mrf.mxu2  ;;  %v1044_v18 = vpop.f32.mrf.mxu0 }
  0xec   : > { %v1006_v19 = vpop.f32.mrf.mxu3  ;;  %v1082_v20 = vpop.f32.mrf.mxu1 }
  0xf3   : > { %v1125_v23 = vpop.f32.mrf.mxu2  ;;  %v1209_v24 = vpop.f32.mrf.mxu0 }
  0xf4   : > { %v1129_v25 = vadd.f32 %v1125_v23, %v1084_v22  ;;  %v1170_v26 = vpop.f32.mrf.mxu3 }
  0xf6   : > { %v1174_v27 = vadd.f32 %v1170_v26, %v1129_v25 }
  0xf8   : > { %v1213_v29 = vadd.f32 %v1209_v24, %v1174_v27 }
  0xfa   : > { %v1218_v30 = vadd.f32 %v1786_v28, %v1213_v29 }
  0xfb   : > { %v1127_v31 = vpop.f32.mrf.mxu2  ;;  %v1211_v32 = vpop.f32.mrf.mxu0 }
  0xfc   : > { %v1219_v33 = vmax.f32 %v1218_v30, 0.0  ;;  %v1172_v34 = vpop.f32.mrf.mxu3 }
  0xfe   : > { %v1220_v35 = vpack.c.bf16 %v1219_v33, %v1219_v33 }
 0x100   : > { %1222 = vst.msk [vmem:[%s190_s8] sm:$0x3] %vm1221_vm1, %v1220_v35 }
 0x101 PF: > { %s13_s16 = sadd.s32 1, %s1825_s16   ;;  %s2116_s12 = smov %s1817_s14 }
 0x102   : > { %p10_p7 = scmp.ge.s32.totalorder %s13_s16, 10   ;;  %s2117_s13 = smov %s1821_s15 }
 0x103   : > { %s2118_s14 = smov %s2121_s17  ;;  %s2119_s15 = smov %s2125_s18 }
 0x104   :  { %12 = sbr.rel (!%p10_p7) target bundleno = 3 (0x3), region = 96 }

// kernel: feature_extraction.12
= control target key start
LH: loop header
LB: loop body
LE: loop exit
PB: predicated region body
PF: predicated region fallthrough
CT: control target
= control target key end

     0   :  { %s1834_s12 = smov 0   ;;  %s1836_s13 = smov 0   ;;  %s2099_s0 = inlined_call_operand.vmem [shape: bf16[2,4,4,4,32], index: 0, kind: input, shape index: {}]   ;;  %s2100_s1 = inlined_call_operand.vmem [shape: bf16[25,32,32], index: 1, kind: input, shape index: {}]   ;;  %s2101_s2 = inlined_call_operand.vmem [shape: f32[1,32], index: 2, kind: input, shape index: {}]   ;;  %s2102_s3 = inlined_call_operand.vmem [shape: bf16[2,2,2,32], index: 3, kind: output, shape index: {}]  }
   0x1   :  { %s1838_s14 = smov 0   ;;  %s1840_s15 = smov 0  }
   0x2   :  { %s1842_s16 = smov 0  }
   0x3 LB: > { %s22_s17 = sadd.s32 1, %s1804_s14  ;;  %s25_s18 = sadd.s32 1, %s1808_s15  ;;  %s1812_s16 = sphi %s1842_s16, %s13_s16   ;;  %s1808_s15 = sphi %s1840_s15, %s2106_s15   ;;  %s1804_s14 = sphi %s1838_s14, %s2105_s14   ;;  %s1800_s13 = sphi %s1836_s13, %s2104_s13   ;;  %s1796_s12 = sphi %s1834_s12, %s2103_s12  }
   0x4   : > { %p23_p0 = scmp.ge.s32.totalorder %s22_s17, 2  ;;  %p1323_p1 = scmp.ge.s32.totalorder %s1812_s16, 1 }
   0x5   : > { %p151_p2 = scmp.lt.s32.totalorder %s1812_s16, 5 }
   0x6   : > { %s2108_s17 = smov (%p23_p0, %s22_s17), 0  ;;  %s2110_s18 = smov (!%p23_p0, %s25_s18), %s1808_s15 }
   0x7   : > { %p152_p3 = pnand %p1323_p1, %p151_p2  ;;  %p27_p4 = scmp.ge.s32.totalorder %s2110_s18, 2 }
   0x8   : > { %p177_p5 = scmp.lt.s32.totalorder (!%p152_p3), %s1800_s13, 1  ;;  %s1327_s4 = sshll.u32 (!%p152_p3), %s1796_s12, 1 }
   0x9   : > { %s2112_s18 = smov (%p27_p4, %s2110_s18), 0  ;;  %155 = sbr.rel (%p152_p3) target bundleno = 280 (0x118), region = 32 }
   0xa   : > { %p184_p6 = scmp.lt.s32.totalorder (!%p152_p3), %s1796_s12, 1 }
   0xe   : > { %v1686_v0 = vld [vmem:[%s2100_s1 + $0x18] sm:$0xff]  ;;  %v1688_v1 = vld [vmem:[%s2100_s1 + $0x28] sm:$0xff]  ;;  %v1685_v3 = vld [vmem:[%s2100_s1 + $0x10] sm:$0xff]  ;;  %s2114_s13 = smov (!%p177_p5, %s1800_s13), 1  ;;  %vm218_vm0 = vcmask 261120   ;;  %s2116_s12 = smov (!%p184_p6, %s1796_s12), 1 }
   0xf   : > { %v1684_v2 = vld [vmem:[%s2100_s1 + $0x8] sm:$0xff]  ;;  %228 = vmatpush.bf16.msra.mxu0 %v1686_v0  ;;  %299 = vmatpush.bf16.msra.mxu2 %v1688_v1  ;;  %v1687_v4 = vld [vmem:[%s2100_s1 + $0x20] sm:$0xff]  ;;  %v1690_v5 = vld [vmem:[%s2100_s1 + $0x38] sm:$0xff]  ;;  %s1682_s9 = sshll.u32 %s2114_s13, 5  ;;  %s1326_s30 = sshll.u32 %s2114_s13, 1  ;;  %vm1214_vm1 = vcmask 253952  }
  0x10   : > { %256 = vmatpush.bf16.msra.mxu1 %v1684_v2  ;;  %v1683_v6 = vld [vmem:[%s2100_s1] sm:$0xff]  ;;  %v1692_v7 = vld [vmem:[%s2100_s1 + $0x48] sm:$0xff]  ;;  %343 = vmatpush.bf16.msra.mxu3 %v1690_v5  ;;  %v1689_v8 = vld [vmem:[%s2100_s1 + $0x30] sm:$0xff]  ;;  %s181_s23 = scalar_lea.vmem %s2099_s0, %s1682_s9 }
  0x11   : > { %v1696_v9 = vld [vmem:[%s2100_s1 + $0x68] sm:$0xff]  ;;  %v1694_v10 = vld [vmem:[%s2100_s1 + $0x58] sm:$0xff]  ;;  %s1906_s26 = scalar_lea.vmem %s181_s23, %s1327_s4  ;;  %v1691_v11 = vld [vmem:[%s2100_s1 + $0x40] sm:$0xff]  ;;  %s187_s4 = sadd.s32 %s1326_s30, %s2116_s12 }
  0x12   : > { %v1698_v12 = vld [vmem:[%s2100_s1 + $0x78] sm:$0xff]  ;;  %v1329_v13 = vld [vmem:[%s1906_s26 + $0x8] sm:$0x1]  ;;  %v263_v14 = vld [vmem:[%s1906_s26] sm:$0x3]  ;;  %s188_s7 = scalar_lea.vmem %s2102_s3, %s187_s4 }
  0x13   : > { %229 = vmatpush.bf16.msra.mxu0 %v1685_v3  ;;  %300 = vmatpush.bf16.msra.mxu2 %v1687_v4  ;;  %v192_v15 = vld [vmem:[%s1906_s26] sm:$0x1]  ;;  %270 = vst [vmem:[#allocation1] ss:$4 sm:$0xff] %v263_v14  ;;  %v1693_v17 = vld [vmem:[%s2100_s1 + $0x50] sm:$0xff]  ;;  %v1700_v20 = vld [vmem:[%s2100_s1 + $0x88] sm:$0xff] }
  0x14   : > { %257 = vmatpush.bf16.msra.mxu1 %v1683_v6  ;;  %344 = vmatpush.bf16.msra.mxu3 %v1689_v8  ;;  %v1695_v16 = vld [vmem:[%s2100_s1 + $0x60] sm:$0xff]  ;;  %v1697_v18 = vld [vmem:[%s2100_s1 + $0x70] sm:$0xff]  ;;  %v1365_v19 = vld [vmem:[%s1906_s26 + $0x8] sm:$0x3] }
  0x15   : > { %v1702_v21 = vld [vmem:[%s2100_s1 + $0x98] sm:$0xff]  ;;  %v1699_v23 = vld [vmem:[%s2100_s1 + $0x80] sm:$0xff]  ;;  %v1704_v27 = vld [vmem:[%s2100_s1 + $0xa8] sm:$0xff] }
  0x16   : > { %1342 = vmatmul.msk.bf16.vlgmr.msra.gmra.mxu0 %vm218_vm0, %v1329_v13  ;;  %v351_v29 = vld [vmem:[%s1906_s26] sm:$0x2]  ;;  %v1701_v30 = vld [vmem:[%s2100_s1 + $0x90] sm:$0xff]  ;;  %v1706_v37 = vld [vmem:[%s2100_s1 + $0xb8] sm:$0xff] }
  0x17   : > { %383 = vmatpush.bf16.msrb.mxu0 %v1692_v7  ;;  %459 = vmatpush.bf16.msrb.mxu2 %v1696_v9  ;;  %v1393_v32 = vld [vmem:[%s1906_s26 + $0x10] sm:$0x1]  ;;  %v1703_v33 = vld [vmem:[%s2100_s1 + $0xa0] sm:$0xff]  ;;  %v1708_v42 = vld [vmem:[%s2100_s1 + $0xc8] sm:$0xff] }
  0x18   : > { %421 = vmatpush.bf16.msrb.mxu1 %v1694_v10  ;;  %503 = vmatpush.bf16.msrb.mxu3 %v1698_v12  ;;  %v1422_v39 = vld [vmem:[%s1906_s26 + $0x10] sm:$0x3]  ;;  %v1408_v44 = vld [vmem:[%s1906_s26 + $0x18] sm:$0x1]  ;;  %v1707_v45 = vld [vmem:[%s2100_s1 + $0xc0] sm:$0xff] }
  0x19   : > { %1351 = vmatmul.msk.bf16.vlgmr.msra.gmra.mxu1 %vm218_vm0, %v192_v15  ;;  %v1705_v41 = vld [vmem:[%s2100_s1 + $0xb0] sm:$0xff]  ;;  %v1436_v46 = vld [vmem:[%s1906_s26 + $0x18] sm:$0x3]  ;;  %v1712_v48 = vld [vmem:[%s2100_s1 + $0xe8] sm:$0xff] }
  0x1a   : > { %v271_v22 = vld.sshfl [vmem:[#allocation1] sm:$0xff pattern:$0x73625140]  ;;  %v1710_v47 = vld [vmem:[%s2100_s1 + $0xd8] sm:$0xff]  ;;  %v1709_v50 = vld [vmem:[%s2100_s1 + $0xd0] sm:$0xff] }
  0x1b   : > { %384 = vmatpush.bf16.msrb.mxu0 %v1691_v11  ;;  %460 = vmatpush.bf16.msrb.mxu2 %v1695_v16  ;;  %v272_v24 = vshrl.u32 %v271_v22, 16  ;;  %v274_v25 = vshll.u32 %v271_v22, 16  ;;  %314 = vst [vmem:[#allocation1] ss:$4 sm:$0xff] %v1365_v19  ;;  %v1714_v54 = vld [vmem:[%s2100_s1 + $0xf8] sm:$0xff]  ;;  %v1711_v57 = vld [vmem:[%s2100_s1 + $0xe0] sm:$0xff] }
  0x1c   : > { %422 = vmatpush.bf16.msrb.mxu1 %v1693_v17  ;;  %504 = vmatpush.bf16.msrb.mxu3 %v1697_v18  ;;  %v1450_v56 = vld [vmem:[%s1906_s26 + $0x10] sm:$0x2]  ;;  %v1465_v63 = vld [vmem:[%s1906_s26 + $0x2] sm:$0x1]  ;;  %v1716_v0 = vld [vmem:[%s2100_s1 + $0x108] sm:$0xff] }
  0x1d   : > { %v276_v26 = vrot.slane %v274_v25, 1  ;;  %v1713_v59 = vld [vmem:[%s2100_s1 + $0xf0] sm:$0xff]  ;;  %v1494_v2 = vld [vmem:[%s1906_s26 + $0x2] sm:$0x3]  ;;  %v1720_v3 = vld [vmem:[%s2100_s1 + $0x128] sm:$0xff] }
  0x1e   : > { %v1718_v5 = vld [vmem:[%s2100_s1 + $0x118] sm:$0xff]  ;;  %v1715_v6 = vld [vmem:[%s2100_s1 + $0x100] sm:$0xff]  ;;  %v1480_v8 = vld [vmem:[%s1906_s26 + $0xa] sm:$0x1] }
  0x1f   : > { %547 = vmatpush.bf16.msra.mxu0 %v1700_v20  ;;  %v277_v28 = vor.u32 %v276_v26, %v272_v24  ;;  %v1717_v9 = vld [vmem:[%s2100_s1 + $0x110] sm:$0xff]  ;;  %v1508_v10 = vld [vmem:[%s1906_s26 + $0xa] sm:$0x3]  ;;  %v1722_v11 = vld [vmem:[%s2100_s1 + $0x138] sm:$0xff] }
  0x20   : > { %587 = vmatpush.bf16.msra.mxu1 %v1702_v21  ;;  %v1719_v12 = vld [vmem:[%s2100_s1 + $0x120] sm:$0xff]  ;;  %v1721_v19 = vld [vmem:[%s2100_s1 + $0x130] sm:$0xff]  ;;  %v1724_v20 = vld [vmem:[%s2100_s1 + $0x148] sm:$0xff] }
  0x21   : > { %1364 = vmatmul.msk.bf16.vlgmr.msra.gmra.mxu2 %vm218_vm0, %v277_v28  ;;  %v1522_v18 = vld [vmem:[%s1906_s26 + $0x2] sm:$0x2]  ;;  %v1537_v26 = vld [vmem:[%s1906_s26 + $0x12] sm:$0x1]  ;;  %v1730_v28 = vld [vmem:[%s2100_s1 + $0x178] sm:$0xff] }
  0x22   : > { %v315_v31 = vld.sshfl [vmem:[#allocation1] sm:$0xff pattern:$0x73625140]  ;;  %625 = vmatpush.bf16.msra.mxu2 %v1704_v27  ;;  %v1726_v27 = vld [vmem:[%s2100_s1 + $0x158] sm:$0xff] }
  0x23   : > { %548 = vmatpush.bf16.msra.mxu0 %v1699_v23  ;;  %v316_v34 = vshrl.u32 %v315_v31, 16  ;;  %v318_v35 = vshll.u32 %v315_v31, 16  ;;  %358 = vst [vmem:[#allocation1] ss:$4 sm:$0xff] %v351_v29  ;;  %v1723_v24 = vld [vmem:[%s2100_s1 + $0x140] sm:$0xff] }
  0x24   : > { %588 = vmatpush.bf16.msra.mxu1 %v1701_v30  ;;  %v1566_v30 = vld [vmem:[%s1906_s26 + $0x12] sm:$0x3] }
  0x25   : > { %v320_v36 = vrot.slane %v318_v35, 1  ;;  %v1552_v35 = vld [vmem:[%s1906_s26 + $0x1a] sm:$0x1] }
  0x26   : > { %626 = vmatpush.bf16.msra.mxu2 %v1703_v33  ;;  %v1725_v33 = vld [vmem:[%s2100_s1 + $0x150] sm:$0xff] }
  0x27   : > { %v321_v38 = vor.u32 %v320_v36, %v316_v34  ;;  %v1727_v36 = vld [vmem:[%s2100_s1 + $0x160] sm:$0xff] }
  0x29   : > { %1406 = vmatmul.msk.bf16.vlgmr.msrb.gmra.mxu1 %vm218_vm0, %v1393_v32  ;;  %1378 = vmatmul.msk.bf16.vlgmr.msra.gmra.mxu3 %vm218_vm0, %v321_v38  ;;  %v1728_v32 = vld [vmem:[%s2100_s1 + $0x168] sm:$0xff]  ;;  %v1729_v38 = vld [vmem:[%s2100_s1 + $0x170] sm:$0xff] }
  0x2a   : > { %v359_v40 = vld.sshfl [vmem:[#allocation1] sm:$0xff pattern:$0x73625140]  ;;  %663 = vmatpush.bf16.msra.mxu3 %v1706_v37  ;;  %751 = vmatpush.bf16.msrb.mxu1 %v1710_v47  ;;  %v1580_v37 = vld [vmem:[%s1906_s26 + $0x1a] sm:$0x3] }
  0x2b   : > { %v361_v43 = vrot.slane %v359_v40, 1  ;;  %474 = vst [vmem:[#allocation1] ss:$4 sm:$0xff] %v1422_v39  ;;  %v1732_v39 = vld [vmem:[%s2100_s1 + $0x188] sm:$0xff] }
  0x2d   : > { %1391 = vmatmul.msk.bf16.vlgmr.msrb.gmra.mxu0 %vm218_vm0, %v361_v43 }
  0x2e   : > { %664 = vmatpush.bf16.msra.mxu3 %v1705_v41  ;;  %707 = vmatpush.bf16.msrb.mxu0 %v1708_v42 }
  0x2f   : > { %752 = vmatpush.bf16.msrb.mxu1 %v1709_v50 }
  0x31   : > { %1421 = vmatmul.msk.bf16.vlgmr.msrb.gmra.mxu2 %vm218_vm0, %v1408_v44 }
  0x32   : > { %v475_v49 = vld.sshfl [vmem:[#allocation1] sm:$0xff pattern:$0x73625140]  ;;  %708 = vmatpush.bf16.msrb.mxu0 %v1707_v45  ;;  %791 = vmatpush.bf16.msrb.mxu2 %v1712_v48  ;;  %v1594_v45 = vld [vmem:[%s1906_s26 + $0x12] sm:$0x2] }
  0x33   : > { %v476_v51 = vshrl.u32 %v475_v49, 16  ;;  %v478_v52 = vshll.u32 %v475_v49, 16  ;;  %518 = vst [vmem:[#allocation1] ss:$4 sm:$0xff] %v1436_v46  ;;  %v1731_v46 = vld [vmem:[%s2100_s1 + $0x180] sm:$0xff] }
  0x35   : > { %v480_v53 = vrot.slane %v478_v52, 1 }
  0x36   : > { %792 = vmatpush.bf16.msrb.mxu2 %v1711_v57  ;;  %v1652_v57 = vld [vmem:[%s1906_s26 + $0xc] sm:$0x3] }
  0x37   : > { %v481_v55 = vor.u32 %v480_v53, %v476_v51  ;;  %v1609_v51 = vld [vmem:[%s1906_s26 + $0x4] sm:$0x1] }
  0x38   : > { %v1638_v53 = vld [vmem:[%s1906_s26 + $0x4] sm:$0x3] }
  0x39   : > { %1435 = vmatmul.msk.bf16.vlgmr.msrb.gmra.mxu3 %vm218_vm0, %v481_v55 }
  0x3a   : > { %v519_v58 = vld.sshfl [vmem:[#allocation1] sm:$0xff pattern:$0x73625140]  ;;  %829 = vmatpush.bf16.msrb.mxu3 %v1714_v54 }
  0x3b   : > { %v520_v60 = vshrl.u32 %v519_v58, 16  ;;  %v522_v61 = vshll.u32 %v519_v58, 16  ;;  %562 = vst [vmem:[#allocation1] ss:$4 sm:$0xff] %v1450_v56  ;;  %v1624_v56 = vld [vmem:[%s1906_s26 + $0xc] sm:$0x1] }
  0x3d   : > { %v524_v62 = vrot.slane %v522_v61, 1 }
  0x3e   : > { %830 = vmatpush.bf16.msrb.mxu3 %v1713_v59 }
  0x3f   : > { %v525_v1 = vor.u32 %v524_v62, %v520_v60 }
  0x41   : > { %1449 = vmatmul.msk.bf16.vlgmr.msra.gmra.mxu0 %vm218_vm0, %v525_v1  ;;  %1478 = vmatmul.msk.bf16.vlgmr.msra.gmra.mxu2 %vm218_vm0, %v1465_v63  ;;  %v1666_v63 = vld [vmem:[%s1906_s26 + $0x4] sm:$0x2] }
  0x42   : > { %v563_v4 = vld.sshfl [vmem:[#allocation1] sm:$0xff pattern:$0x73625140]  ;;  %867 = vmatpush.bf16.msra.mxu0 %v1716_v0  ;;  %955 = vmatpush.bf16.msra.mxu2 %v1720_v3 }
  0x43   : > { %v565_v7 = vrot.slane %v563_v4, 1  ;;  %678 = vst [vmem:[#allocation1] ss:$4 sm:$0xff] %v1494_v2 }
  0x45   : > { %1463 = vmatmul.msk.bf16.vlgmr.msra.gmra.mxu1 %vm218_vm0, %v565_v7 }
  0x46   : > { %911 = vmatpush.bf16.msra.mxu1 %v1718_v5  ;;  %868 = vmatpush.bf16.msra.mxu0 %v1715_v6 }
  0x47   : > { %956 = vmatpush.bf16.msra.mxu2 %v1719_v12 }
  0x49   : > { %1493 = vmatmul.msk.bf16.vlgmr.msra.gmra.mxu3 %vm218_vm0, %v1480_v8 }
  0x4a   : > { %v679_v13 = vld.sshfl [vmem:[#allocation1] sm:$0xff pattern:$0x73625140]  ;;  %912 = vmatpush.bf16.msra.mxu1 %v1717_v9  ;;  %995 = vmatpush.bf16.msra.mxu3 %v1722_v11 }
  0x4b   : > { %v680_v14 = vshrl.u32 %v679_v13, 16  ;;  %v682_v15 = vshll.u32 %v679_v13, 16  ;;  %722 = vst [vmem:[#allocation1] ss:$4 sm:$0xff] %v1508_v10 }
  0x4d   : > { %v684_v16 = vrot.slane %v682_v15, 1 }
  0x4e   : > { %996 = vmatpush.bf16.msra.mxu3 %v1721_v19 }
  0x4f   : > { %v685_v17 = vor.u32 %v684_v16, %v680_v14 }
  0x51   : > { %1507 = vmatmul.msk.bf16.vlgmr.msrb.gmra.mxu0 %vm218_vm0, %v685_v17 }
  0x52   : > { %v723_v21 = vld.sshfl [vmem:[#allocation1] sm:$0xff pattern:$0x73625140]  ;;  %1033 = vmatpush.bf16.msrb.mxu0 %v1724_v20 }
  0x53   : > { %v724_v22 = vshrl.u32 %v723_v21, 16  ;;  %v726_v23 = vshll.u32 %v723_v21, 16  ;;  %766 = vst [vmem:[#allocation1] ss:$4 sm:$0xff] %v1522_v18 }
  0x55   : > { %v728_v25 = vrot.slane %v726_v23, 1 }
  0x56   : > { %1034 = vmatpush.bf16.msrb.mxu0 %v1723_v24 }
  0x57   : > { %v729_v29 = vor.u32 %v728_v25, %v724_v22 }
  0x59   : > { %1521 = vmatmul.msk.bf16.vlgmr.msrb.gmra.mxu1 %vm218_vm0, %v729_v29  ;;  %1550 = vmatmul.msk.bf16.vlgmr.msrb.gmra.mxu3 %vm218_vm0, %v1537_v26 }
  0x5a   : > { %v767_v31 = vld.sshfl [vmem:[#allocation1] sm:$0xff pattern:$0x73625140]  ;;  %1071 = vmatpush.bf16.msrb.mxu1 %v1726_v27  ;;  %1159 = vmatpush.bf16.msrb.mxu3 %v1730_v28 }
  0x5b   : > { %v769_v34 = vrot.slane %v767_v31, 1  ;;  %882 = vst [vmem:[#allocation1] ss:$4 sm:$0xff] %v1566_v30 }
  0x5d   : > { %1535 = vmatmul.msk.bf16.vlgmr.msrb.gmra.mxu2 %vm218_vm0, %v769_v34 }
  0x5e   : > { %1115 = vmatpush.bf16.msrb.mxu2 %v1728_v32  ;;  %1072 = vmatpush.bf16.msrb.mxu1 %v1725_v33 }
  0x5f   : > { %1160 = vmatpush.bf16.msrb.mxu3 %v1729_v38 }
  0x61   : > { %1565 = vmatmul.msk.bf16.vlgmr.msra.gmra.mxu0 %vm218_vm0, %v1552_v35 }
  0x62   : > { %v883_v40 = vld.sshfl [vmem:[#allocation1] sm:$0xff pattern:$0x73625140]  ;;  %1116 = vmatpush.bf16.msrb.mxu2 %v1727_v36  ;;  %1199 = vmatpush.bf16.msra.mxu0 %v1732_v39 }
  0x63   : > { %v884_v41 = vshrl.u32 %v883_v40, 16  ;;  %v886_v42 = vshll.u32 %v883_v40, 16  ;;  %926 = vst [vmem:[#allocation1] ss:$4 sm:$0xff] %v1580_v37 }
  0x65   : > { %v888_v43 = vrot.slane %v886_v42, 1 }
  0x66   : > { %1200 = vmatpush.bf16.msra.mxu0 %v1731_v46 }
  0x67   : > { %v889_v44 = vor.u32 %v888_v43, %v884_v41 }
  0x69   : > { %1579 = vmatmul.msk.bf16.vlgmr.msra.gmra.mxu1 %vm218_vm0, %v889_v44 }
  0x6a   : > { %v927_v47 = vld.sshfl [vmem:[#allocation1] sm:$0xff pattern:$0x73625140] }
  0x6b   : > { %v928_v48 = vshrl.u32 %v927_v47, 16  ;;  %v930_v49 = vshll.u32 %v927_v47, 16  ;;  %970 = vst [vmem:[#allocation1] ss:$4 sm:$0xff] %v1594_v45 }
  0x6d   : > { %v932_v50 = vrot.slane %v930_v49, 1 }
  0x6f   : > { %v933_v52 = vor.u32 %v932_v50, %v928_v48 }
  0x71   : > { %1593 = vmatmul.msk.bf16.vlgmr.msra.gmra.mxu2 %vm218_vm0, %v933_v52  ;;  %1622 = vmatmul.msk.bf16.vlgmr.msrb.gmra.mxu0 %vm218_vm0, %v1609_v51 }
  0x72   : > { %v971_v54 = vld.sshfl [vmem:[#allocation1] sm:$0xff pattern:$0x73625140] }
  0x73   : > { %v973_v55 = vrot.slane %v971_v54, 1  ;;  %1086 = vst [vmem:[#allocation1] ss:$4 sm:$0xff] %v1638_v53 }
  0x75   : > { %1607 = vmatmul.msk.bf16.vlgmr.msra.gmra.mxu3 %vm218_vm0, %v973_v55 }
  0x79   : > { %1637 = vmatmul.msk.bf16.vlgmr.msrb.gmra.mxu1 %vm218_vm0, %v1624_v56 }
  0x7a   : > { %v1087_v58 = vld.sshfl [vmem:[#allocation1] sm:$0xff pattern:$0x73625140] }
  0x7b   : > { %v1088_v59 = vshrl.u32 %v1087_v58, 16  ;;  %v1090_v60 = vshll.u32 %v1087_v58, 16  ;;  %1130 = vst [vmem:[#allocation1] ss:$4 sm:$0xff] %v1652_v57 }
  0x7d   : > { %v1092_v61 = vrot.slane %v1090_v60, 1 }
  0x7f   : > { %v1093_v62 = vor.u32 %v1092_v61, %v1088_v59 }
  0x81   : > { %1651 = vmatmul.msk.bf16.vlgmr.msrb.gmra.mxu2 %vm218_vm0, %v1093_v62 }
  0x82   : > { %v1131_v0 = vld.sshfl [vmem:[#allocation1] sm:$0xff pattern:$0x73625140] }
  0x83   : > { %v1132_v1 = vshrl.u32 %v1131_v0, 16  ;;  %v1134_v2 = vshll.u32 %v1131_v0, 16  ;;  %1174 = vst [vmem:[#allocation1] ss:$4 sm:$0xff] %v1666_v63 }
  0x85   : > { %v1136_v3 = vrot.slane %v1134_v2, 1 }
  0x87   : > { %v1137_v4 = vor.u32 %v1136_v3, %v1132_v1 }
  0x89   : > { %1665 = vmatmul.msk.bf16.vlgmr.msrb.gmra.mxu3 %vm218_vm0, %v1137_v4 }
  0x8a   : > { %v1175_v5 = vld.sshfl [vmem:[#allocation1] sm:$0xff pattern:$0x73625140] }
  0x8b   : > { %v1177_v6 = vrot.slane %v1175_v5, 1 }
  0x8d   : > { %1679 = vmatmul.msk.bf16.vlgmr.msra.gmra.mxu0 %vm218_vm0, %v1177_v6 }
  0x93   : > { %v231_v7 = vpop.f32.mrf.mxu0 }
  0x96   : > { %v259_v8 = vpop.f32.mrf.mxu1 }
  0x97   : > { %v260_v9 = vadd.f32 %v259_v8, %v231_v7 }
  0x9b   : > { %v233_v10 = vpop.f32.mrf.mxu0 }
  0x9e   : > { %v261_v11 = vpop.f32.mrf.mxu1 }
  0xa4   : > { %v302_v13 = vpop.f32.mrf.mxu2 }
  0xa5   : > { %v306_v14 = vadd.f32 %v302_v13, %v260_v9 }
  0xa6   : > { %v424_v12 = vpop.f32.mrf.mxu1 }
  0xaa   : > { %v386_v15 = vpop.f32.mrf.mxu0 }
  0xac   : > { %v304_v17 = vpop.f32.mrf.mxu2  ;;  %v346_v18 = vpop.f32.mrf.mxu3 }
  0xad   : > { %v350_v19 = vadd.f32 %v346_v18, %v306_v14  ;;  %v1773_v14 = vld [vmem:[%s2101_s2] ss:$0 sm:$0xff] }
  0xae   : > { %v426_v16 = vpop.f32.mrf.mxu1 }
  0xaf   : > { %v390_v20 = vadd.f32 %v386_v15, %v350_v19 }
  0xb1   : > { %v428_v21 = vadd.f32 %v424_v12, %v390_v20 }
  0xb2   : > { %v388_v22 = vpop.f32.mrf.mxu0 }
  0xb4   : > { %v348_v23 = vpop.f32.mrf.mxu3  ;;  %v462_v24 = vpop.f32.mrf.mxu2 }
  0xb5   : > { %v466_v39 = vadd.f32 %v462_v24, %v428_v21 }
  0xbc   : > { %v464_v25 = vpop.f32.mrf.mxu2  ;;  %v506_v26 = vpop.f32.mrf.mxu3 }
  0xbd   : > { %v510_v41 = vadd.f32 %v506_v26, %v466_v39 }
  0xbe   : > { %v550_v27 = vpop.f32.mrf.mxu0 }
  0xbf   : > { %v554_v45 = vadd.f32 %v550_v27, %v510_v41 }
  0xc2   : > { %v590_v28 = vpop.f32.mrf.mxu1 }
  0xc3   : > { %v594_v46 = vadd.f32 %v590_v28, %v554_v45 }
  0xc4   : > { %v508_v29 = vpop.f32.mrf.mxu3  ;;  %v628_v30 = vpop.f32.mrf.mxu2 }
  0xc5   : > { %v632_v50 = vadd.f32 %v628_v30, %v594_v46 }
  0xc6   : > { %v552_v31 = vpop.f32.mrf.mxu0 }
  0xca   : > { %v592_v32 = vpop.f32.mrf.mxu1 }
  0xcc   : > { %v666_v33 = vpop.f32.mrf.mxu3  ;;  %v630_v34 = vpop.f32.mrf.mxu2 }
  0xcd   : > { %v670_v52 = vadd.f32 %v666_v33, %v632_v50 }
  0xce   : > { %v710_v35 = vpop.f32.mrf.mxu0 }
  0xcf   : > { %v714_v53 = vadd.f32 %v710_v35, %v670_v52 }
  0xd4   : > { %v668_v36 = vpop.f32.mrf.mxu3 }
  0xd6   : > { %v754_v37 = vpop.f32.mrf.mxu1  ;;  %v712_v38 = vpop.f32.mrf.mxu0 }
  0xd7   : > { %v758_v56 = vadd.f32 %v754_v37, %v714_v53 }
  0xdc   : > { %v832_v40 = vpop.f32.mrf.mxu3 }
  0xde   : > { %v756_v42 = vpop.f32.mrf.mxu1  ;;  %v870_v43 = vpop.f32.mrf.mxu0 }
  0xe0   : > { %v794_v44 = vpop.f32.mrf.mxu2 }
  0xe1   : > { %v798_v57 = vadd.f32 %v794_v44, %v758_v56 }
  0xe3   : > { %v836_v59 = vadd.f32 %v832_v40, %v798_v57 }
  0xe4   : > { %v834_v47 = vpop.f32.mrf.mxu3 }
  0xe5   : > { %v874_v63 = vadd.f32 %v870_v43, %v836_v59 }
  0xe6   : > { %v914_v48 = vpop.f32.mrf.mxu1  ;;  %v872_v49 = vpop.f32.mrf.mxu0 }
  0xe7   : > { %v918_v1 = vadd.f32 %v914_v48, %v874_v63 }
  0xe8   : > { %v796_v51 = vpop.f32.mrf.mxu2 }
  0xee   : > { %v916_v54 = vpop.f32.mrf.mxu1  ;;  %v1036_v55 = vpop.f32.mrf.mxu0 }
  0xf4   : > { %v958_v58 = vpop.f32.mrf.mxu2 }
  0xf5   : > { %v962_v3 = vadd.f32 %v958_v58, %v918_v1 }
  0xf6   : > { %v1074_v60 = vpop.f32.mrf.mxu1  ;;  %v1038_v61 = vpop.f32.mrf.mxu0 }
  0xf8   : > { %v998_v62 = vpop.f32.mrf.mxu3 }
  0xf9   : > { %v1002_v5 = vadd.f32 %v998_v62, %v962_v3 }
  0xfb   : > { %v1040_v7 = vadd.f32 %v1036_v55, %v1002_v5 }
  0xfc   : > { %v960_v0 = vpop.f32.mrf.mxu2 }
  0xfd   : > { %v1078_v8 = vadd.f32 %v1074_v60, %v1040_v7 }
  0xfe   : > { %v1076_v2 = vpop.f32.mrf.mxu1 }
 0x100   : > { %v1000_v4 = vpop.f32.mrf.mxu3 }
 0x104   : > { %v1118_v6 = vpop.f32.mrf.mxu2 }
 0x105   : > { %v1122_v10 = vadd.f32 %v1118_v6, %v1078_v8 }
 0x10a   : > { %v1202_v9 = vpop.f32.mrf.mxu0 }
 0x10c   : > { %v1120_v11 = vpop.f32.mrf.mxu2  ;;  %v1162_v12 = vpop.f32.mrf.mxu3 }
 0x10d   : > { %v1166_v13 = vadd.f32 %v1162_v12, %v1122_v10 }
 0x10f   : > { %v1206_v15 = vadd.f32 %v1202_v9, %v1166_v13 }
 0x111   : > { %v1211_v16 = vadd.f32 %v1773_v14, %v1206_v15 }
 0x112   : > { %v1204_v17 = vpop.f32.mrf.mxu0 }
 0x113   : > { %v1212_v18 = vmax.f32 %v1211_v16, 0.0 }
 0x114   : > { %v1164_v19 = vpop.f32.mrf.mxu3 }
 0x115   : > { %v1213_v20 = vpack.c.bf16 %v1212_v18, %v1212_v18 }
 0x117   : > { %1215 = vst.msk [vmem:[%s188_s7] sm:$0x1] %vm1214_vm1, %v1213_v20 }
 0x118 PF: > { %s13_s16 = sadd.s32 1, %s1812_s16   ;;  %s2103_s12 = smov %s1804_s14 }
 0x119   : > { %p10_p7 = scmp.ge.s32.totalorder %s13_s16, 6   ;;  %s2104_s13 = smov %s1808_s15 }
 0x11a   : > { %s2105_s14 = smov %s2108_s17  ;;  %s2106_s15 = smov %s2112_s18 }
 0x11b   :  { %12 = sbr.rel (!%p10_p7) target bundleno = 3 (0x3), region = 96 }

// kernel: feature_extraction.13
= control target key start
LH: loop header
LB: loop body
LE: loop exit
PB: predicated region body
PF: predicated region fallthrough
CT: control target
= control target key end

     0   :  { %s1937_s18 = smov 0   ;;  %s1939_s19 = smov 0   ;;  %s2269_s0 = inlined_call_operand.vmem [shape: bf16[2,6,6,32], index: 0, kind: input, shape index: {}]   ;;  %s2270_s1 = inlined_call_operand.vmem [shape: bf16[9,32,32], index: 1, kind: input, shape index: {}]   ;;  %s2271_s2 = inlined_call_operand.vmem [shape: f32[1,32], index: 2, kind: input, shape index: {}]   ;;  %s2272_s3 = inlined_call_operand.vmem [shape: bf16[9,32,32], index: 3, kind: input, shape index: {}]   ;;  %s2273_s4 = inlined_call_operand.vmem [shape: f32[1,32], index: 4, kind: input, shape index: {}]   ;;  %s2274_s5 = inlined_call_operand.vmem [shape: bf16[2,2,2,32], index: 5, kind: output, shape index: {}]  }
   0x1   :  { %s1941_s20 = smov 0   ;;  %s1943_s21 = smov 0  }
   0x2   :  { %s1945_s22 = smov 0  }
   0x3 LB: > { %s24_s23 = sadd.s32 1, %s1895_s20  ;;  %s27_s24 = sadd.s32 1, %s1899_s21  ;;  %s1903_s22 = sphi %s1945_s22, %s15_s22   ;;  %s1899_s21 = sphi %s1943_s21, %s2286_s21   ;;  %s1895_s20 = sphi %s1941_s20, %s2285_s20   ;;  %s1891_s19 = sphi %s1939_s19, %s2284_s19   ;;  %s1887_s18 = sphi %s1937_s18, %s2283_s18  }
   0x4   : > { %p25_p0 = scmp.ge.s32.totalorder %s24_s23, 2  ;;  %p1511_p1 = scmp.ge.s32.totalorder %s1903_s22, 1 }
   0x5   : > { %p201_p2 = scmp.lt.s32.totalorder %s1903_s22, 5 }
   0x6   : > { %s2288_s23 = smov (%p25_p0, %s24_s23), 0  ;;  %s2290_s24 = smov (!%p25_p0, %s27_s24), %s1899_s21 }
   0x7   : > { %p202_p3 = pnand %p1511_p1, %p201_p2  ;;  %p29_p4 = scmp.ge.s32.totalorder %s2290_s24, 2 }
   0x8   : > { %p231_p5 = scmp.lt.s32.totalorder (!%p202_p3), %s1891_s19, 1  ;;  %p238_p6 = scmp.lt.s32.totalorder (!%p202_p3), %s1887_s18, 1 }
   0x9   : > { %s2292_s24 = smov (%p29_p4, %s2290_s24), 0  ;;  %205 = sbr.rel (%p202_p3) target bundleno = 573 (0x23d), region = 40 }
   0xa   : > { %s1514_s8 = sshll.u32 (!%p202_p3), %s1887_s18, 2  ;;  %p1666_p7 = scmp.ne.s32.totalorder (!%p202_p3), %s1887_s18, 0 }
   0xe   : > { %v1789_v0 = vld [vmem:[%s2270_s1 + $0x28] sm:$0xff]  ;;  %v1787_v1 = vld [vmem:[%s2270_s1 + $0x18] sm:$0xff]  ;;  %v1788_v4 = vld [vmem:[%s2270_s1 + $0x20] sm:$0xff]  ;;  %s2294_s19 = smov (!%p231_p5, %s1891_s19), 1  ;;  %vm275_vm0 = vsmask.f32 256 }
   0xf   : > { %v1791_v2 = vld [vmem:[%s2270_s1 + $0x38] sm:$0xff]  ;;  %v1785_v3 = vld [vmem:[%s2270_s1 + $0x8] sm:$0xff]  ;;  %481 = vmatpush.bf16.msra.mxu2 %v1789_v0  ;;  %364 = vmatpush.bf16.msra.mxu0 %v1787_v1  ;;  %v1786_v5 = vld [vmem:[%s2270_s1 + $0x10] sm:$0xff]  ;;  %s239_s15 = scalar_select %p238_p6, %s1887_s18, 1  ;;  %vm276_vm1 = vsmask.f32 1284 }
  0x10   : > { %577 = vmatpush.bf16.msra.mxu3 %v1791_v2  ;;  %400 = vmatpush.bf16.msra.mxu1 %v1785_v3  ;;  %v1790_v6 = vld [vmem:[%s2270_s1 + $0x30] sm:$0xff]  ;;  %s1820_s16 = smul.u32 24, %s2294_s19  ;;  %s1513_s17 = sshll.u32 %s2294_s19, 1  ;;  %vm277_vm2 = vmor %vm275_vm0, %vm276_vm1  ;;  %vm278_vm3 = vsmask.f32 2312  ;;  %vm259_vm8 = vcmask 1041409  }
  0x11   : > { %s1993_s25 = sadd.s32 %s1513_s17, %s239_s15  ;;  %vm279_vm4 = vmor %vm277_vm2, %vm278_vm3  ;;  %vm280_vm5 = vsmask.f32 3340  ;;  %vm282_vm7 = vsmask.f32 4368  ;;  %vm284_vm10 = vsmask.f32 5396 }
  0x12   : > { %s235_s28 = scalar_lea.vmem %s2269_s0, %s1820_s16  ;;  %s242_s6 = scalar_lea.vmem %s2274_s5, %s1993_s25  ;;  %vm281_vm6 = vmor %vm279_vm4, %vm280_vm5  ;;  %vm255_vm11 = vcmask 1040384   ;;  %vm286_vm13 = vsmask.f32 6424  ;;  %vm288_vm15 = vsmask.f32 7452  ;;  %vm355_vm2 = vcmask 261120  }
  0x13   : > { %482 = vmatpush.bf16.msra.mxu2 %v1788_v4  ;;  %365 = vmatpush.bf16.msra.mxu0 %v1786_v5  ;;  %s2002_s7 = scalar_lea.vmem %s235_s28, %s1514_s8  ;;  %vm283_vm9 = vmor %vm281_vm6, %vm282_vm7  ;;  %v1784_v46 = vld [vmem:[%s2270_s1] sm:$0xff]  ;;  %vm973_vm4 = vcmask 1041408   ;;  %vm1004_vm5 = vcmask 254976   ;;  %vm1005_vm6 = vsmask.f32 1282 }
  0x14   : > { %578 = vmatpush.bf16.msra.mxu3 %v1790_v6  ;;  %v318_v7 = vld [vmem:[%s2002_s7] sm:$0x2]  ;;  %v319_v8 = vld [vmem:[%s2002_s7 + $0x4] sm:$0x2]  ;;  %v320_v10 = vld [vmem:[%s2002_s7 + $0x8] sm:$0x2]  ;;  %401 = vmatpush.bf16.msra.mxu1 %v1784_v46 }
  0x15   : > { %322 = vst [vmem:[#allocation1] sm:$0xff] %v318_v7  ;;  %v246_v9 = vld [vmem:[%s2002_s7] sm:$0x3]  ;;  %v247_v11 = vld [vmem:[%s2002_s7 + $0x4] sm:$0x3]  ;;  %vm285_vm12 = vmor %vm283_vm9, %vm284_vm10  ;;  %vm1027_vm9 = vcmask 254977  }
  0x16   : > { %326 = vst [vmem:[#allocation1 + $0x20] sm:$0xff] %v319_v8  ;;  %v248_v12 = vld [vmem:[%s2002_s7 + $0x8] sm:$0x3]  ;;  %v252_v14 = vrot.slane %v246_v9, 3  ;;  %v253_v15 = vrot.slane %v247_v11, 3  ;;  %vm287_vm14 = vmor %vm285_vm12, %vm286_vm13 }
  0x17   : > { %v254_v16 = vrot.slane %v248_v12, 3  ;;  %vm2017_vm1 = vmor %vm287_vm14, %vm288_vm15  ;;  %v408_v39 = vld [vmem:[%s2002_s7 + $0x4] sm:$0x6]  ;;  %v1612_v40 = vld [vmem:[%s2002_s7 + $0x8] sm:$0x3] }
  0x18   : > { %v260_v17 = vsel %vm259_vm8, %v246_v9, %v252_v14  ;;  %v266_v18 = vsel %vm259_vm8, %v247_v11, %v253_v15  ;;  %v258_v23 = vsel %vm255_vm11, %v246_v9, %v252_v14  ;;  %v265_v25 = vsel %vm255_vm11, %v247_v11, %v253_v15  ;;  %v1613_v41 = vld [vmem:[%s2002_s7 + $0xc] sm:$0x3]  ;;  %v1614_v42 = vld [vmem:[%s2002_s7 + $0x10] sm:$0x3]  ;;  %v407_v47 = vld [vmem:[%s2002_s7] sm:$0x6] }
  0x19   : > { %v272_v20 = vsel %vm259_vm8, %v248_v12, %v254_v16  ;;  %v262_v21 = vrot.slane %v260_v17, 1  ;;  %v268_v24 = vrot.slane %v266_v18, 1  ;;  %v271_v27 = vsel %vm255_vm11, %v248_v12, %v254_v16  ;;  %v409_v3 = vld [vmem:[%s2002_s7 + $0x8] sm:$0x6]  ;;  %v1559_v5 = vld [vmem:[%s2002_s7 + $0xc] sm:$0x3]  ;;  %vm2145_vm7 = vmand %vm1004_vm5, %vm1005_vm6 }
  0x1a   : > { %v274_v26 = vrot.slane %v272_v20, 1  ;;  %v290_v28 = vshrl.u32 %v258_v23, 16  ;;  %v298_v31 = vshrl.u32 %v265_v25, 16  ;;  %v306_v33 = vshrl.u32 %v271_v27, 16  ;;  %v1557_v6 = vld [vmem:[%s2002_s7 + $0x4] sm:$0x3] }
  0x1b   : > { %v295_v29 = vshll.u32 %v262_v21, 16  ;;  %v303_v32 = vshll.u32 %v268_v24, 16  ;;  %v729_v43 = vrot.slane %v1612_v40, 3  ;;  %v730_v44 = vrot.slane %v1613_v41, 3  ;;  %v1797_v46 = vld [vmem:[%s2270_s1 + $0x68] sm:$0xff] }
  0x1c   : > { %v324_v13 = vld [vmem:[#allocation1 + $0x1] ss:$4 sm:$0xff]  ;;  %v311_v34 = vshll.u32 %v274_v26, 16  ;;  %v731_v45 = vrot.slane %v1614_v42, 3  ;;  %v498_v16 = vrot.slane %v1557_v6, 3  ;;  %808 = vmatpush.bf16.msrb.mxu2 %v1797_v46 }
  0x1d   : > { %330 = vst [vmem:[#allocation1] sm:$0xff] %v320_v10  ;;  %v328_v19 = vld [vmem:[#allocation1 + $0x21] ss:$4 sm:$0xff]  ;;  %v297_v35 = vsel %vm2017_vm1, %v290_v28, %v295_v29  ;;  %v305_v36 = vsel %vm2017_vm1, %v298_v31, %v303_v32  ;;  %v734_v48 = vsel %vm255_vm11, %v1612_v40, %v729_v43  ;;  %v735_v49 = vsel %vm259_vm8, %v1612_v40, %v729_v43 }
  0x1e   : > { %v313_v37 = vsel %vm2017_vm1, %v306_v33, %v311_v34  ;;  %v740_v50 = vsel %vm255_vm11, %v1613_v41, %v730_v44  ;;  %v741_v51 = vsel %vm259_vm8, %v1613_v41, %v730_v44  ;;  %v737_v53 = vrot.slane %v735_v49, 1  ;;  %v1558_v10 = vld [vmem:[%s2002_s7 + $0x8] sm:$0x3]  ;;  %v1795_v49 = vld [vmem:[%s2270_s1 + $0x58] sm:$0xff] }
  0x1f   : > { %v743_v54 = vrot.slane %v741_v51, 1  ;;  %v746_v55 = vsel %vm255_vm11, %v1614_v42, %v731_v45  ;;  %v747_v56 = vsel %vm259_vm8, %v1614_v42, %v731_v45  ;;  %v750_v58 = vshrl.u32 %v734_v48, 16  ;;  %v1577_v45 = vld [vmem:[%s2002_s7 + $0x8] sm:$0x2]  ;;  %v1799_v48 = vld [vmem:[%s2270_s1 + $0x78] sm:$0xff]  ;;  %712 = vmatpush.bf16.msrb.mxu1 %v1795_v49 }
  0x20   : > { %v749_v57 = vrot.slane %v747_v56, 1  ;;  %v755_v59 = vshll.u32 %v737_v53, 16  ;;  %v758_v60 = vshrl.u32 %v740_v50, 16  ;;  %v766_v62 = vshrl.u32 %v746_v55, 16  ;;  %v1796_v50 = vld [vmem:[%s2270_s1 + $0x60] sm:$0xff]  ;;  %861 = vmatpush.bf16.msrb.mxu3 %v1799_v48  ;;  %v1798_v53 = vld [vmem:[%s2270_s1 + $0x70] sm:$0xff] }
  0x21   : > { %v763_v61 = vshll.u32 %v743_v54, 16  ;;  %v499_v17 = vrot.slane %v1558_v10, 3  ;;  %v504_v21 = vsel %vm259_vm8, %v1557_v6, %v498_v16  ;;  %v503_v32 = vsel %vm255_vm11, %v1557_v6, %v498_v16  ;;  %v1576_v51 = vld [vmem:[%s2002_s7 + $0x4] sm:$0x2]  ;;  %809 = vmatpush.bf16.msrb.mxu2 %v1796_v50  ;;  %v1578_v55 = vld [vmem:[%s2002_s7 + $0xc] sm:$0x2] }
  0x22   : > { %v771_v63 = vshll.u32 %v749_v57, 16  ;;  %v2045_v0 = vsel %vm2017_vm1, %v750_v58, %v755_v59  ;;  %v506_v29 = vrot.slane %v504_v21, 1  ;;  %v1593_v59 = vld [vmem:[%s2002_s7 + $0x8] sm:$0x6]  ;;  %vm1028_vm10 = vsmask.f32 7942 }
  0x23   : > { %v2049_v1 = vsel %vm2017_vm1, %v758_v60, %v763_v61  ;;  %v510_v24 = vsel %vm259_vm8, %v1558_v10, %v499_v17  ;;  %v509_v34 = vsel %vm255_vm11, %v1558_v10, %v499_v17  ;;  %v1592_v60 = vld [vmem:[%s2002_s7 + $0x4] sm:$0x6]  ;;  %v1794_v10 = vld [vmem:[%s2270_s1 + $0x50] sm:$0xff]  ;;  %vm2161_vm12 = vmand %vm1027_vm9, %vm1028_vm10 }
  0x24   : > { %v331_v22 = vld [vmem:[#allocation1 + $0x1] ss:$4 sm:$0xff]  ;;  %v2053_v2 = vsel %vm2017_vm1, %v766_v62, %v771_v63  ;;  %v512_v33 = vrot.slane %v510_v24, 1  ;;  %862 = vmatpush.bf16.msrb.mxu3 %v1798_v53  ;;  %713 = vmatpush.bf16.msrb.mxu1 %v1794_v10 }
  0x25   : > { %337 = vst [vmem:[#allocation1] ss:$9 sm:$0xff] %v324_v13  ;;  %v500_v13 = vrot.slane %v1559_v5, 3  ;;  %v1594_v62 = vld [vmem:[%s2002_s7 + $0xc] sm:$0x6] }
  0x26   : > { %339 = vst [vmem:[#allocation1 + $0x1] ss:$9 sm:$0xff] %v328_v19  ;;  %v532_v40 = vshll.u32 %v512_v33, 16  ;;  %v1649_v33 = vld [vmem:[%s2002_s7 + $0x10] sm:$0x6] }
  0x27   : > { %341 = vst [vmem:[#allocation1 + $0x2] ss:$9 sm:$0xff] %v331_v22  ;;  %v516_v19 = vsel %vm259_vm8, %v1559_v5, %v500_v13  ;;  %v515_v28 = vsel %vm255_vm11, %v1559_v5, %v500_v13  ;;  %vm1016_vm8 = vcmask 253952  }
  0x28   : > { %v518_v27 = vrot.slane %v516_v19, 1  ;;  %v1632_v19 = vld [vmem:[%s2002_s7 + $0xc] sm:$0x2]  ;;  %vm2157_vm11 = vmand %vm1016_vm8, %vm275_vm0 }
  0x2e   : > { %v342_v38 = vld [vmem:[#allocation1] sm:$0xff] }
  0x2f   : > { %372 = vst [vmem:[#allocation1] ss:$9 sm:$0xff] %v297_v35  ;;  %1530 = vmatmul.msk.bf16.vlgmr.msra.gmra.mxu0 %vm355_vm2, %v342_v38  ;;  %v535_v35 = vshrl.u32 %v515_v28, 16  ;;  %v524_v38 = vshll.u32 %v506_v29, 16 }
  0x30   : > { %375 = vst [vmem:[#allocation1 + $0x1] ss:$9 sm:$0xff] %v305_v36  ;;  %v540_v36 = vshll.u32 %v518_v27, 16  ;;  %v1647_v27 = vld [vmem:[%s2002_s7 + $0x8] sm:$0x6] }
  0x31   : > { %378 = vst [vmem:[#allocation1 + $0x2] ss:$9 sm:$0xff] %v313_v37  ;;  %v519_v37 = vshrl.u32 %v503_v32, 16 }
  0x32   : > { %417 = vst [vmem:[#allocation1 + $0x20] sm:$0xff] %v408_v39  ;;  %v527_v39 = vshrl.u32 %v509_v34, 16  ;;  %v542_v41 = vsel %vm2017_vm1, %v535_v35, %v540_v36 }
  0x33   : > { %v526_v42 = vsel %vm2017_vm1, %v519_v37, %v524_v38 }
  0x34   : > { %v534_v44 = vsel %vm2017_vm1, %v527_v39, %v532_v40 }
  0x38   : > { %v379_v52 = vld [vmem:[#allocation1] sm:$0xff] }
  0x39   : > { %411 = vst [vmem:[#allocation1] sm:$0xff] %v407_v47  ;;  %1539 = vmatmul.msk.bf16.vlgmr.msra.gmra.mxu1 %vm355_vm2, %v379_v52  ;;  %v419_v4 = vld [vmem:[#allocation1 + $0x21] ss:$4 sm:$0xff]  ;;  %v421_v9 = vld [vmem:[#allocation1 + $0x22] ss:$4 sm:$0xff] }
  0x3a   : > { %v433_v14 = vshrl.u32 %v419_v4, 16  ;;  %v437_v15 = vshll.u32 %v421_v9, 16  ;;  %v1793_v47 = vld [vmem:[%s2270_s1 + $0x48] sm:$0xff]  ;;  %v1792_v52 = vld [vmem:[%s2270_s1 + $0x40] sm:$0xff] }
  0x3b   : > { %630 = vmatpush.bf16.msrb.mxu0 %v1793_v47 }
  0x3c   : > { %v439_v20 = vsel %vm2017_vm1, %v433_v14, %v437_v15 }
  0x3f   : > { %631 = vmatpush.bf16.msrb.mxu0 %v1792_v52 }
  0x40   : > { %v413_v7 = vld [vmem:[#allocation1 + $0x1] ss:$4 sm:$0xff]  ;;  %v415_v8 = vld [vmem:[#allocation1 + $0x2] ss:$4 sm:$0xff] }
  0x41   : > { %423 = vst [vmem:[#allocation1] sm:$0xff] %v409_v3  ;;  %v426_v11 = vshrl.u32 %v413_v7, 16  ;;  %v430_v12 = vshll.u32 %v415_v8, 16 }
  0x43   : > { %v432_v18 = vsel %vm2017_vm1, %v426_v11, %v430_v12 }
  0x48   : > { %v424_v22 = vld [vmem:[#allocation1 + $0x1] ss:$4 sm:$0xff]  ;;  %v425_v23 = vld [vmem:[#allocation1 + $0x2] ss:$4 sm:$0xff] }
  0x49   : > { %v440_v25 = vshrl.u32 %v424_v22, 16  ;;  %v444_v26 = vshll.u32 %v425_v23, 16  ;;  %453 = vst [vmem:[#allocation1] ss:$9 sm:$0xff] %v432_v18  ;;  %v1633_v22 = vld [vmem:[%s2002_s7 + $0x10] sm:$0x2] }
  0x4a   : > { %456 = vst [vmem:[#allocation1 + $0x1] ss:$9 sm:$0xff] %v439_v20  ;;  %v1631_v20 = vld [vmem:[%s2002_s7 + $0x8] sm:$0x2] }
  0x4b   : > { %v446_v31 = vsel %vm2017_vm1, %v440_v25, %v444_v26  ;;  %v1648_v25 = vld [vmem:[%s2002_s7 + $0xc] sm:$0x6] }
  0x4c   : > { %459 = vst [vmem:[#allocation1 + $0x2] ss:$9 sm:$0xff] %v446_v31 }
  0x53   : > { %v460_v43 = vld [vmem:[#allocation1] sm:$0xff] }
  0x54   : > { %1555 = vmatmul.msk.bf16.vlgmr.msra.gmra.mxu2 %vm355_vm2, %v460_v43  ;;  %555 = vst [vmem:[#allocation1 + $0x2] ss:$9 sm:$0xff] %v542_v41 }
  0x55   : > { %549 = vst [vmem:[#allocation1] ss:$9 sm:$0xff] %v526_v42 }
  0x56   : > { %552 = vst [vmem:[#allocation1 + $0x1] ss:$9 sm:$0xff] %v534_v44 }
  0x57   : > { %593 = vst [vmem:[#allocation1 + $0x20] sm:$0xff] %v1577_v45 }
  0x5d   : > { %v556_v54 = vld [vmem:[#allocation1] sm:$0xff] }
  0x5e   : > { %1575 = vmatmul.msk.bf16.vlgmr.msra.gmra.mxu3 %vm355_vm2, %v556_v54  ;;  %589 = vst [vmem:[#allocation1] sm:$0xff] %v1576_v51  ;;  %v595_v57 = vld [vmem:[#allocation1 + $0x21] ss:$4 sm:$0xff] }
  0x65   : > { %v591_v56 = vld [vmem:[#allocation1 + $0x1] ss:$4 sm:$0xff] }
  0x66   : > { %597 = vst [vmem:[#allocation1] sm:$0xff] %v1578_v55 }
  0x6d   : > { %v598_v58 = vld [vmem:[#allocation1 + $0x1] ss:$4 sm:$0xff] }
  0x6e   : > { %604 = vst [vmem:[#allocation1] ss:$9 sm:$0xff] %v591_v56 }
  0x6f   : > { %606 = vst [vmem:[#allocation1 + $0x1] ss:$9 sm:$0xff] %v595_v57 }
  0x70   : > { %608 = vst [vmem:[#allocation1 + $0x2] ss:$9 sm:$0xff] %v598_v58 }
  0x71   : > { %648 = vst [vmem:[#allocation1 + $0x20] sm:$0xff] %v1593_v59 }
  0x77   : > { %v609_v61 = vld [vmem:[#allocation1] sm:$0xff] }
  0x78   : > { %642 = vst [vmem:[#allocation1] sm:$0xff] %v1592_v60  ;;  %1591 = vmatmul.msk.bf16.vlgmr.msrb.gmra.mxu0 %vm355_vm2, %v609_v61  ;;  %v652_v63 = vld [vmem:[#allocation1 + $0x22] ss:$4 sm:$0xff]  ;;  %v650_v5 = vld [vmem:[#allocation1 + $0x21] ss:$4 sm:$0xff] }
  0x79   : > { %v664_v8 = vshrl.u32 %v650_v5, 16  ;;  %v668_v9 = vshll.u32 %v652_v63, 16 }
  0x7b   : > { %v670_v12 = vsel %vm2017_vm1, %v664_v8, %v668_v9 }
  0x7f   : > { %v644_v3 = vld [vmem:[#allocation1 + $0x1] ss:$4 sm:$0xff]  ;;  %v646_v4 = vld [vmem:[#allocation1 + $0x2] ss:$4 sm:$0xff] }
  0x80   : > { %654 = vst [vmem:[#allocation1] sm:$0xff] %v1594_v62  ;;  %v657_v6 = vshrl.u32 %v644_v3, 16  ;;  %v661_v7 = vshll.u32 %v646_v4, 16 }
  0x82   : > { %v663_v11 = vsel %vm2017_vm1, %v657_v6, %v661_v7  ;;  %v1863_v7 = vld [vmem:[%s2271_s2] ss:$0 sm:$0xff] }
  0x87   : > { %v655_v13 = vld [vmem:[#allocation1 + $0x1] ss:$4 sm:$0xff]  ;;  %v656_v14 = vld [vmem:[#allocation1 + $0x2] ss:$4 sm:$0xff] }
  0x88   : > { %v671_v15 = vshrl.u32 %v655_v13, 16  ;;  %v675_v16 = vshll.u32 %v656_v14, 16  ;;  %684 = vst [vmem:[#allocation1] ss:$9 sm:$0xff] %v663_v11 }
  0x89   : > { %687 = vst [vmem:[#allocation1 + $0x1] ss:$9 sm:$0xff] %v670_v12 }
  0x8a   : > { %v677_v17 = vsel %vm2017_vm1, %v671_v15, %v675_v16 }
  0x8b   : > { %690 = vst [vmem:[#allocation1 + $0x2] ss:$9 sm:$0xff] %v677_v17 }
  0x92   : > { %v691_v18 = vld [vmem:[#allocation1] sm:$0xff] }
  0x93   : > { %780 = vst [vmem:[#allocation1] ss:$9 sm:$0xff] %v2045_v0  ;;  %1610 = vmatmul.msk.bf16.vlgmr.msrb.gmra.mxu1 %vm355_vm2, %v691_v18  ;;  %v1801_v0 = vld [vmem:[%s2270_s1 + $0x88] sm:$0xff] }
  0x94   : > { %783 = vst [vmem:[#allocation1 + $0x1] ss:$9 sm:$0xff] %v2049_v1  ;;  %943 = vmatpush.bf16.msra.mxu0 %v1801_v0  ;;  %v1800_v1 = vld [vmem:[%s2270_s1 + $0x80] sm:$0xff] }
  0x95   : > { %786 = vst [vmem:[#allocation1 + $0x2] ss:$9 sm:$0xff] %v2053_v2 }
  0x96   : > { %824 = vst [vmem:[#allocation1 + $0x20] sm:$0xff] %v1632_v19 }
  0x98   : > { %944 = vmatpush.bf16.msra.mxu0 %v1800_v1 }
  0x9c   : > { %v787_v21 = vld [vmem:[#allocation1] sm:$0xff] }
  0x9d   : > { %1630 = vmatmul.msk.bf16.vlgmr.msrb.gmra.mxu2 %vm355_vm2, %v787_v21  ;;  %820 = vst [vmem:[#allocation1] sm:$0xff] %v1631_v20  ;;  %v826_v24 = vld [vmem:[#allocation1 + $0x21] ss:$4 sm:$0xff] }
  0xa4   : > { %v822_v23 = vld [vmem:[#allocation1 + $0x1] ss:$4 sm:$0xff] }
  0xa5   : > { %828 = vst [vmem:[#allocation1] sm:$0xff] %v1633_v22 }
  0xac   : > { %v829_v2 = vld [vmem:[#allocation1 + $0x1] ss:$4 sm:$0xff]  ;;  %v367_v26 = vpop.f32.mrf.mxu0 }
  0xad   : > { %835 = vst [vmem:[#allocation1] ss:$9 sm:$0xff] %v822_v23 }
  0xae   : > { %837 = vst [vmem:[#allocation1 + $0x1] ss:$9 sm:$0xff] %v826_v24 }
  0xaf   : > { %839 = vst [vmem:[#allocation1 + $0x2] ss:$9 sm:$0xff] %v829_v2 }
  0xb0   : > { %879 = vst [vmem:[#allocation1 + $0x20] sm:$0xff] %v1648_v25 }
  0xb4   : > { %v369_v32 = vpop.f32.mrf.mxu0 }
  0xb6   : > { %v840_v28 = vld [vmem:[#allocation1] sm:$0xff]  ;;  %v403_v29 = vpop.f32.mrf.mxu1 }
  0xb7   : > { %1646 = vmatmul.msk.bf16.vlgmr.msrb.gmra.mxu3 %vm355_vm2, %v840_v28  ;;  %873 = vst [vmem:[#allocation1] sm:$0xff] %v1647_v27  ;;  %v404_v31 = vadd.f32 %v403_v29, %v367_v26  ;;  %v881_v34 = vld [vmem:[#allocation1 + $0x21] ss:$4 sm:$0xff]  ;;  %v883_v37 = vld [vmem:[#allocation1 + $0x22] ss:$4 sm:$0xff] }
  0xb8   : > { %v895_v41 = vshrl.u32 %v881_v34, 16  ;;  %v899_v42 = vshll.u32 %v883_v37, 16  ;;  %v1007_v29 = vld [vmem:[#allocation2] sm:$0x3] }
  0xba   : > { %v901_v44 = vsel %vm2017_vm1, %v895_v41, %v899_v42 }
  0xbe   : > { %v875_v35 = vld [vmem:[#allocation1 + $0x1] ss:$4 sm:$0xff]  ;;  %v877_v36 = vld [vmem:[#allocation1 + $0x2] ss:$4 sm:$0xff]  ;;  %v405_v38 = vpop.f32.mrf.mxu1 }
  0xbf   : > { %885 = vst [vmem:[#allocation1] sm:$0xff] %v1649_v33  ;;  %v888_v39 = vshrl.u32 %v875_v35, 16  ;;  %v892_v40 = vshll.u32 %v877_v36, 16  ;;  %v1010_v35 = vld [vmem:[#allocation2 + $0x2] sm:$0x3] }
  0xc0   : > { %v1013_v36 = vld [vmem:[#allocation2 + $0x4] sm:$0x3] }
  0xc1   : > { %v894_v43 = vsel %vm2017_vm1, %v888_v39, %v892_v40 }
  0xc6   : > { %v886_v45 = vld [vmem:[#allocation1 + $0x1] ss:$4 sm:$0xff]  ;;  %v887_v46 = vld [vmem:[#allocation1 + $0x2] ss:$4 sm:$0xff] }
  0xc7   : > { %v902_v47 = vshrl.u32 %v886_v45, 16  ;;  %v906_v48 = vshll.u32 %v887_v46, 16  ;;  %915 = vst [vmem:[#allocation1] ss:$9 sm:$0xff] %v894_v43 }
  0xc8   : > { %918 = vst [vmem:[#allocation1 + $0x1] ss:$9 sm:$0xff] %v901_v44 }
  0xc9   : > { %v908_v49 = vsel %vm2017_vm1, %v902_v47, %v906_v48 }
  0xca   : > { %921 = vst [vmem:[#allocation1 + $0x2] ss:$9 sm:$0xff] %v908_v49 }
  0xd1   : > { %v922_v50 = vld [vmem:[#allocation1] sm:$0xff] }
  0xd2   : > { %1665 = vmatmul.msk.bf16.vlgmr.msra.gmra.mxu0 %vm355_vm2, %v922_v50 }
  0xd7   : > { %v484_v51 = vpop.f32.mrf.mxu2 }
  0xd8   : > { %v488_v52 = vadd.f32 %v484_v51, %v404_v31 }
  0xdf   : > { %v486_v53 = vpop.f32.mrf.mxu2 }
  0xe1   : > { %v580_v54 = vpop.f32.mrf.mxu3 }
  0xe2   : > { %v584_v55 = vadd.f32 %v580_v54, %v488_v52 }
  0xe9   : > { %v582_v56 = vpop.f32.mrf.mxu3 }
  0xf5   : > { %v633_v57 = vpop.f32.mrf.mxu0 }
  0xf6   : > { %v637_v58 = vadd.f32 %v633_v57, %v584_v55 }
  0xfd   : > { %v635_v59 = vpop.f32.mrf.mxu0 }
 0x110   : > { %v715_v60 = vpop.f32.mrf.mxu1 }
 0x111   : > { %v719_v4 = vadd.f32 %v715_v60, %v637_v58 }
 0x118   : > { %v717_v61 = vpop.f32.mrf.mxu1 }
 0x120   : > { %v811_v62 = vpop.f32.mrf.mxu2 }
 0x121   : > { %v815_v5 = vadd.f32 %v811_v62, %v719_v4 }
 0x128   : > { %v813_v63 = vpop.f32.mrf.mxu2 }
 0x13a   : > { %v864_v3 = vpop.f32.mrf.mxu3 }
 0x13b   : > { %v868_v6 = vadd.f32 %v864_v3, %v815_v5 }
 0x142   : > { %v866_v30 = vpop.f32.mrf.mxu3 }
 0x14f   : > { %v946_v8 = vpop.f32.mrf.mxu0 }
 0x150   : > { %v950_v9 = vadd.f32 %v946_v8, %v868_v6 }
 0x152   : > { %v955_v10 = vadd.f32 %v1863_v7, %v950_v9 }
 0x154   : > { %vm956_vm3 = vcmp.ge.f32.partialorder %v955_v10, 0.0  ;;  %v957_v11 = vmul.f32 0.2, %v955_v10 }
 0x156   : > { %v958_v12 = vsel %vm956_vm3, %v955_v10, %v957_v11 }
 0x157   : > { %v960_v13 = vrot.slane %v958_v12, 2  ;;  %v961_v14 = vrot.slane %v958_v12, 4  ;;  %v964_v15 = vpack.c.bf16 %v958_v12, %v958_v12  ;;  %v948_v16 = vpop.f32.mrf.mxu0 }
 0x159   : > { %v965_v17 = vpack.c.bf16 %v960_v13, %v960_v13  ;;  %v966_v18 = vpack.c.bf16 %v961_v14, %v961_v14  ;;  %v970_v19 = vrot.slane %v964_v15, 2 }
 0x15b   : > { %v971_v20 = vrot.slane %v965_v17, 2  ;;  %v972_v21 = vrot.slane %v966_v18, 2  ;;  %v976_v22 = vsel %vm973_vm4, %v964_v15, %v970_v19 }
 0x15c   : > { %v983_v23 = vshrl.u32 %v976_v22, 16  ;;  %v986_v2 = vshll.u32 %v976_v22, 16 }
 0x15d   : > { %v979_v0 = vsel %vm973_vm4, %v965_v17, %v971_v20  ;;  %v982_v24 = vsel %vm973_vm4, %v966_v18, %v972_v21 }
 0x15e   : > { %v985_v1 = vrot.slane %v983_v23, 7  ;;  %v989_v25 = vshrl.u32 %v979_v0, 16  ;;  %v995_v26 = vshrl.u32 %v982_v24, 16  ;;  %v992_v27 = vshll.u32 %v979_v0, 16 }
 0x15f   : > { %v998_v34 = vshll.u32 %v982_v24, 16 }
 0x160   : > { %v988_v31 = vor.u32 %v986_v2, %v985_v1  ;;  %v991_v32 = vrot.slane %v989_v25, 7  ;;  %v997_v33 = vrot.slane %v995_v26, 7 }
 0x162   : > { %v994_v37 = vor.u32 %v992_v27, %v991_v32  ;;  %v1000_v38 = vor.u32 %v998_v34, %v997_v33  ;;  %v1008_v39 = vsel %vm2145_vm7, %v988_v31, %v1007_v29 }
 0x163   : > { %1009 = vst [vmem:[#allocation2] sm:$0x3] %v1008_v39 }
 0x164   : > { %v1011_v40 = vsel %vm2145_vm7, %v994_v37, %v1010_v35  ;;  %v1014_v41 = vsel %vm2145_vm7, %v1000_v38, %v1013_v36 }
 0x165   : > { %1012 = vst [vmem:[#allocation2 + $0x2] sm:$0x3] %v1011_v40 }
 0x166   : > { %1015 = vst [vmem:[#allocation2 + $0x4] sm:$0x3] %v1014_v41 }
 0x16a   : > { %v1018_v44 = vld [vmem:[#allocation2] sm:$0x1]  ;;  %v1030_v45 = vld [vmem:[#allocation2] sm:$0x2] }
 0x16b   : > { %v1019_v46 = vsel %vm2157_vm11, 0, %v1018_v44  ;;  %v1031_v47 = vsel %vm2161_vm12, 0, %v1030_v45 }
 0x16c   : > { %1020 = vst [vmem:[#allocation2] sm:$0x1] %v1019_v46  ;;  %v1021_v48 = vld [vmem:[#allocation2 + $0x2] sm:$0x1]  ;;  %v1033_v49 = vld [vmem:[#allocation2 + $0x2] sm:$0x2] }
 0x16d   : > { %v1022_v50 = vsel %vm2157_vm11, 0, %v1021_v48  ;;  %v1024_v51 = vld [vmem:[#allocation2 + $0x4] sm:$0x1]  ;;  %1032 = vst [vmem:[#allocation2] sm:$0x2] %v1031_v47  ;;  %v1034_v52 = vsel %vm2161_vm12, 0, %v1033_v49 }
 0x16e   : > { %1023 = vst [vmem:[#allocation2 + $0x2] sm:$0x1] %v1022_v50  ;;  %v1025_v53 = vsel %vm2157_vm11, 0, %v1024_v51  ;;  %v1036_v54 = vld [vmem:[#allocation2 + $0x4] sm:$0x2]  ;;  %1042 = sbr.rel (%p1666_p7) target bundleno = 373 (0x175), region = 44 }
 0x16f   : > { %1026 = vst [vmem:[#allocation2 + $0x4] sm:$0x1] %v1025_v53  ;;  %v1037_v55 = vsel %vm2161_vm12, 0, %v1036_v54 }
 0x170   : > { %1035 = vst [vmem:[#allocation2 + $0x2] sm:$0x2] %v1034_v52 }
 0x171   : > { %1038 = vst [vmem:[#allocation2 + $0x4] sm:$0x2] %v1037_v55 }
 0x173   : > { %v1905_v56 = vmov 0  }
 0x174   : > { %1044 = vst.msk [vmem:[#allocation2] sm:$0x3] %vm1004_vm5, %v1905_v56 }
 0x175 PF: > { %p1667_p8 = scmp.ne.s32.totalorder %s1887_s18, 1 }
 0x177   : > { %1048 = sbr.rel (%p1667_p8) target bundleno = 382 (0x17e), region = 48 }
 0x17c   : > { %v1906_v57 = vmov 0  }
 0x17d   : > { %1051 = vst.msk [vmem:[#allocation2 + $0x4] sm:$0x3] %vm1004_vm5, %v1906_v57 }
 0x17e PF: > { %v1803_v58 = vld [vmem:[%s2272_s3 + $0x8] sm:$0xff]  ;;  %v1805_v59 = vld [vmem:[%s2272_s3 + $0x18] sm:$0xff]  ;;  %v1802_v60 = vld [vmem:[%s2272_s3] sm:$0xff] }
 0x17f   : > { %v1807_v61 = vld [vmem:[%s2272_s3 + $0x28] sm:$0xff]  ;;  %1121 = vmatpush.bf16.msra.mxu2 %v1803_v58  ;;  %1093 = vmatpush.bf16.msra.mxu1 %v1805_v59  ;;  %v1804_v62 = vld [vmem:[%s2272_s3 + $0x10] sm:$0xff]  ;;  %v1809_v3 = vld [vmem:[%s2272_s3 + $0x38] sm:$0xff] }
 0x180   : > { %v1057_v63 = vld [vmem:[#allocation2] sm:$0x3]  ;;  %1160 = vmatpush.bf16.msra.mxu3 %v1807_v61  ;;  %v1806_v30 = vld [vmem:[%s2272_s3 + $0x20] sm:$0xff]  ;;  %1196 = vmatpush.bf16.msrb.mxu0 %v1809_v3  ;;  %v1808_v5 = vld [vmem:[%s2272_s3 + $0x30] sm:$0xff] }
 0x181   : > { %1064 = vst [vmem:[#allocation1] ss:$4 sm:$0xff] %v1057_v63  ;;  %v1811_v4 = vld [vmem:[%s2272_s3 + $0x48] sm:$0xff]  ;;  %v1813_v6 = vld [vmem:[%s2272_s3 + $0x58] sm:$0xff]  ;;  %v1810_v9 = vld [vmem:[%s2272_s3 + $0x40] sm:$0xff] }
 0x182   : > { %v1815_v7 = vld [vmem:[%s2272_s3 + $0x68] sm:$0xff]  ;;  %v1817_v10 = vld [vmem:[%s2272_s3 + $0x78] sm:$0xff]  ;;  %v1812_v13 = vld [vmem:[%s2272_s3 + $0x50] sm:$0xff] }
 0x183   : > { %1122 = vmatpush.bf16.msra.mxu2 %v1802_v60  ;;  %1094 = vmatpush.bf16.msra.mxu1 %v1804_v62  ;;  %v1052_v8 = vld [vmem:[#allocation2] sm:$0x1]  ;;  %v1128_v11 = vld [vmem:[#allocation2] sm:$0x2]  ;;  %v1169_v12 = vld [vmem:[#allocation2 + $0x2] sm:$0x1] }
 0x184   : > { %1161 = vmatpush.bf16.msra.mxu3 %v1806_v30  ;;  %1197 = vmatpush.bf16.msrb.mxu0 %v1808_v5  ;;  %v1814_v14 = vld [vmem:[%s2272_s3 + $0x60] sm:$0xff]  ;;  %v1816_v16 = vld [vmem:[%s2272_s3 + $0x70] sm:$0xff]  ;;  %v1819_v20 = vld [vmem:[%s2272_s3 + $0x88] sm:$0xff] }
 0x185   : > { %v1204_v22 = vld [vmem:[#allocation2 + $0x2] sm:$0x3]  ;;  %v1818_v0 = vld [vmem:[%s2272_s3 + $0x80] sm:$0xff]  ;;  %v1324_v29 = vld [vmem:[#allocation2 + $0x4] sm:$0x3] }
 0x186   : > { %1689 = vmatmul.msk.bf16.vlgmr.msra.gmra.mxu2 %vm355_vm2, %v1052_v8  ;;  %v1248_v1 = vld [vmem:[#allocation2 + $0x2] sm:$0x2]  ;;  %v1289_v32 = vld [vmem:[#allocation2 + $0x4] sm:$0x1]  ;;  %v1368_v34 = vld [vmem:[#allocation2 + $0x4] sm:$0x2] }
 0x187   : > { %1240 = vmatpush.bf16.msrb.mxu1 %v1811_v4  ;;  %1280 = vmatpush.bf16.msrb.mxu2 %v1813_v6  ;;  %v1781_v61 = vld [vmem:[%s2002_s7 + $0x8] sm:$0x2]  ;;  %v1864_v30 = vld [vmem:[%s2273_s4] ss:$0 sm:$0xff] }
 0x188   : > { %1316 = vmatpush.bf16.msrb.mxu3 %v1815_v7  ;;  %v1065_v15 = vld.sshfl [vmem:[#allocation1] sm:$0xff pattern:$0x73625140]  ;;  %1360 = vmatpush.bf16.msra.mxu0 %v1817_v10  ;;  %v1417_v5 = vunpack.c.l.bf16 %v1781_v61 }
 0x189   : > { %v1066_v17 = vshrl.u32 %v1065_v15, 16  ;;  %v1068_v18 = vshll.u32 %v1065_v15, 16  ;;  %1135 = vst [vmem:[#allocation1] ss:$4 sm:$0xff] %v1128_v11  ;;  %1715 = vmatmul.msk.bf16.vlgmr.msrb.gmra.mxu0 %vm355_vm2, %v1169_v12 }
 0x18a   : > { %v1419_v8 = vrot.slane %v1417_v5, 2 }
 0x18b   : > { %1241 = vmatpush.bf16.msrb.mxu1 %v1810_v9  ;;  %1281 = vmatpush.bf16.msrb.mxu2 %v1812_v13  ;;  %v1070_v19 = vrot.slane %v1068_v18, 1 }
 0x18c   : > { %1317 = vmatpush.bf16.msrb.mxu3 %v1814_v14  ;;  %1361 = vmatpush.bf16.msra.mxu0 %v1816_v16 }
 0x18d   : > { %v1071_v21 = vor.u32 %v1070_v19, %v1066_v17 }
 0x18f   : > { %1680 = vmatmul.msk.bf16.vlgmr.msra.gmra.mxu1 %vm355_vm2, %v1071_v21 }
 0x190   : > { %v1136_v23 = vld.sshfl [vmem:[#allocation1] sm:$0xff pattern:$0x73625140]  ;;  %1400 = vmatpush.bf16.msra.mxu1 %v1819_v20 }
 0x191   : > { %v1138_v24 = vrot.slane %v1136_v23, 1  ;;  %1211 = vst [vmem:[#allocation1] ss:$4 sm:$0xff] %v1204_v22 }
 0x193   : > { %1702 = vmatmul.msk.bf16.vlgmr.msra.gmra.mxu3 %vm355_vm2, %v1138_v24 }
 0x194   : > { %1401 = vmatpush.bf16.msra.mxu1 %v1818_v0 }
 0x198   : > { %v1212_v2 = vld.sshfl [vmem:[#allocation1] sm:$0xff pattern:$0x73625140] }
 0x199   : > { %v1213_v25 = vshrl.u32 %v1212_v2, 16  ;;  %v1215_v26 = vshll.u32 %v1212_v2, 16  ;;  %1255 = vst [vmem:[#allocation1] ss:$4 sm:$0xff] %v1248_v1 }
 0x19b   : > { %v1217_v27 = vrot.slane %v1215_v26, 1 }
 0x19d   : > { %v1218_v28 = vor.u32 %v1217_v27, %v1213_v25 }
 0x19f   : > { %1728 = vmatmul.msk.bf16.vlgmr.msrb.gmra.mxu1 %vm355_vm2, %v1218_v28 }
 0x1a0   : > { %v1256_v31 = vld.sshfl [vmem:[#allocation1] sm:$0xff pattern:$0x73625140] }
 0x1a1   : > { %v1258_v33 = vrot.slane %v1256_v31, 1  ;;  %1331 = vst [vmem:[#allocation1] ss:$4 sm:$0xff] %v1324_v29 }
 0x1a3   : > { %1741 = vmatmul.msk.bf16.vlgmr.msrb.gmra.mxu2 %vm355_vm2, %v1258_v33  ;;  %1754 = vmatmul.msk.bf16.vlgmr.msrb.gmra.mxu3 %vm355_vm2, %v1289_v32 }
 0x1a8   : > { %v1332_v35 = vld.sshfl [vmem:[#allocation1] sm:$0xff pattern:$0x73625140] }
 0x1a9   : > { %v1333_v36 = vshrl.u32 %v1332_v35, 16  ;;  %v1335_v37 = vshll.u32 %v1332_v35, 16  ;;  %1375 = vst [vmem:[#allocation1] ss:$4 sm:$0xff] %v1368_v34 }
 0x1ab   : > { %v1337_v38 = vrot.slane %v1335_v37, 1 }
 0x1ad   : > { %v1338_v39 = vor.u32 %v1337_v38, %v1333_v36 }
 0x1af   : > { %1767 = vmatmul.msk.bf16.vlgmr.msra.gmra.mxu0 %vm355_vm2, %v1338_v39 }
 0x1b0   : > { %v1376_v40 = vld.sshfl [vmem:[#allocation1] sm:$0xff pattern:$0x73625140] }
 0x1b1   : > { %v1378_v41 = vrot.slane %v1376_v40, 1 }
 0x1b3   : > { %1780 = vmatmul.msk.bf16.vlgmr.msra.gmra.mxu1 %vm355_vm2, %v1378_v41 }
 0x206   : > { %v1199_v42 = vpop.f32.mrf.mxu0 }
 0x209   : > { %v1124_v43 = vpop.f32.mrf.mxu2 }
 0x20c   : > { %v1096_v44 = vpop.f32.mrf.mxu1 }
 0x20d   : > { %v1125_v51 = vadd.f32 %v1124_v43, %v1096_v44 }
 0x20e   : > { %v1201_v45 = vpop.f32.mrf.mxu0 }
 0x211   : > { %v1126_v46 = vpop.f32.mrf.mxu2 }
 0x214   : > { %v1098_v47 = vpop.f32.mrf.mxu1 }
 0x216   : > { %v1163_v48 = vpop.f32.mrf.mxu3 }
 0x217   : > { %v1167_v52 = vadd.f32 %v1163_v48, %v1125_v51 }
 0x219   : > { %v1203_v54 = vadd.f32 %v1199_v42, %v1167_v52 }
 0x21c   : > { %v1243_v49 = vpop.f32.mrf.mxu1 }
 0x21d   : > { %v1247_v57 = vadd.f32 %v1243_v49, %v1203_v54 }
 0x21e   : > { %v1165_v50 = vpop.f32.mrf.mxu3 }
 0x224   : > { %v1245_v53 = vpop.f32.mrf.mxu1 }
 0x226   : > { %v1283_v55 = vpop.f32.mrf.mxu2  ;;  %v1319_v56 = vpop.f32.mrf.mxu3 }
 0x227   : > { %v1287_v58 = vadd.f32 %v1283_v55, %v1247_v57 }
 0x229   : > { %v1323_v60 = vadd.f32 %v1319_v56, %v1287_v58 }
 0x22c   : > { %v1363_v59 = vpop.f32.mrf.mxu0 }
 0x22d   : > { %v1367_v3 = vadd.f32 %v1363_v59, %v1323_v60 }
 0x22e   : > { %v1285_v62 = vpop.f32.mrf.mxu2  ;;  %v1321_v63 = vpop.f32.mrf.mxu3 }
 0x230   : > { %v1403_v4 = vpop.f32.mrf.mxu1 }
 0x231   : > { %v1407_v6 = vadd.f32 %v1403_v4, %v1367_v3 }
 0x233   : > { %v1412_v7 = vadd.f32 %v1864_v30, %v1407_v6 }
 0x234   : > { %v1365_v9 = vpop.f32.mrf.mxu0 }
 0x235   : > { %vm1413_vm0 = vcmp.ge.f32.partialorder %v1412_v7, 0.0  ;;  %v1414_v10 = vmul.f32 0.2, %v1412_v7 }
 0x237   : > { %v1415_v11 = vsel %vm1413_vm0, %v1412_v7, %v1414_v10 }
 0x238   : > { %v1421_v12 = vadd.f32 %v1419_v8, %v1415_v11  ;;  %v1405_v13 = vpop.f32.mrf.mxu1 }
 0x23a   : > { %v1422_v14 = vpack.c.bf16 %v1421_v12, %v1421_v12 }
 0x23c   : > { %1424 = vst.msk [vmem:[%s242_s6] sm:$0x1] %vm1016_vm8, %v1422_v14 }
 0x23d PF: > { %s15_s22 = sadd.s32 1, %s1903_s22   ;;  %s2283_s18 = smov %s1895_s20 }
 0x23e   : > { %p12_p9 = scmp.ge.s32.totalorder %s15_s22, 6   ;;  %s2284_s19 = smov %s1899_s21 }
 0x23f   : > { %s2285_s20 = smov %s2288_s23  ;;  %s2286_s21 = smov %s2292_s24 }
 0x240   :  { %14 = sbr.rel (!%p12_p9) target bundleno = 3 (0x3), region = 136 }

// kernel: feature_extraction.19
= control target key start
LH: loop header
LB: loop body
LE: loop exit
PB: predicated region body
PF: predicated region fallthrough
CT: control target
= control target key end

     0   :  { %8 = vsyncpa [#allocation3], 0  ;;  %s1192_s0 = inlined_call_operand.vmem [shape: bf16[2,4,4,32], index: 0, kind: input, shape index: {}]   ;;  %s1193_s1 = inlined_call_operand.vmem [shape: bf16[9,32,32], index: 1, kind: input, shape index: {}]   ;;  %s1194_s2 = inlined_call_operand.vmem [shape: f32[1,32], index: 2, kind: input, shape index: {}]   ;;  %s1195_s3 = inlined_call_operand.hbm [shape: f32[2,2,2,32], index: 3, kind: output, shape index: {}]  }
   0x1   :  { %10 = vsyncpa [#allocation3 + $0x1], 0  ;;  %s994_s12 = smov 0   ;;  %s996_s13 = smov 0  }
   0x2   :  { %s998_s14 = smov 0   ;;  %s1000_s15 = smov 0  }
   0x3   :  { %s1002_s16 = smov 0   ;;  %s1004_s17 = smov 0  }
   0x4   :  { %s1006_s18 = smov 0   ;;  %s1008_s19 = smov 0  }
   0x5 LB: > { %s652_s20 = sadd.s32 4294967295, %s972_s19   ;;  %s653_s21 = sadd.s32 4294967294, %s972_s19   ;;  %s972_s19 = sphi %s1008_s19, %s16_s19   ;;  %s968_s18 = sphi %s1006_s18, %s1207_s18   ;;  %s964_s17 = sphi %s1004_s17, %s1206_s17   ;;  %s960_s16 = sphi %s1002_s16, %s1205_s16   ;;  %s956_s15 = sphi %s1000_s15, %s1204_s15   ;;  %s952_s14 = sphi %s998_s14, %s1203_s14   ;;  %s948_s13 = sphi %s996_s13, %s1202_s13   ;;  %s944_s12 = sphi %s994_s12, %s1201_s12  }
   0x6   : > { %s25_s22 = sadd.s32 1, %s964_s17  ;;  %s28_s23 = sadd.s32 1, %s968_s18 }
   0x7   : > { %p26_p0 = scmp.ge.s32.totalorder %s25_s22, 2  ;;  %p115_p1 = scmp.ne.s32.totalorder %s952_s14, %s948_s13 }
   0x8   : > { %p116_p2 = scmp.eq.s32.totalorder %s652_s20, 3  ;;  %p121_p5 = scmp.ne.s32.totalorder %s948_s13, %s944_s12 }
   0x9   : > { %s1209_s22 = smov (%p26_p0, %s25_s22), 0  ;;  %s1211_s23 = smov (!%p26_p0, %s28_s23), %s968_s18 }
   0xa   : > { %s101_s24 = ssub.s32 %s964_s17, %s1209_s22  ;;  %p1045_p3 = por %p116_p2, %p115_p1 }
   0xb   : > { %p30_p4 = scmp.ge.s32.totalorder %s1211_s23, 2  ;;  %p122_p6 = scmp.eq.s32.totalorder %s653_s21, 3 }
   0xc   : > { %p656_p7 = scmp.ge.s32.totalorder %s972_s19, 1  ;;  %p154_p9 = scmp.lt.s32.totalorder %s972_s19, 5 }
   0xd   : > { %s1213_s23 = smov (%p30_p4, %s1211_s23), 0  ;;  %p1054_p8 = por %p122_p6, %p121_p5 }
   0xe   : > { %1198 = sst [smem:[#allocation5_spill]] %s1213_s23  ;;  %s100_s27 = ssub.s32 %s968_s18, %s1213_s23 }
   0xf   : > { %s105_s28 = sadd.s32 1, %s952_s14  ;;  %s102_s29 = sor.u32 %s101_s24, %s100_s27 }
  0x10   : > { %p155_p10 = pnand %p656_p7, %p154_p9  ;;  %p103_p11 = scmp.eq.s32.totalorder %s102_s29, 0 }
  0x11   : > { %p178_p12 = scmp.lt.s32.totalorder (!%p155_p10), %s960_s16, 1  ;;  %s660_s29 = sshll.u32 (!%p155_p10), %s956_s15, 1 }
  0x12   : > { %s1063_s30 = scalar_select %p103_p11, %s952_s14, %s105_s28  }
  0x13   : > { %158 = sbr.rel (%p155_p10) target bundleno = 218 (0xda), region = 32 }
  0x18   : > { %v791_v0 = vld [vmem:[%s1193_s1 + $0x18] sm:$0xff]  ;;  %v789_v1 = vld [vmem:[%s1193_s1 + $0x8] sm:$0xff]  ;;  %v790_v4 = vld [vmem:[%s1193_s1 + $0x10] sm:$0xff]  ;;  %s179_s24 = scalar_select %p178_p12, %s960_s16, 1  ;;  %vm218_vm0 = vcmask 261120   ;;  %vm552_vm1 = vcmask 254976  }
  0x19   : > { %v793_v2 = vld [vmem:[%s1193_s1 + $0x28] sm:$0xff]  ;;  %v795_v3 = vld [vmem:[%s1193_s1 + $0x38] sm:$0xff]  ;;  %228 = vmatpush.bf16.msra.mxu0 %v791_v0  ;;  %256 = vmatpush.bf16.msra.mxu1 %v789_v1  ;;  %v788_v5 = vld [vmem:[%s1193_s1] sm:$0xff] }
  0x1a   : > { %295 = vmatpush.bf16.msra.mxu2 %v793_v2  ;;  %333 = vmatpush.bf16.msra.mxu3 %v795_v3  ;;  %v792_v6 = vld [vmem:[%s1193_s1 + $0x20] sm:$0xff]  ;;  %v794_v7 = vld [vmem:[%s1193_s1 + $0x30] sm:$0xff]  ;;  %s787_s8 = sshll.u32 %s179_s24, 3  ;;  %v797_v8 = vld [vmem:[%s1193_s1 + $0x48] sm:$0xff]  ;;  %s175_s24 = sand.u32 1, %s948_s13  }
  0x1b   : > { %v799_v9 = vld [vmem:[%s1193_s1 + $0x58] sm:$0xff]  ;;  %s182_s28 = scalar_lea.vmem %s1192_s0, %s787_s8  ;;  %v801_v10 = vld [vmem:[%s1193_s1 + $0x68] sm:$0xff]  ;;  %v796_v15 = vld [vmem:[%s1193_s1 + $0x40] sm:$0xff]  ;;  %s657_s23 = sshll.u32 %s175_s24, 1 }
  0x1c   : > { %s1104_s5 = scalar_lea.vmem %s182_s28, %s660_s29  ;;  %v803_v13 = vld [vmem:[%s1193_s1 + $0x78] sm:$0xff]  ;;  %v798_v16 = vld [vmem:[%s1193_s1 + $0x50] sm:$0xff]  ;;  %v800_v17 = vld [vmem:[%s1193_s1 + $0x60] sm:$0xff]  ;;  %s555_s21 = scalar_lea.sflag [#allocation3], %s175_s24 }
  0x1d   : > { %229 = vmatpush.bf16.msra.mxu0 %v790_v4  ;;  %257 = vmatpush.bf16.msra.mxu1 %v788_v5  ;;  %v191_v11 = vld [vmem:[%s1104_s5] sm:$0x3]  ;;  %v697_v14 = vld [vmem:[%s1104_s5 + $0x2] sm:$0x1]  ;;  %v802_v18 = vld [vmem:[%s1193_s1 + $0x70] sm:$0xff] }
  0x1e   : > { %296 = vmatpush.bf16.msra.mxu2 %v792_v6  ;;  %334 = vmatpush.bf16.msra.mxu3 %v794_v7  ;;  %v186_v12 = vld [vmem:[%s1104_s5] sm:$0x1]  ;;  %198 = vst [vmem:[#allocation1] ss:$4 sm:$0xff] %v191_v11  ;;  %v263_v19 = vld [vmem:[%s1104_s5] sm:$0x2] }
  0x1f   : > { %v805_v24 = vld [vmem:[%s1193_s1 + $0x88] sm:$0xff]  ;;  %v711_v26 = vld [vmem:[%s1104_s5 + $0x2] sm:$0x3]  ;;  %v754_v36 = vld [vmem:[%s1104_s5 + $0x4] sm:$0x3] }
  0x20   : > { %682 = vmatmul.msk.bf16.vlgmr.msra.gmra.mxu1 %vm218_vm0, %v186_v12  ;;  %v804_v28 = vld [vmem:[%s1193_s1 + $0x80] sm:$0xff] }
  0x21   : > { %377 = vmatpush.bf16.msrb.mxu0 %v797_v8  ;;  %417 = vmatpush.bf16.msrb.mxu1 %v799_v9  ;;  %v725_v30 = vld [vmem:[%s1104_s5 + $0x2] sm:$0x2]  ;;  %v740_v38 = vld [vmem:[%s1104_s5 + $0x4] sm:$0x1]  ;;  %v768_v40 = vld [vmem:[%s1104_s5 + $0x4] sm:$0x2] }
  0x22   : > { %455 = vmatpush.bf16.msrb.mxu2 %v801_v10  ;;  %710 = vmatmul.msk.bf16.vlgmr.msra.gmra.mxu3 %vm218_vm0, %v697_v14  ;;  %s783_s5 = sshll.u32 %s960_s16, 1  ;;  %v877_v7 = vld [vmem:[%s1194_s2] ss:$0 sm:$0xff]  ;;  %s177_s16 = scalar_lea.vmem [#allocation2], %s657_s23 }
  0x23   : > { %499 = vmatpush.bf16.msrb.mxu3 %v803_v13  ;;  %s565_s6 = sadd.s32 %s956_s15, %s783_s5  ;;  %s569_s15 = sshll.u32 %s177_s16, 4  ;;  %s570_s15 = int_to_ptr.vmem [resolvable:$true] %s569_s15 }
  0x24   : > { %s784_s29 = sshll.u32 %s565_s6, 1  ;;  %s898_s6 = scalar_lea.hbm %s1195_s3, 8 }
  0x25   : > { %378 = vmatpush.bf16.msrb.mxu0 %v796_v15  ;;  %418 = vmatpush.bf16.msrb.mxu1 %v798_v16  ;;  %v199_v20 = vld.sshfl [vmem:[#allocation1] sm:$0xff pattern:$0x73625140]  ;;  %s567_s9 = scalar_lea.hbm %s1195_s3, %s784_s29 }
  0x26   : > { %456 = vmatpush.bf16.msrb.mxu2 %v800_v17  ;;  %v200_v21 = vshrl.u32 %v199_v20, 16  ;;  %v202_v22 = vshll.u32 %v199_v20, 16  ;;  %270 = vst [vmem:[#allocation1] ss:$4 sm:$0xff] %v263_v19  ;;  %s571_s20 = sshll.u32 %s567_s9, 4  ;;  %s572_s20 = int_to_ptr.hbm [resolvable:$true] %s571_s20 }
  0x27   : > { %500 = vmatpush.bf16.msrb.mxu3 %v802_v18  ;;  %s892_s27 = sshra.s32 %s572_s20, 4  ;;  %s893_s27 = int_to_ptr.hbm [resolvable:$true] %s892_s27 }
  0x28   : > { %v204_v23 = vrot.slane %v202_v22, 1  ;;  %s894_s28 = scalar_lea.hbm %s893_s27, 2  ;;  %p899_p2 = scmp.lt.s32.totalorder %s893_s27, %s1195_s3 }
  0x29   : > { %p895_p13 = scmp.ne.s32.totalorder %s893_s27, %s894_s28  ;;  %p900_p4 = scmp.lt.s32.totalorder %s898_s6, %s894_s28 }
  0x2a   : > { %v205_v25 = vor.u32 %v204_v23, %v200_v21 }
  0x2b   : > { %p896_p0 = pnand %p895_p13, %p1045_p3  ;;  %p901_p5 = por %p900_p4, %p899_p2 }
  0x2c   : > { %673 = vmatmul.msk.bf16.vlgmr.msra.gmra.mxu0 %vm218_vm0, %v205_v25 }
  0x2d   : > { %v271_v27 = vld.sshfl [vmem:[#allocation1] sm:$0xff pattern:$0x73625140]  ;;  %539 = vmatpush.bf16.msra.mxu0 %v805_v24  ;;  %p897_p1 = pneg %p896_p0 }
  0x2e   : > { %v273_v29 = vrot.slane %v271_v27, 1  ;;  %348 = vst [vmem:[#allocation1] ss:$4 sm:$0xff] %v711_v26 }
  0x2f   : > { %p902_p6 = pnand %p901_p5, %p897_p1 }
  0x30   : > { %695 = vmatmul.msk.bf16.vlgmr.msra.gmra.mxu2 %vm218_vm0, %v273_v29 }
  0x31   : > { %540 = vmatpush.bf16.msra.mxu0 %v804_v28 }
  0x35   : > { %v349_v31 = vld.sshfl [vmem:[#allocation1] sm:$0xff pattern:$0x73625140] }
  0x36   : > { %v350_v32 = vshrl.u32 %v349_v31, 16  ;;  %v352_v33 = vshll.u32 %v349_v31, 16  ;;  %392 = vst [vmem:[#allocation1] ss:$4 sm:$0xff] %v725_v30 }
  0x38   : > { %v354_v34 = vrot.slane %v352_v33, 1 }
  0x3a   : > { %v355_v35 = vor.u32 %v354_v34, %v350_v32 }
  0x3c   : > { %724 = vmatmul.msk.bf16.vlgmr.msrb.gmra.mxu0 %vm218_vm0, %v355_v35 }
  0x3d   : > { %v393_v37 = vld.sshfl [vmem:[#allocation1] sm:$0xff pattern:$0x73625140] }
  0x3e   : > { %v395_v39 = vrot.slane %v393_v37, 1  ;;  %470 = vst [vmem:[#allocation1] ss:$4 sm:$0xff] %v754_v36 }
  0x40   : > { %738 = vmatmul.msk.bf16.vlgmr.msrb.gmra.mxu1 %vm218_vm0, %v395_v39  ;;  %753 = vmatmul.msk.bf16.vlgmr.msrb.gmra.mxu2 %vm218_vm0, %v740_v38 }
  0x45   : > { %v471_v41 = vld.sshfl [vmem:[#allocation1] sm:$0xff pattern:$0x73625140] }
  0x46   : > { %v472_v42 = vshrl.u32 %v471_v41, 16  ;;  %v474_v43 = vshll.u32 %v471_v41, 16  ;;  %514 = vst [vmem:[#allocation1] ss:$4 sm:$0xff] %v768_v40 }
  0x48   : > { %v476_v44 = vrot.slane %v474_v43, 1 }
  0x4a   : > { %v477_v45 = vor.u32 %v476_v44, %v472_v42 }
  0x4c   : > { %767 = vmatmul.msk.bf16.vlgmr.msrb.gmra.mxu3 %vm218_vm0, %v477_v45 }
  0x4d   : > { %v515_v46 = vld.sshfl [vmem:[#allocation1] sm:$0xff pattern:$0x73625140] }
  0x4e   : > { %v517_v47 = vrot.slane %v515_v46, 1 }
  0x50   : > { %781 = vmatmul.msk.bf16.vlgmr.msra.gmra.mxu0 %vm218_vm0, %v517_v47 }
  0x9d   : > { %v259_v48 = vpop.f32.mrf.mxu1 }
  0xa5   : > { %v336_v49 = vpop.f32.mrf.mxu3  ;;  %v261_v50 = vpop.f32.mrf.mxu1 }
  0xa9   : > { %v231_v51 = vpop.f32.mrf.mxu0 }
  0xaa   : > { %v260_v59 = vadd.f32 %v259_v48, %v231_v51 }
  0xad   : > { %v338_v52 = vpop.f32.mrf.mxu3 }
  0xb1   : > { %v233_v53 = vpop.f32.mrf.mxu0 }
  0xb3   : > { %v298_v54 = vpop.f32.mrf.mxu2 }
  0xb4   : > { %v302_v61 = vadd.f32 %v298_v54, %v260_v59 }
  0xb6   : > { %v340_v63 = vadd.f32 %v336_v49, %v302_v61 }
  0xb9   : > { %v380_v55 = vpop.f32.mrf.mxu0 }
  0xba   : > { %v384_v0 = vadd.f32 %v380_v55, %v340_v63 }
  0xbb   : > { %v300_v56 = vpop.f32.mrf.mxu2 }
  0xbd   : > { %v420_v57 = vpop.f32.mrf.mxu1 }
  0xbe   : > { %v424_v2 = vadd.f32 %v420_v57, %v384_v0 }
  0xc1   : > { %v382_v58 = vpop.f32.mrf.mxu0 }
  0xc3   : > { %v458_v60 = vpop.f32.mrf.mxu2 }
  0xc4   : > { %v462_v4 = vadd.f32 %v458_v60, %v424_v2 }
  0xc5   : > { %v422_v62 = vpop.f32.mrf.mxu1 }
  0xcb   : > { %v460_v1 = vpop.f32.mrf.mxu2 }
  0xcd   : > { %v542_v3 = vpop.f32.mrf.mxu0 }
  0xcf   : > { %v502_v5 = vpop.f32.mrf.mxu3 }
  0xd0   : > { %v506_v6 = vadd.f32 %v502_v5, %v462_v4 }
  0xd2   : > { %v546_v8 = vadd.f32 %v542_v3, %v506_v6 }
  0xd4   : > { %v551_v9 = vadd.f32 %v877_v7, %v546_v8 }
  0xd5   : > { %v544_v10 = vpop.f32.mrf.mxu0 }
  0xd6   : > { %553 = vst.msk [vmem:[%s177_s16] sm:$0x3] %vm552_vm1, %v551_v9 }
  0xd7   : > { %v504_v11 = vpop.f32.mrf.mxu3 }
  0xd8   : > { %905 = shalt.err (!%p902_p6)
}
  0xd9   : > { %806 = dma.vmem_to_hbm [thread:$0]  (%p1045_p3), %s570_s15, 32, %s572_s20, %s555_s21  }
  0xda PF: > { %p812_p7 = scmp.ge.s32.totalorder %s972_s19, 2  ;;  %s583_s24 = sand.u32 1, %s944_s12  }
  0xdb   : > { %s584_s7 = scalar_lea.sflag [#allocation3], %s583_s24 }
  0xdc   : > { %p809_p9 = pnand %p812_p7, %p1054_p8 }
  0xde   : > { %p810_p10 = pneg %p809_p9 }
  0xe0   : > { %939 = dma.done.wait (%p810_p10), %s584_s7, 32  }
  0xe1   : > { %941 = vsyncadd (%p810_p10), %s584_s7, 4294967264  ;;  %s16_s19 = sadd.s32 1, %s972_s19   ;;  %s1200_s25 = sld [smem:[#allocation5_spill]] }
  0xe2   : > { %p13_p11 = scmp.ge.s32.totalorder %s16_s19, 6   ;;  %s1201_s12 = smov %s948_s13 }
  0xe3   : > { %s1202_s13 = smov %s952_s14  ;;  %s1203_s14 = smov %s1063_s30 }
  0xe4   : > { %s1204_s15 = smov %s964_s17  ;;  %s1205_s16 = smov %s968_s18 }
  0xe5   : > { %s1206_s17 = smov %s1209_s22  ;;  %15 = sbr.rel (!%p13_p11) target bundleno = 5 (0x5), region = 78 }
  0xe7   : > { %s1207_s18 = smov %s1200_s25 }
  0xea   :  { %590 = vsyncpa [#allocation3], 1 }
  0xeb   :  { %592 = vsyncpa [#allocation3 + $0x1], 1 }

</bundles_post_ra>
